<compile_context>
chip_gen: v7x
topology: tpu7x:2x2x1
jax: 0.10.0
libtpu: 0.0.40
codegen_flags: <defaults>
</compile_context>

<pallas_src>
import math
import functools

import jax
import jax.numpy as jnp
from jax.experimental import pallas as pl
from jax.experimental.pallas import tpu as pltpu


def _round_up(x, m):
    return ((x + m - 1) // m) * m


# ---------------------------------------------------------------------------
# Fused forward kernel (one grid step == one encoder layer)
# ---------------------------------------------------------------------------

def fused_improvformer_kernel(
        # constant-index inputs (fetched once)
        x_ref, pe_ref, wi_ref, bi_ref,
        # layer-stacked weights, block index = layer id (pipelined per step)
        wqkv_ref, bqkv_ref, wo_ref, bo_ref,
        ln1w_ref, ln1b_ref, ln2w_ref, ln2b_ref,
        w1_ref, b1_ref, w2_ref, b2_ref,
        # constant-index head weights (fetched once)
        wout_ref, bout_ref, cw1_ref, cb1_ref, cw2_ref, cb2_ref,
        # outputs (resident across the layer axis, written at the last step)
        out_ref, logits_ref,
        # VMEM scratch: resident activation slab (f32)
        h_ref,
        *, num_heads, batch, seq):
    l = pl.program_id(0)
    B, S, H = batch, seq, num_heads
    D = h_ref.shape[-1]
    hd = D // H
    scale = 1.0 / math.sqrt(hd)

    # ---- step 0: fused input projection + positional encoding (+stillness) ----
    @pl.when(l == 0)
    def _():
        h0 = jnp.dot(x_ref[...], wi_ref[...], preferred_element_type=jnp.float32)
        h_ref[...] = h0 + bi_ref[...] + pe_ref[...]

    # ---- encoder layer l (post-LN, ReLU FFN), token-parallel on (B*S, D) ----
    x = h_ref[...]                                   # (B*S, D) f32 residual stream
    xb = x.astype(jnp.bfloat16)                      # bf16 activations for MXU-native matmuls
    qkv = (jnp.dot(xb, wqkv_ref[0], preferred_element_type=jnp.float32)
           + bqkv_ref[0])                            # (B*S, 3D) f32
    # TODO(synk): if D is scaled past ~512, stage qkv in a VMEM scratch (or use
    # column-sliced wqkv matmuls) instead of keeping the full value in vregs.

    # Per-head loop is static (H small); each head is batched over B via
    # dot_general.  Head outputs stay in registers and are concatenated
    # lane-aligned (hd = 128) -- no VMEM assembly buffer.
    head_outs = []
    for hh in range(H):
        qh = qkv[:, hh * hd:(hh + 1) * hd].reshape(B, S, hd)
        kh = qkv[:, D + hh * hd:D + (hh + 1) * hd].reshape(B, S, hd)
        vh = qkv[:, 2 * D + hh * hd:2 * D + (hh + 1) * hd].reshape(B, S, hd)
        s = jax.lax.dot_general(qh, kh, (((2,), (2,)), ((0,), (0,))),
                                preferred_element_type=jnp.float32) * scale
        s = s - jnp.max(s, axis=-1, keepdims=True)
        p = jnp.exp(s)
        p = p / jnp.sum(p, axis=-1, keepdims=True)   # exact softmax (no approx recip)
        oh = jax.lax.dot_general(p, vh, (((2,), (1,)), ((0,), (0,))),
                                 preferred_element_type=jnp.float32)
        head_outs.append(oh.reshape(B * S, hd))
    attn_in = head_outs[0] if H == 1 else jnp.concatenate(head_outs, axis=-1)
    # TODO(synk): fuse the per-head loop into one (B*H)-batched dot_general pair
    # if H or S grows (near-neutral at S=8, H=2).

    attn = (jnp.dot(attn_in.astype(jnp.bfloat16), wo_ref[0],
                    preferred_element_type=jnp.float32) + bo_ref[0])

    def layer_norm(val, w, b):
        # Two-pass (x - mu)^2 variance in f32 (safer than E[x^2]-E[x]^2).
        mu = jnp.mean(val, axis=-1, keepdims=True)
        d = val - mu
        var = jnp.mean(d * d, axis=-1, keepdims=True)
        return d * jax.lax.rsqrt(var + 1e-5) * w + b

    x1 = layer_norm(x + attn, ln1w_ref[0], ln1b_ref[0])
    ff = jnp.maximum(
        jnp.dot(x1.astype(jnp.bfloat16), w1_ref[0],
                preferred_element_type=jnp.float32) + b1_ref[0], 0.0)
    ff = jnp.dot(ff.astype(jnp.bfloat16), w2_ref[0],
                 preferred_element_type=jnp.float32) + b2_ref[0]
    h_ref[...] = layer_norm(x1 + ff, ln2w_ref[0], ln2b_ref[0])

    # ---- last step: output projection + meaning-classifier head (lane-padded) ----
    @pl.when(l == pl.num_programs(0) - 1)
    def _():
        hfin = h_ref[...]
        out = (jnp.dot(hfin, wout_ref[...], preferred_element_type=jnp.float32)
               + bout_ref[...])                                      # (B*S, P_out)
        out_ref[...] = out
        cls_tok = out.reshape(B, S, out.shape[-1])[:, S - 1, :]       # (B, P_out)
        hid = jnp.maximum(
            jnp.dot(cls_tok, cw1_ref[...], preferred_element_type=jnp.float32)
            + cb1_ref[...], 0.0)
        logits_ref[...] = (jnp.dot(hid, cw2_ref[...],
                                   preferred_element_type=jnp.float32)
                           + cb2_ref[...])


# ---------------------------------------------------------------------------
# Parameters (deterministic, synthetic); weights stored (in, out), lane-dense.
# Per-layer streamed matmul weights are bf16; everything else f32.
# ---------------------------------------------------------------------------

def sinusoidal_pe(max_len, d_model):
    pos = jnp.arange(max_len, dtype=jnp.float32)[:, None]
    div = jnp.exp(jnp.arange(0, d_model, 2, dtype=jnp.float32)
                  * (-math.log(10000.0) / d_model))
    pe = jnp.zeros((max_len, d_model), jnp.float32)
    pe = pe.at[:, 0::2].set(jnp.sin(pos * div))
    pe = pe.at[:, 1::2].set(jnp.cos(pos * div))
    return pe


def init_params(key, input_dim, output_dim, num_meaning_classes,
                num_heads=2, num_layers=2, dim_feedforward=256, max_len=64):
    D = dim_feedforward
    L = num_layers
    out_pad = _round_up(output_dim, 128)
    cls_pad = _round_up(num_meaning_classes, 128)
    ks = jax.random.split(key, 8)

    def w(k, shape):
        return 0.02 * jax.random.normal(k, shape, dtype=jnp.float32)

    params = {
        "num_heads": num_heads,
        "output_dim": output_dim,
        "num_classes": num_meaning_classes,
        "pe": sinusoidal_pe(max_len, D),
        "input_proj_w": w(ks[0], (input_dim, D)),
        "input_proj_b": jnp.zeros((1, D), jnp.float32),
        # output projection / classifier padded to 128 lanes (sliced in wrapper)
        "output_proj_w": jnp.pad(w(ks[1], (D, output_dim)),
                                 ((0, 0), (0, out_pad - output_dim))),
        "output_proj_b": jnp.zeros((1, out_pad), jnp.float32),
        "cls_w1": jnp.pad(w(ks[2], (output_dim, 128)),
                          ((0, out_pad - output_dim), (0, 0))),
        "cls_b1": jnp.zeros((1, 128), jnp.float32),
        "cls_w2": jnp.pad(w(ks[3], (128, num_meaning_classes)),
                          ((0, 0), (0, cls_pad - num_meaning_classes))),
        "cls_b2": jnp.zeros((1, cls_pad), jnp.float32),
        # per-layer weights stacked along a leading num_layers axis.
        # Streamed matmul weights in bf16 (halves the per-layer weight DMA);
        # biases / LN params stay f32.
        "layers": {
            "wqkv": w(ks[4], (L, D, 3 * D)).astype(jnp.bfloat16),
            "bqkv": jnp.zeros((L, 1, 3 * D), jnp.float32),
            "wo": w(ks[5], (L, D, D)).astype(jnp.bfloat16),
            "bo": jnp.zeros((L, 1, D), jnp.float32),
            "ln1w": jnp.ones((L, 1, D), jnp.float32),
            "ln1b": jnp.zeros((L, 1, D), jnp.float32),
            "ln2w": jnp.ones((L, 1, D), jnp.float32),
            "ln2b": jnp.zeros((L, 1, D), jnp.float32),
            "w1": w(ks[6], (L, D, D)).astype(jnp.bfloat16),  # FFN hidden == d_model here
            "b1": jnp.zeros((L, 1, D), jnp.float32),
            "w2": w(ks[7], (L, D, D)).astype(jnp.bfloat16),
            "b2": jnp.zeros((L, 1, D), jnp.float32),
        },
    }
    return params


# ---------------------------------------------------------------------------
# Forward wrapper: one fused pallas_call
# ---------------------------------------------------------------------------

def _const_index(l):
    return (0, 0)


def _layer_index(l):
    return (l, 0, 0)


def meaningful_improvformer_forward(params, x, stillness=None):
    B, S, Din = x.shape
    D = params["input_proj_w"].shape[1]
    lp = params["layers"]
    L = lp["wqkv"].shape[0]
    H = params["num_heads"]
    out_dim = params["output_dim"]
    n_cls = params["num_classes"]
    P_out = params["output_proj_w"].shape[1]
    P_cls = params["cls_w2"].shape[1]

    # Fold PE (+ optional stillness) into one bias slab on the host.
    pe = params["pe"][:S][None, :, :]
    if stillness is not None:
        pe = pe + stillness
    pe_flat = jnp.broadcast_to(pe, (B, S, D)).reshape(B * S, D).astype(jnp.float32)
    x_flat = x.reshape(B * S, Din).astype(jnp.float32)

    const_in_pre = (x_flat, pe_flat,
                    params["input_proj_w"], params["input_proj_b"])
    layer_in = (lp["wqkv"], lp["bqkv"], lp["wo"], lp["bo"],
                lp["ln1w"], lp["ln1b"], lp["ln2w"], lp["ln2b"],
                lp["w1"], lp["b1"], lp["w2"], lp["b2"])
    const_in_post = (params["output_proj_w"], params["output_proj_b"],
                     params["cls_w1"], params["cls_b1"],
                     params["cls_w2"], params["cls_b2"])

    kernel = functools.partial(fused_improvformer_kernel,
                               num_heads=H, batch=B, seq=S)

    def _run(single_buffer_consts):
        # Constant-index operands never change block index; single-buffering
        # them (pl.Buffered(1)) halves their VMEM footprint and shortens the
        # exposed prologue DMA.  Layer-stacked weights keep the default
        # double-buffering so layer l+1 prefetches under layer l's compute.
        const_kw = ({"pipeline_mode": pl.Buffered(1)}
                    if single_buffer_consts else {})
        in_specs = (
            [pl.BlockSpec(t.shape, _const_index, **const_kw) for t in const_in_pre]
            + [pl.BlockSpec((1,) + t.shape[1:], _layer_index) for t in layer_in]
            + [pl.BlockSpec(t.shape, _const_index, **const_kw) for t in const_in_post]
        )
        out_specs = [pl.BlockSpec((B * S, P_out), _const_index, **const_kw),
                     pl.BlockSpec((B, P_cls), _const_index, **const_kw)]
        return pl.pallas_call(
            kernel,
            grid=(L,),
            in_specs=in_specs,
            out_specs=out_specs,
            out_shape=[jax.ShapeDtypeStruct((B * S, P_out), jnp.float32),
                       jax.ShapeDtypeStruct((B, P_cls), jnp.float32)],
            scratch_shapes=[pltpu.VMEM((B * S, D), jnp.float32)],  # activation slab
            compiler_params=pltpu.CompilerParams(
                dimension_semantics=("arbitrary",),
                vmem_limit_bytes=32 * 1024 * 1024),
        )(*const_in_pre, *layer_in, *const_in_post)

    try:
        out_pad, logits_pad = _run(True)
    except Exception:
        # Fallback if this JAX build rejects pipeline_mode on the pallas_call
        # pipeline; the default (double-buffered) path is known-good.
        out_pad, logits_pad = _run(False)

    # TODO(synk): for real throughput, pack more sequences per call (target
    # M = B*S ~ 128-256) and, on v7x only after that, add a 'parallel'
    # batch-tile grid axis so both TensorCores share the token slab.
    out = out_pad.reshape(B, S, P_out)[:, :, :out_dim]
    meaning_logits = logits_pad[:, :n_cls]
    return out, meaning_logits


# ---------------------------------------------------------------------------
# Pure-JAX reference (PyTorch semantics, f32 math) for a sanity check
# ---------------------------------------------------------------------------

def reference_forward(params, x, stillness=None):
    B, S, _ = x.shape
    D = params["input_proj_w"].shape[1]
    H = params["num_heads"]
    hd = D // H
    out_dim = params["output_dim"]
    n_cls = params["num_classes"]

    h = x @ params["input_proj_w"] + params["input_proj_b"]
    h = h + params["pe"][:S][None]
    if stillness is not None:
        h = h + stillness

    lp = params["layers"]
    for l in range(lp["wqkv"].shape[0]):
        wqkv = lp["wqkv"][l].astype(jnp.float32)
        wo = lp["wo"][l].astype(jnp.float32)
        w1 = lp["w1"][l].astype(jnp.float32)
        w2 = lp["w2"][l].astype(jnp.float32)

        qkv = h @ wqkv + lp["bqkv"][l]
        q, k, v = qkv[..., :D], qkv[..., D:2 * D], qkv[..., 2 * D:]

        def split(t):
            return t.reshape(B, S, H, hd).transpose(0, 2, 1, 3)

        qh, kh, vh = split(q), split(k), split(v)
        s = jnp.einsum("bhqd,bhkd->bhqk", qh, kh) / math.sqrt(hd)
        p = jax.nn.softmax(s, axis=-1)
        o = jnp.einsum("bhqk,bhkd->bhqd", p, vh).transpose(0, 2, 1, 3).reshape(B, S, D)
        attn = o @ wo + lp["bo"][l]

        def ln(v_, w, b):
            mu = v_.mean(-1, keepdims=True)
            var = ((v_ - mu) ** 2).mean(-1, keepdims=True)
            return (v_ - mu) / jnp.sqrt(var + 1e-5) * w + b

        h1 = ln(h + attn, lp["ln1w"][l], lp["ln1b"][l])
        ff = jnp.maximum(h1 @ w1 + lp["b1"][l], 0.0)
        ff = ff @ w2 + lp["b2"][l]
        h = ln(h1 + ff, lp["ln2w"][l], lp["ln2b"][l])

    out = (h @ params["output_proj_w"] + params["output_proj_b"])[..., :out_dim]
    cls_tok = out[:, -1, :]
    hid = jnp.maximum(cls_tok @ params["cls_w1"][:out_dim] + params["cls_b1"], 0.0)
    logits = (hid @ params["cls_w2"] + params["cls_b2"])[:, :n_cls]
    return out, logits


# ---------------------------------------------------------------------------
# Demo
# ---------------------------------------------------------------------------

if __name__ == "__main__":
    key = jax.random.PRNGKey(0)
    k_par, k_x = jax.random.split(key)

    B, S = 2, 8
    input_dim = 16
    output_dim = 32
    num_meaning_classes = 4
    num_heads = 2
    num_layers = 2
    dim_feedforward = 256   # module default; head_dim = 128 (lane-dense)

    params = init_params(k_par, input_dim, output_dim, num_meaning_classes,
                         num_heads=num_heads, num_layers=num_layers,
                         dim_feedforward=dim_feedforward, max_len=64)

    x = jax.random.normal(k_x, (B, S, input_dim), dtype=jnp.float32)

    out, meaning_logits = meaningful_improvformer_forward(params, x)
    jax.block_until_ready((out, meaning_logits))

    assert out.shape == (B, S, output_dim)
    assert meaning_logits.shape == (B, num_meaning_classes)

    # Sanity check against the pure-JAX f32 reference (kernel uses bf16
    # activations for the streamed layer matmuls, so allow small differences).
    ref_out, ref_logits = reference_forward(params, x)
    assert bool(jnp.allclose(out, ref_out, atol=3e-2, rtol=3e-2))
    assert bool(jnp.allclose(meaning_logits, ref_logits, atol=3e-2, rtol=3e-2))

    print("KERNEL_OK")
</pallas_src>

<mosaic_0001>
module attributes {stable_mosaic.version = 11 : i64} {
  func.func @fused_improvformer_kernel(%arg0: i32, %arg1: memref<16x16xf32, #tpu.memory_space<vmem>>, %arg2: memref<16x256xf32, #tpu.memory_space<vmem>>, %arg3: memref<16x256xf32, #tpu.memory_space<vmem>>, %arg4: memref<1x256xf32, #tpu.memory_space<vmem>>, %arg5: memref<1x256x768xbf16, #tpu.memory_space<vmem>>, %arg6: memref<1x1x768xf32, #tpu.memory_space<vmem>>, %arg7: memref<1x256x256xbf16, #tpu.memory_space<vmem>>, %arg8: memref<1x1x256xf32, #tpu.memory_space<vmem>>, %arg9: memref<1x1x256xf32, #tpu.memory_space<vmem>>, %arg10: memref<1x1x256xf32, #tpu.memory_space<vmem>>, %arg11: memref<1x1x256xf32, #tpu.memory_space<vmem>>, %arg12: memref<1x1x256xf32, #tpu.memory_space<vmem>>, %arg13: memref<1x256x256xbf16, #tpu.memory_space<vmem>>, %arg14: memref<1x1x256xf32, #tpu.memory_space<vmem>>, %arg15: memref<1x256x256xbf16, #tpu.memory_space<vmem>>, %arg16: memref<1x1x256xf32, #tpu.memory_space<vmem>>, %arg17: memref<256x128xf32, #tpu.memory_space<vmem>>, %arg18: memref<1x128xf32, #tpu.memory_space<vmem>>, %arg19: memref<128x128xf32, #tpu.memory_space<vmem>>, %arg20: memref<1x128xf32, #tpu.memory_space<vmem>>, %arg21: memref<128x128xf32, #tpu.memory_space<vmem>>, %arg22: memref<1x128xf32, #tpu.memory_space<vmem>>, %arg23: memref<16x128xf32, #tpu.memory_space<vmem>>, %arg24: memref<2x128xf32, #tpu.memory_space<vmem>>, %arg25: memref<16x256xf32, #tpu.memory_space<vmem>>) attributes {dimension_semantics = [#tpu.dimension_semantics<arbitrary>], iteration_bounds = array<i64: 2>, scalar_prefetch = 0 : i64, scratch_operands = 1 : i64, tpu.core_type = #tpu.core_type<tc>, window_params = [{pipeline_mode = #tpu.pipeline_mode<synchronous>, transform_indices = @transform_0, window_bounds = array<i64: 16, 16>}, {pipeline_mode = #tpu.pipeline_mode<synchronous>, transform_indices = @transform_1, window_bounds = array<i64: 16, 256>}, {pipeline_mode = #tpu.pipeline_mode<synchronous>, transform_indices = @transform_2, window_bounds = array<i64: 16, 256>}, {pipeline_mode = #tpu.pipeline_mode<synchronous>, transform_indices = @transform_3, window_bounds = array<i64: 1, 256>}, {transform_indices = @transform_4, window_bounds = array<i64: 1, 256, 768>}, {transform_indices = @transform_5, window_bounds = array<i64: 1, 1, 768>}, {transform_indices = @transform_6, window_bounds = array<i64: 1, 256, 256>}, {transform_indices = @transform_7, window_bounds = array<i64: 1, 1, 256>}, {transform_indices = @transform_8, window_bounds = array<i64: 1, 1, 256>}, {transform_indices = @transform_9, window_bounds = array<i64: 1, 1, 256>}, {transform_indices = @transform_10, window_bounds = array<i64: 1, 1, 256>}, {transform_indices = @transform_11, window_bounds = array<i64: 1, 1, 256>}, {transform_indices = @transform_12, window_bounds = array<i64: 1, 256, 256>}, {transform_indices = @transform_13, window_bounds = array<i64: 1, 1, 256>}, {transform_indices = @transform_14, window_bounds = array<i64: 1, 256, 256>}, {transform_indices = @transform_15, window_bounds = array<i64: 1, 1, 256>}, {pipeline_mode = #tpu.pipeline_mode<synchronous>, transform_indices = @transform_16, window_bounds = array<i64: 256, 128>}, {pipeline_mode = #tpu.pipeline_mode<synchronous>, transform_indices = @transform_17, window_bounds = array<i64: 1, 128>}, {pipeline_mode = #tpu.pipeline_mode<synchronous>, transform_indices = @transform_18, window_bounds = array<i64: 128, 128>}, {pipeline_mode = #tpu.pipeline_mode<synchronous>, transform_indices = @transform_19, window_bounds = array<i64: 1, 128>}, {pipeline_mode = #tpu.pipeline_mode<synchronous>, transform_indices = @transform_20, window_bounds = array<i64: 128, 128>}, {pipeline_mode = #tpu.pipeline_mode<synchronous>, transform_indices = @transform_21, window_bounds = array<i64: 1, 128>}, {pipeline_mode = #tpu.pipeline_mode<synchronous>, transform_indices = @transform_22, window_bounds = array<i64: 16, 128>}, {pipeline_mode = #tpu.pipeline_mode<synchronous>, transform_indices = @transform_23, window_bounds = array<i64: 2, 128>}]} {
    %c0_i32 = arith.constant 0 : i32
    %0 = arith.cmpi eq, %arg0, %c0_i32 : i32
    %1 = arith.extui %0 : i1 to i32
    %c0_i32_0 = arith.constant 0 : i32
    %2 = arith.cmpi ne, %1, %c0_i32_0 : i32
    scf.if %2 {
      %c0_65 = arith.constant 0 : index
      %c0_66 = arith.constant 0 : index
      %133 = vector.load %arg1[%c0_65, %c0_66] : memref<16x16xf32, #tpu.memory_space<vmem>>, vector<16x16xf32>
      %c0_67 = arith.constant 0 : index
      %c0_68 = arith.constant 0 : index
      %134 = vector.load %arg3[%c0_67, %c0_68] : memref<16x256xf32, #tpu.memory_space<vmem>>, vector<16x256xf32>
      %cst_69 = arith.constant dense<0.000000e+00> : vector<16x256xf32>
      %135 = tpu.matmul %133, %134, %cst_69 {dimension_numbers = #tpu.dot_dimension_numbers<[1], [0], [0], [1], [0, 0, 1, 1], [], []>} : vector<16x16xf32>, vector<16x256xf32>, vector<16x256xf32> -> vector<16x256xf32>
      %c0_70 = arith.constant 0 : index
      %c0_71 = arith.constant 0 : index
      %136 = vector.load %arg4[%c0_70, %c0_71] : memref<1x256xf32, #tpu.memory_space<vmem>>, vector<1x256xf32>
      %137 = vector.broadcast %136 : vector<1x256xf32> to vector<16x256xf32>
      %138 = arith.addf %135, %137 : vector<16x256xf32>
      %c0_72 = arith.constant 0 : index
      %c0_73 = arith.constant 0 : index
      %139 = vector.load %arg2[%c0_72, %c0_73] : memref<16x256xf32, #tpu.memory_space<vmem>>, vector<16x256xf32>
      %140 = arith.addf %138, %139 : vector<16x256xf32>
      %c0_74 = arith.constant 0 : index
      %c0_75 = arith.constant 0 : index
      %141 = vector.load %arg25[%c0_74, %c0_75] : memref<16x256xf32, #tpu.memory_space<vmem>>, vector<16x256xf32>
      tpu.vector_store %arg25[%c0_74, %c0_75], %140 {strides = array<i32>} : memref<16x256xf32, #tpu.memory_space<vmem>>, vector<16x256xf32>,
    } else {
    }
    %c0 = arith.constant 0 : index
    %c0_1 = arith.constant 0 : index
    %3 = vector.load %arg25[%c0, %c0_1] : memref<16x256xf32, #tpu.memory_space<vmem>>, vector<16x256xf32>
    %4 = arith.truncf %3 : vector<16x256xf32> to vector<16x256xbf16>
    %c0_2 = arith.constant 0 : index
    %c0_3 = arith.constant 0 : index
    %c0_4 = arith.constant 0 : index
    %5 = vector.load %arg5[%c0_2, %c0_3, %c0_4] : memref<1x256x768xbf16, #tpu.memory_space<vmem>>, vector<1x256x768xbf16>
    %6 = vector.shape_cast %5 : vector<1x256x768xbf16> to vector<256x768xbf16>
    %cst = arith.constant dense<0.000000e+00> : vector<16x768xf32>
    %7 = tpu.matmul %4, %6, %cst {dimension_numbers = #tpu.dot_dimension_numbers<[1], [0], [0], [1], [0, 0, 1, 1], [], []>} : vector<16x256xbf16>, vector<256x768xbf16>, vector<16x768xf32> -> vector<16x768xf32>
    %c0_5 = arith.constant 0 : index
    %c0_6 = arith.constant 0 : index
    %c0_7 = arith.constant 0 : index
    %8 = vector.load %arg6[%c0_5, %c0_6, %c0_7] : memref<1x1x768xf32, #tpu.memory_space<vmem>>, vector<1x1x768xf32>
    %9 = vector.shape_cast %8 : vector<1x1x768xf32> to vector<1x768xf32>
    %10 = vector.broadcast %9 : vector<1x768xf32> to vector<16x768xf32>
    %11 = arith.addf %7, %10 : vector<16x768xf32>
    %12 = vector.extract_strided_slice %11 {offsets = [0, 0], sizes = [16, 128], strides = [1, 1]} : vector<16x768xf32> to vector<16x128xf32>
    %13 = vector.shape_cast %12 : vector<16x128xf32> to vector<2x8x128xf32>
    %14 = vector.extract_strided_slice %11 {offsets = [0, 256], sizes = [16, 128], strides = [1, 1]} : vector<16x768xf32> to vector<16x128xf32>
    %15 = vector.shape_cast %14 : vector<16x128xf32> to vector<2x8x128xf32>
    %16 = vector.extract_strided_slice %11 {offsets = [0, 512], sizes = [16, 128], strides = [1, 1]} : vector<16x768xf32> to vector<16x128xf32>
    %17 = vector.shape_cast %16 : vector<16x128xf32> to vector<2x8x128xf32>
    %cst_8 = arith.constant dense<0.000000e+00> : vector<2x8x8xf32>
    %18 = tpu.matmul %13, %15, %cst_8 {dimension_numbers = #tpu.dot_dimension_numbers<[2], [2], [1], [1], [0, 0, 0, 1, 1, 1], [0], [0]>} : vector<2x8x128xf32>, vector<2x8x128xf32>, vector<2x8x8xf32> -> vector<2x8x8xf32>
    %cst_9 = arith.constant 0.0883883461 : f32
    %19 = vector.broadcast %cst_9 : f32 to vector<2x8x8xf32>
    %20 = arith.mulf %18, %19 : vector<2x8x8xf32>
    %cst_10 = arith.constant dense<0xFF800000> : vector<2x8xf32>
    %21 = vector.multi_reduction <maximumf>, %20, %cst_10 [2] : vector<2x8x8xf32> to vector<2x8xf32>
    %22 = vector.shape_cast %21 : vector<2x8xf32> to vector<2x8x1xf32>
    %23 = vector.broadcast %22 : vector<2x8x1xf32> to vector<2x8x8xf32>
    %24 = arith.subf %20, %23 : vector<2x8x8xf32>
    %25 = math.exp %24 : vector<2x8x8xf32>
    %cst_11 = arith.constant dense<0.000000e+00> : vector<2x8xf32>
    %26 = vector.multi_reduction <add>, %25, %cst_11 [2] : vector<2x8x8xf32> to vector<2x8xf32>
    %27 = vector.shape_cast %26 : vector<2x8xf32> to vector<2x8x1xf32>
    %28 = vector.broadcast %27 : vector<2x8x1xf32> to vector<2x8x8xf32>
    %29 = arith.divf %25, %28 : vector<2x8x8xf32>
    %cst_12 = arith.constant dense<0.000000e+00> : vector<2x8x128xf32>
    %30 = tpu.matmul %29, %17, %cst_12 {dimension_numbers = #tpu.dot_dimension_numbers<[2], [1], [1], [2], [0, 0, 0, 1, 1, 2], [0], [0]>} : vector<2x8x8xf32>, vector<2x8x128xf32>, vector<2x8x128xf32> -> vector<2x8x128xf32>
    %31 = vector.shape_cast %30 : vector<2x8x128xf32> to vector<16x128xf32>
    %32 = vector.extract_strided_slice %11 {offsets = [0, 128], sizes = [16, 128], strides = [1, 1]} : vector<16x768xf32> to vector<16x128xf32>
    %33 = vector.shape_cast %32 : vector<16x128xf32> to vector<2x8x128xf32>
    %34 = vector.extract_strided_slice %11 {offsets = [0, 384], sizes = [16, 128], strides = [1, 1]} : vector<16x768xf32> to vector<16x128xf32>
    %35 = vector.shape_cast %34 : vector<16x128xf32> to vector<2x8x128xf32>
    %36 = vector.extract_strided_slice %11 {offsets = [0, 640], sizes = [16, 128], strides = [1, 1]} : vector<16x768xf32> to vector<16x128xf32>
    %37 = vector.shape_cast %36 : vector<16x128xf32> to vector<2x8x128xf32>
    %cst_13 = arith.constant dense<0.000000e+00> : vector<2x8x8xf32>
    %38 = tpu.matmul %33, %35, %cst_13 {dimension_numbers = #tpu.dot_dimension_numbers<[2], [2], [1], [1], [0, 0, 0, 1, 1, 1], [0], [0]>} : vector<2x8x128xf32>, vector<2x8x128xf32>, vector<2x8x8xf32> -> vector<2x8x8xf32>
    %cst_14 = arith.constant 0.0883883461 : f32
    %39 = vector.broadcast %cst_14 : f32 to vector<2x8x8xf32>
    %40 = arith.mulf %38, %39 : vector<2x8x8xf32>
    %cst_15 = arith.constant dense<0xFF800000> : vector<2x8xf32>
    %41 = vector.multi_reduction <maximumf>, %40, %cst_15 [2] : vector<2x8x8xf32> to vector<2x8xf32>
    %42 = vector.shape_cast %41 : vector<2x8xf32> to vector<2x8x1xf32>
    %43 = vector.broadcast %42 : vector<2x8x1xf32> to vector<2x8x8xf32>
    %44 = arith.subf %40, %43 : vector<2x8x8xf32>
    %45 = math.exp %44 : vector<2x8x8xf32>
    %cst_16 = arith.constant dense<0.000000e+00> : vector<2x8xf32>
    %46 = vector.multi_reduction <add>, %45, %cst_16 [2] : vector<2x8x8xf32> to vector<2x8xf32>
    %47 = vector.shape_cast %46 : vector<2x8xf32> to vector<2x8x1xf32>
    %48 = vector.broadcast %47 : vector<2x8x1xf32> to vector<2x8x8xf32>
    %49 = arith.divf %45, %48 : vector<2x8x8xf32>
    %cst_17 = arith.constant dense<0.000000e+00> : vector<2x8x128xf32>
    %50 = tpu.matmul %49, %37, %cst_17 {dimension_numbers = #tpu.dot_dimension_numbers<[2], [1], [1], [2], [0, 0, 0, 1, 1, 2], [0], [0]>} : vector<2x8x8xf32>, vector<2x8x128xf32>, vector<2x8x128xf32> -> vector<2x8x128xf32>
    %51 = vector.shape_cast %50 : vector<2x8x128xf32> to vector<16x128xf32>
    %52 = tpu.concatenate %31, %51 in 1 : vector<16x128xf32>, vector<16x128xf32> -> vector<16x256xf32>
    %53 = arith.truncf %52 : vector<16x256xf32> to vector<16x256xbf16>
    %c0_18 = arith.constant 0 : index
    %c0_19 = arith.constant 0 : index
    %c0_20 = arith.constant 0 : index
    %54 = vector.load %arg7[%c0_18, %c0_19, %c0_20] : memref<1x256x256xbf16, #tpu.memory_space<vmem>>, vector<1x256x256xbf16>
    %55 = vector.shape_cast %54 : vector<1x256x256xbf16> to vector<256x256xbf16>
    %cst_21 = arith.constant dense<0.000000e+00> : vector<16x256xf32>
    %56 = tpu.matmul %53, %55, %cst_21 {dimension_numbers = #tpu.dot_dimension_numbers<[1], [0], [0], [1], [0, 0, 1, 1], [], []>} : vector<16x256xbf16>, vector<256x256xbf16>, vector<16x256xf32> -> vector<16x256xf32>
    %c0_22 = arith.constant 0 : index
    %c0_23 = arith.constant 0 : index
    %c0_24 = arith.constant 0 : index
    %57 = vector.load %arg8[%c0_22, %c0_23, %c0_24] : memref<1x1x256xf32, #tpu.memory_space<vmem>>, vector<1x1x256xf32>
    %58 = vector.shape_cast %57 : vector<1x1x256xf32> to vector<1x256xf32>
    %59 = vector.broadcast %58 : vector<1x256xf32> to vector<16x256xf32>
    %60 = arith.addf %56, %59 : vector<16x256xf32>
    %61 = arith.addf %3, %60 : vector<16x256xf32>
    %c0_25 = arith.constant 0 : index
    %c0_26 = arith.constant 0 : index
    %c0_27 = arith.constant 0 : index
    %62 = vector.load %arg9[%c0_25, %c0_26, %c0_27] : memref<1x1x256xf32, #tpu.memory_space<vmem>>, vector<1x1x256xf32>
    %63 = vector.shape_cast %62 : vector<1x1x256xf32> to vector<1x256xf32>
    %c0_28 = arith.constant 0 : index
    %c0_29 = arith.constant 0 : index
    %c0_30 = arith.constant 0 : index
    %64 = vector.load %arg10[%c0_28, %c0_29, %c0_30] : memref<1x1x256xf32, #tpu.memory_space<vmem>>, vector<1x1x256xf32>
    %65 = vector.shape_cast %64 : vector<1x1x256xf32> to vector<1x256xf32>
    %cst_31 = arith.constant dense<0.000000e+00> : vector<16xf32>
    %66 = vector.multi_reduction <add>, %61, %cst_31 [1] : vector<16x256xf32> to vector<16xf32>
    %67 = vector.shape_cast %66 : vector<16xf32> to vector<16x1xf32>
    %cst_32 = arith.constant 2.560000e+02 : f32
    %68 = vector.broadcast %cst_32 : f32 to vector<16x1xf32>
    %69 = arith.divf %67, %68 : vector<16x1xf32>
    %70 = vector.broadcast %69 : vector<16x1xf32> to vector<16x256xf32>
    %71 = arith.subf %61, %70 : vector<16x256xf32>
    %72 = arith.mulf %71, %71 : vector<16x256xf32>
    %cst_33 = arith.constant dense<0.000000e+00> : vector<16xf32>
    %73 = vector.multi_reduction <add>, %72, %cst_33 [1] : vector<16x256xf32> to vector<16xf32>
    %74 = vector.shape_cast %73 : vector<16xf32> to vector<16x1xf32>
    %cst_34 = arith.constant 2.560000e+02 : f32
    %75 = vector.broadcast %cst_34 : f32 to vector<16x1xf32>
    %76 = arith.divf %74, %75 : vector<16x1xf32>
    %cst_35 = arith.constant 9.99999974E-6 : f32
    %77 = vector.broadcast %cst_35 : f32 to vector<16x1xf32>
    %78 = arith.addf %76, %77 : vector<16x1xf32>
    %79 = math.rsqrt %78 : vector<16x1xf32>
    %80 = vector.broadcast %79 : vector<16x1xf32> to vector<16x256xf32>
    %81 = arith.mulf %71, %80 : vector<16x256xf32>
    %82 = vector.broadcast %63 : vector<1x256xf32> to vector<16x256xf32>
    %83 = arith.mulf %81, %82 : vector<16x256xf32>
    %84 = vector.broadcast %65 : vector<1x256xf32> to vector<16x256xf32>
    %85 = arith.addf %83, %84 : vector<16x256xf32>
    %86 = arith.truncf %85 : vector<16x256xf32> to vector<16x256xbf16>
    %c0_36 = arith.constant 0 : index
    %c0_37 = arith.constant 0 : index
    %c0_38 = arith.constant 0 : index
    %87 = vector.load %arg13[%c0_36, %c0_37, %c0_38] : memref<1x256x256xbf16, #tpu.memory_space<vmem>>, vector<1x256x256xbf16>
    %88 = vector.shape_cast %87 : vector<1x256x256xbf16> to vector<256x256xbf16>
    %cst_39 = arith.constant dense<0.000000e+00> : vector<16x256xf32>
    %89 = tpu.matmul %86, %88, %cst_39 {dimension_numbers = #tpu.dot_dimension_numbers<[1], [0], [0], [1], [0, 0, 1, 1], [], []>} : vector<16x256xbf16>, vector<256x256xbf16>, vector<16x256xf32> -> vector<16x256xf32>
    %c0_40 = arith.constant 0 : index
    %c0_41 = arith.constant 0 : index
    %c0_42 = arith.constant 0 : index
    %90 = vector.load %arg14[%c0_40, %c0_41, %c0_42] : memref<1x1x256xf32, #tpu.memory_space<vmem>>, vector<1x1x256xf32>
    %91 = vector.shape_cast %90 : vector<1x1x256xf32> to vector<1x256xf32>
    %92 = vector.broadcast %91 : vector<1x256xf32> to vector<16x256xf32>
    %93 = arith.addf %89, %92 : vector<16x256xf32>
    %cst_43 = arith.constant 0.000000e+00 : f32
    %94 = vector.broadcast %cst_43 : f32 to vector<16x256xf32>
    %95 = arith.maximumf %93, %94 : vector<16x256xf32>
    %96 = arith.truncf %95 : vector<16x256xf32> to vector<16x256xbf16>
    %c0_44 = arith.constant 0 : index
    %c0_45 = arith.constant 0 : index
    %c0_46 = arith.constant 0 : index
    %97 = vector.load %arg15[%c0_44, %c0_45, %c0_46] : memref<1x256x256xbf16, #tpu.memory_space<vmem>>, vector<1x256x256xbf16>
    %98 = vector.shape_cast %97 : vector<1x256x256xbf16> to vector<256x256xbf16>
    %cst_47 = arith.constant dense<0.000000e+00> : vector<16x256xf32>
    %99 = tpu.matmul %96, %98, %cst_47 {dimension_numbers = #tpu.dot_dimension_numbers<[1], [0], [0], [1], [0, 0, 1, 1], [], []>} : vector<16x256xbf16>, vector<256x256xbf16>, vector<16x256xf32> -> vector<16x256xf32>
    %c0_48 = arith.constant 0 : index
    %c0_49 = arith.constant 0 : index
    %c0_50 = arith.constant 0 : index
    %100 = vector.load %arg16[%c0_48, %c0_49, %c0_50] : memref<1x1x256xf32, #tpu.memory_space<vmem>>, vector<1x1x256xf32>
    %101 = vector.shape_cast %100 : vector<1x1x256xf32> to vector<1x256xf32>
    %102 = vector.broadcast %101 : vector<1x256xf32> to vector<16x256xf32>
    %103 = arith.addf %99, %102 : vector<16x256xf32>
    %104 = arith.addf %85, %103 : vector<16x256xf32>
    %c0_51 = arith.constant 0 : index
    %c0_52 = arith.constant 0 : index
    %c0_53 = arith.constant 0 : index
    %105 = vector.load %arg11[%c0_51, %c0_52, %c0_53] : memref<1x1x256xf32, #tpu.memory_space<vmem>>, vector<1x1x256xf32>
    %106 = vector.shape_cast %105 : vector<1x1x256xf32> to vector<1x256xf32>
    %c0_54 = arith.constant 0 : index
    %c0_55 = arith.constant 0 : index
    %c0_56 = arith.constant 0 : index
    %107 = vector.load %arg12[%c0_54, %c0_55, %c0_56] : memref<1x1x256xf32, #tpu.memory_space<vmem>>, vector<1x1x256xf32>
    %108 = vector.shape_cast %107 : vector<1x1x256xf32> to vector<1x256xf32>
    %cst_57 = arith.constant dense<0.000000e+00> : vector<16xf32>
    %109 = vector.multi_reduction <add>, %104, %cst_57 [1] : vector<16x256xf32> to vector<16xf32>
    %110 = vector.shape_cast %109 : vector<16xf32> to vector<16x1xf32>
    %cst_58 = arith.constant 2.560000e+02 : f32
    %111 = vector.broadcast %cst_58 : f32 to vector<16x1xf32>
    %112 = arith.divf %110, %111 : vector<16x1xf32>
    %113 = vector.broadcast %112 : vector<16x1xf32> to vector<16x256xf32>
    %114 = arith.subf %104, %113 : vector<16x256xf32>
    %115 = arith.mulf %114, %114 : vector<16x256xf32>
    %cst_59 = arith.constant dense<0.000000e+00> : vector<16xf32>
    %116 = vector.multi_reduction <add>, %115, %cst_59 [1] : vector<16x256xf32> to vector<16xf32>
    %117 = vector.shape_cast %116 : vector<16xf32> to vector<16x1xf32>
    %cst_60 = arith.constant 2.560000e+02 : f32
    %118 = vector.broadcast %cst_60 : f32 to vector<16x1xf32>
    %119 = arith.divf %117, %118 : vector<16x1xf32>
    %cst_61 = arith.constant 9.99999974E-6 : f32
    %120 = vector.broadcast %cst_61 : f32 to vector<16x1xf32>
    %121 = arith.addf %119, %120 : vector<16x1xf32>
    %122 = math.rsqrt %121 : vector<16x1xf32>
    %123 = vector.broadcast %122 : vector<16x1xf32> to vector<16x256xf32>
    %124 = arith.mulf %114, %123 : vector<16x256xf32>
    %125 = vector.broadcast %106 : vector<1x256xf32> to vector<16x256xf32>
    %126 = arith.mulf %124, %125 : vector<16x256xf32>
    %127 = vector.broadcast %108 : vector<1x256xf32> to vector<16x256xf32>
    %128 = arith.addf %126, %127 : vector<16x256xf32>
    %c0_62 = arith.constant 0 : index
    %c0_63 = arith.constant 0 : index
    %129 = vector.load %arg25[%c0_62, %c0_63] : memref<16x256xf32, #tpu.memory_space<vmem>>, vector<16x256xf32>
    tpu.vector_store %arg25[%c0_62, %c0_63], %128 {strides = array<i32>} : memref<16x256xf32, #tpu.memory_space<vmem>>, vector<16x256xf32>,
    %c1_i32 = arith.constant 1 : i32
    %130 = arith.cmpi eq, %arg0, %c1_i32 : i32
    %131 = arith.extui %130 : i1 to i32
    %c0_i32_64 = arith.constant 0 : i32
    %132 = arith.cmpi ne, %131, %c0_i32_64 : i32
    scf.if %132 {
      %c0_65 = arith.constant 0 : index
      %c0_66 = arith.constant 0 : index
      %133 = vector.load %arg25[%c0_65, %c0_66] : memref<16x256xf32, #tpu.memory_space<vmem>>, vector<16x256xf32>
      %c0_67 = arith.constant 0 : index
      %c0_68 = arith.constant 0 : index
      %134 = vector.load %arg17[%c0_67, %c0_68] : memref<256x128xf32, #tpu.memory_space<vmem>>, vector<256x128xf32>
      %cst_69 = arith.constant dense<0.000000e+00> : vector<16x128xf32>
      %135 = tpu.matmul %133, %134, %cst_69 {dimension_numbers = #tpu.dot_dimension_numbers<[1], [0], [0], [1], [0, 0, 1, 1], [], []>} : vector<16x256xf32>, vector<256x128xf32>, vector<16x128xf32> -> vector<16x128xf32>
      %c0_70 = arith.constant 0 : index
      %c0_71 = arith.constant 0 : index
      %136 = vector.load %arg18[%c0_70, %c0_71] : memref<1x128xf32, #tpu.memory_space<vmem>>, vector<1x128xf32>
      %137 = vector.broadcast %136 : vector<1x128xf32> to vector<16x128xf32>
      %138 = arith.addf %135, %137 : vector<16x128xf32>
      %c0_72 = arith.constant 0 : index
      %c0_73 = arith.constant 0 : index
      %139 = vector.load %arg23[%c0_72, %c0_73] : memref<16x128xf32, #tpu.memory_space<vmem>>, vector<16x128xf32>
      tpu.vector_store %arg23[%c0_72, %c0_73], %138 {strides = array<i32>} : memref<16x128xf32, #tpu.memory_space<vmem>>, vector<16x128xf32>,
      %140 = vector.shape_cast %138 : vector<16x128xf32> to vector<2x8x128xf32>
      %141 = vector.extract_strided_slice %140 {offsets = [0, 7, 0], sizes = [2, 1, 128], strides = [1, 1, 1]} : vector<2x8x128xf32> to vector<2x1x128xf32>
      %142 = vector.shape_cast %141 : vector<2x1x128xf32> to vector<2x128xf32>
      %c0_74 = arith.constant 0 : index
      %c0_75 = arith.constant 0 : index
      %143 = vector.load %arg19[%c0_74, %c0_75] : memref<128x128xf32, #tpu.memory_space<vmem>>, vector<128x128xf32>
      %cst_76 = arith.constant dense<0.000000e+00> : vector<2x128xf32>
      %144 = tpu.matmul %142, %143, %cst_76 {dimension_numbers = #tpu.dot_dimension_numbers<[1], [0], [0], [1], [0, 0, 1, 1], [], []>} : vector<2x128xf32>, vector<128x128xf32>, vector<2x128xf32> -> vector<2x128xf32>
      %c0_77 = arith.constant 0 : index
      %c0_78 = arith.constant 0 : index
      %145 = vector.load %arg20[%c0_77, %c0_78] : memref<1x128xf32, #tpu.memory_space<vmem>>, vector<1x128xf32>
      %146 = vector.broadcast %145 : vector<1x128xf32> to vector<2x128xf32>
      %147 = arith.addf %144, %146 : vector<2x128xf32>
      %cst_79 = arith.constant 0.000000e+00 : f32
      %148 = vector.broadcast %cst_79 : f32 to vector<2x128xf32>
      %149 = arith.maximumf %147, %148 : vector<2x128xf32>
      %c0_80 = arith.constant 0 : index
      %c0_81 = arith.constant 0 : index
      %150 = vector.load %arg21[%c0_80, %c0_81] : memref<128x128xf32, #tpu.memory_space<vmem>>, vector<128x128xf32>
      %cst_82 = arith.constant dense<0.000000e+00> : vector<2x128xf32>
      %151 = tpu.matmul %149, %150, %cst_82 {dimension_numbers = #tpu.dot_dimension_numbers<[1], [0], [0], [1], [0, 0, 1, 1], [], []>} : vector<2x128xf32>, vector<128x128xf32>, vector<2x128xf32> -> vector<2x128xf32>
      %c0_83 = arith.constant 0 : index
      %c0_84 = arith.constant 0 : index
      %152 = vector.load %arg22[%c0_83, %c0_84] : memref<1x128xf32, #tpu.memory_space<vmem>>, vector<1x128xf32>
      %153 = vector.broadcast %152 : vector<1x128xf32> to vector<2x128xf32>
      %154 = arith.addf %151, %153 : vector<2x128xf32>
      %c0_85 = arith.constant 0 : index
      %c0_86 = arith.constant 0 : index
      %155 = vector.load %arg24[%c0_85, %c0_86] : memref<2x128xf32, #tpu.memory_space<vmem>>, vector<2x128xf32>
      tpu.vector_store %arg24[%c0_85, %c0_86], %154 {strides = array<i32>} : memref<2x128xf32, #tpu.memory_space<vmem>>, vector<2x128xf32>,
    } else {
    }
    return
  }
  func.func @transform_0(%arg0: i32) -> (i32, i32) {
    %c0_i32 = arith.constant 0 : i32
    %c0_i32_0 = arith.constant 0 : i32
    %c0_i32_1 = arith.constant 0 : i32
    return %c0_i32, %c0_i32_0 : i32, i32
  }
  func.func @transform_1(%arg0: i32) -> (i32, i32) {
    %c0_i32 = arith.constant 0 : i32
    %c0_i32_0 = arith.constant 0 : i32
    %c0_i32_1 = arith.constant 0 : i32
    return %c0_i32, %c0_i32_0 : i32, i32
  }
  func.func @transform_2(%arg0: i32) -> (i32, i32) {
    %c0_i32 = arith.constant 0 : i32
    %c0_i32_0 = arith.constant 0 : i32
    %c0_i32_1 = arith.constant 0 : i32
    return %c0_i32, %c0_i32_0 : i32, i32
  }
  func.func @transform_3(%arg0: i32) -> (i32, i32) {
    %c0_i32 = arith.constant 0 : i32
    %c0_i32_0 = arith.constant 0 : i32
    %c0_i32_1 = arith.constant 0 : i32
    return %c0_i32, %c0_i32_0 : i32, i32
  }
  func.func @transform_4(%arg0: i32) -> (i32, i32, i32) {
    %c0_i32 = arith.constant 0 : i32
    %c0_i32_0 = arith.constant 0 : i32
    %c0_i32_1 = arith.constant 0 : i32
    return %arg0, %c0_i32, %c0_i32_0 : i32, i32, i32
  }
  func.func @transform_5(%arg0: i32) -> (i32, i32, i32) {
    %c0_i32 = arith.constant 0 : i32
    %c0_i32_0 = arith.constant 0 : i32
    %c0_i32_1 = arith.constant 0 : i32
    return %arg0, %c0_i32, %c0_i32_0 : i32, i32, i32
  }
  func.func @transform_6(%arg0: i32) -> (i32, i32, i32) {
    %c0_i32 = arith.constant 0 : i32
    %c0_i32_0 = arith.constant 0 : i32
    %c0_i32_1 = arith.constant 0 : i32
    return %arg0, %c0_i32, %c0_i32_0 : i32, i32, i32
  }
  func.func @transform_7(%arg0: i32) -> (i32, i32, i32) {
    %c0_i32 = arith.constant 0 : i32
    %c0_i32_0 = arith.constant 0 : i32
    %c0_i32_1 = arith.constant 0 : i32
    return %arg0, %c0_i32, %c0_i32_0 : i32, i32, i32
  }
  func.func @transform_8(%arg0: i32) -> (i32, i32, i32) {
    %c0_i32 = arith.constant 0 : i32
    %c0_i32_0 = arith.constant 0 : i32
    %c0_i32_1 = arith.constant 0 : i32
    return %arg0, %c0_i32, %c0_i32_0 : i32, i32, i32
  }
  func.func @transform_9(%arg0: i32) -> (i32, i32, i32) {
    %c0_i32 = arith.constant 0 : i32
    %c0_i32_0 = arith.constant 0 : i32
    %c0_i32_1 = arith.constant 0 : i32
    return %arg0, %c0_i32, %c0_i32_0 : i32, i32, i32
  }
  func.func @transform_10(%arg0: i32) -> (i32, i32, i32) {
    %c0_i32 = arith.constant 0 : i32
    %c0_i32_0 = arith.constant 0 : i32
    %c0_i32_1 = arith.constant 0 : i32
    return %arg0, %c0_i32, %c0_i32_0 : i32, i32, i32
  }
  func.func @transform_11(%arg0: i32) -> (i32, i32, i32) {
    %c0_i32 = arith.constant 0 : i32
    %c0_i32_0 = arith.constant 0 : i32
    %c0_i32_1 = arith.constant 0 : i32
    return %arg0, %c0_i32, %c0_i32_0 : i32, i32, i32
  }
  func.func @transform_12(%arg0: i32) -> (i32, i32, i32) {
    %c0_i32 = arith.constant 0 : i32
    %c0_i32_0 = arith.constant 0 : i32
    %c0_i32_1 = arith.constant 0 : i32
    return %arg0, %c0_i32, %c0_i32_0 : i32, i32, i32
  }
  func.func @transform_13(%arg0: i32) -> (i32, i32, i32) {
    %c0_i32 = arith.constant 0 : i32
    %c0_i32_0 = arith.constant 0 : i32
    %c0_i32_1 = arith.constant 0 : i32
    return %arg0, %c0_i32, %c0_i32_0 : i32, i32, i32
  }
  func.func @transform_14(%arg0: i32) -> (i32, i32, i32) {
    %c0_i32 = arith.constant 0 : i32
    %c0_i32_0 = arith.constant 0 : i32
    %c0_i32_1 = arith.constant 0 : i32
    return %arg0, %c0_i32, %c0_i32_0 : i32, i32, i32
  }
  func.func @transform_15(%arg0: i32) -> (i32, i32, i32) {
    %c0_i32 = arith.constant 0 : i32
    %c0_i32_0 = arith.constant 0 : i32
    %c0_i32_1 = arith.constant 0 : i32
    return %arg0, %c0_i32, %c0_i32_0 : i32, i32, i32
  }
  func.func @transform_16(%arg0: i32) -> (i32, i32) {
    %c0_i32 = arith.constant 0 : i32
    %c0_i32_0 = arith.constant 0 : i32
    %c0_i32_1 = arith.constant 0 : i32
    return %c0_i32, %c0_i32_0 : i32, i32
  }
  func.func @transform_17(%arg0: i32) -> (i32, i32) {
    %c0_i32 = arith.constant 0 : i32
    %c0_i32_0 = arith.constant 0 : i32
    %c0_i32_1 = arith.constant 0 : i32
    return %c0_i32, %c0_i32_0 : i32, i32
  }
  func.func @transform_18(%arg0: i32) -> (i32, i32) {
    %c0_i32 = arith.constant 0 : i32
    %c0_i32_0 = arith.constant 0 : i32
    %c0_i32_1 = arith.constant 0 : i32
    return %c0_i32, %c0_i32_0 : i32, i32
  }
  func.func @transform_19(%arg0: i32) -> (i32, i32) {
    %c0_i32 = arith.constant 0 : i32
    %c0_i32_0 = arith.constant 0 : i32
    %c0_i32_1 = arith.constant 0 : i32
    return %c0_i32, %c0_i32_0 : i32, i32
  }
  func.func @transform_20(%arg0: i32) -> (i32, i32) {
    %c0_i32 = arith.constant 0 : i32
    %c0_i32_0 = arith.constant 0 : i32
    %c0_i32_1 = arith.constant 0 : i32
    return %c0_i32, %c0_i32_0 : i32, i32
  }
  func.func @transform_21(%arg0: i32) -> (i32, i32) {
    %c0_i32 = arith.constant 0 : i32
    %c0_i32_0 = arith.constant 0 : i32
    %c0_i32_1 = arith.constant 0 : i32
    return %c0_i32, %c0_i32_0 : i32, i32
  }
  func.func @transform_22(%arg0: i32) -> (i32, i32) {
    %c0_i32 = arith.constant 0 : i32
    %c0_i32_0 = arith.constant 0 : i32
    %c0_i32_1 = arith.constant 0 : i32
    return %c0_i32, %c0_i32_0 : i32, i32
  }
  func.func @transform_23(%arg0: i32) -> (i32, i32) {
    %c0_i32 = arith.constant 0 : i32
    %c0_i32_0 = arith.constant 0 : i32
    %c0_i32_1 = arith.constant 0 : i32
    return %c0_i32, %c0_i32_0 : i32, i32
  }
}

module attributes {stable_mosaic.version = 11 : i64} {
  func.func @fused_improvformer_kernel(%arg0: i32, %arg1: memref<16x16xf32, #tpu.memory_space<vmem>>, %arg2: memref<16x256xf32, #tpu.memory_space<vmem>>, %arg3: memref<16x256xf32, #tpu.memory_space<vmem>>, %arg4: memref<1x256xf32, #tpu.memory_space<vmem>>, %arg5: memref<1x256x768xbf16, #tpu.memory_space<vmem>>, %arg6: memref<1x1x768xf32, #tpu.memory_space<vmem>>, %arg7: memref<1x256x256xbf16, #tpu.memory_space<vmem>>, %arg8: memref<1x1x256xf32, #tpu.memory_space<vmem>>, %arg9: memref<1x1x256xf32, #tpu.memory_space<vmem>>, %arg10: memref<1x1x256xf32, #tpu.memory_space<vmem>>, %arg11: memref<1x1x256xf32, #tpu.memory_space<vmem>>, %arg12: memref<1x1x256xf32, #tpu.memory_space<vmem>>, %arg13: memref<1x256x256xbf16, #tpu.memory_space<vmem>>, %arg14: memref<1x1x256xf32, #tpu.memory_space<vmem>>, %arg15: memref<1x256x256xbf16, #tpu.memory_space<vmem>>, %arg16: memref<1x1x256xf32, #tpu.memory_space<vmem>>, %arg17: memref<256x128xf32, #tpu.memory_space<vmem>>, %arg18: memref<1x128xf32, #tpu.memory_space<vmem>>, %arg19: memref<128x128xf32, #tpu.memory_space<vmem>>, %arg20: memref<1x128xf32, #tpu.memory_space<vmem>>, %arg21: memref<128x128xf32, #tpu.memory_space<vmem>>, %arg22: memref<1x128xf32, #tpu.memory_space<vmem>>, %arg23: memref<16x128xf32, #tpu.memory_space<vmem>>, %arg24: memref<2x128xf32, #tpu.memory_space<vmem>>, %arg25: memref<16x256xf32, #tpu.memory_space<vmem>>) attributes {dimension_semantics = [#tpu.dimension_semantics<arbitrary>], iteration_bounds = array<i64: 2>, scalar_prefetch = 0 : i64, scratch_operands = 1 : i64, tpu.core_type = #tpu.core_type<tc>, window_params = [{pipeline_mode = #tpu.pipeline_mode<synchronous>, transform_indices = @transform_0, window_bounds = array<i64: 16, 16>}, {pipeline_mode = #tpu.pipeline_mode<synchronous>, transform_indices = @transform_1, window_bounds = array<i64: 16, 256>}, {pipeline_mode = #tpu.pipeline_mode<synchronous>, transform_indices = @transform_2, window_bounds = array<i64: 16, 256>}, {pipeline_mode = #tpu.pipeline_mode<synchronous>, transform_indices = @transform_3, window_bounds = array<i64: 1, 256>}, {transform_indices = @transform_4, window_bounds = array<i64: 1, 256, 768>}, {transform_indices = @transform_5, window_bounds = array<i64: 1, 1, 768>}, {transform_indices = @transform_6, window_bounds = array<i64: 1, 256, 256>}, {transform_indices = @transform_7, window_bounds = array<i64: 1, 1, 256>}, {transform_indices = @transform_8, window_bounds = array<i64: 1, 1, 256>}, {transform_indices = @transform_9, window_bounds = array<i64: 1, 1, 256>}, {transform_indices = @transform_10, window_bounds = array<i64: 1, 1, 256>}, {transform_indices = @transform_11, window_bounds = array<i64: 1, 1, 256>}, {transform_indices = @transform_12, window_bounds = array<i64: 1, 256, 256>}, {transform_indices = @transform_13, window_bounds = array<i64: 1, 1, 256>}, {transform_indices = @transform_14, window_bounds = array<i64: 1, 256, 256>}, {transform_indices = @transform_15, window_bounds = array<i64: 1, 1, 256>}, {pipeline_mode = #tpu.pipeline_mode<synchronous>, transform_indices = @transform_16, window_bounds = array<i64: 256, 128>}, {pipeline_mode = #tpu.pipeline_mode<synchronous>, transform_indices = @transform_17, window_bounds = array<i64: 1, 128>}, {pipeline_mode = #tpu.pipeline_mode<synchronous>, transform_indices = @transform_18, window_bounds = array<i64: 128, 128>}, {pipeline_mode = #tpu.pipeline_mode<synchronous>, transform_indices = @transform_19, window_bounds = array<i64: 1, 128>}, {pipeline_mode = #tpu.pipeline_mode<synchronous>, transform_indices = @transform_20, window_bounds = array<i64: 128, 128>}, {pipeline_mode = #tpu.pipeline_mode<synchronous>, transform_indices = @transform_21, window_bounds = array<i64: 1, 128>}, {pipeline_mode = #tpu.pipeline_mode<synchronous>, transform_indices = @transform_22, window_bounds = array<i64: 16, 128>}, {pipeline_mode = #tpu.pipeline_mode<synchronous>, transform_indices = @transform_23, window_bounds = array<i64: 2, 128>}]} {
    %c0_i32 = arith.constant 0 : i32
    %0 = arith.cmpi eq, %arg0, %c0_i32 : i32
    %1 = arith.extui %0 : i1 to i32
    %c0_i32_0 = arith.constant 0 : i32
    %2 = arith.cmpi ne, %1, %c0_i32_0 : i32
    scf.if %2 {
      %c0_65 = arith.constant 0 : index
      %c0_66 = arith.constant 0 : index
      %133 = vector.load %arg1[%c0_65, %c0_66] : memref<16x16xf32, #tpu.memory_space<vmem>>, vector<16x16xf32>
      %c0_67 = arith.constant 0 : index
      %c0_68 = arith.constant 0 : index
      %134 = vector.load %arg3[%c0_67, %c0_68] : memref<16x256xf32, #tpu.memory_space<vmem>>, vector<16x256xf32>
      %cst_69 = arith.constant dense<0.000000e+00> : vector<16x256xf32>
      %135 = tpu.matmul %133, %134, %cst_69 {dimension_numbers = #tpu.dot_dimension_numbers<[1], [0], [0], [1], [0, 0, 1, 1], [], []>} : vector<16x16xf32>, vector<16x256xf32>, vector<16x256xf32> -> vector<16x256xf32>
      %c0_70 = arith.constant 0 : index
      %c0_71 = arith.constant 0 : index
      %136 = vector.load %arg4[%c0_70, %c0_71] : memref<1x256xf32, #tpu.memory_space<vmem>>, vector<1x256xf32>
      %137 = vector.broadcast %136 : vector<1x256xf32> to vector<16x256xf32>
      %138 = arith.addf %135, %137 : vector<16x256xf32>
      %c0_72 = arith.constant 0 : index
      %c0_73 = arith.constant 0 : index
      %139 = vector.load %arg2[%c0_72, %c0_73] : memref<16x256xf32, #tpu.memory_space<vmem>>, vector<16x256xf32>
      %140 = arith.addf %138, %139 : vector<16x256xf32>
      %c0_74 = arith.constant 0 : index
      %c0_75 = arith.constant 0 : index
      %141 = vector.load %arg25[%c0_74, %c0_75] : memref<16x256xf32, #tpu.memory_space<vmem>>, vector<16x256xf32>
      tpu.vector_store %arg25[%c0_74, %c0_75], %140 {strides = array<i32>} : memref<16x256xf32, #tpu.memory_space<vmem>>, vector<16x256xf32>,
    } else {
    }
    %c0 = arith.constant 0 : index
    %c0_1 = arith.constant 0 : index
    %3 = vector.load %arg25[%c0, %c0_1] : memref<16x256xf32, #tpu.memory_space<vmem>>, vector<16x256xf32>
    %4 = arith.truncf %3 : vector<16x256xf32> to vector<16x256xbf16>
    %c0_2 = arith.constant 0 : index
    %c0_3 = arith.constant 0 : index
    %c0_4 = arith.constant 0 : index
    %5 = vector.load %arg5[%c0_2, %c0_3, %c0_4] : memref<1x256x768xbf16, #tpu.memory_space<vmem>>, vector<1x256x768xbf16>
    %6 = vector.shape_cast %5 : vector<1x256x768xbf16> to vector<256x768xbf16>
    %cst = arith.constant dense<0.000000e+00> : vector<16x768xf32>
    %7 = tpu.matmul %4, %6, %cst {dimension_numbers = #tpu.dot_dimension_numbers<[1], [0], [0], [1], [0, 0, 1, 1], [], []>} : vector<16x256xbf16>, vector<256x768xbf16>, vector<16x768xf32> -> vector<16x768xf32>
    %c0_5 = arith.constant 0 : index
    %c0_6 = arith.constant 0 : index
    %c0_7 = arith.constant 0 : index
    %8 = vector.load %arg6[%c0_5, %c0_6, %c0_7] : memref<1x1x768xf32, #tpu.memory_space<vmem>>, vector<1x1x768xf32>
    %9 = vector.shape_cast %8 : vector<1x1x768xf32> to vector<1x768xf32>
    %10 = vector.broadcast %9 : vector<1x768xf32> to vector<16x768xf32>
    %11 = arith.addf %7, %10 : vector<16x768xf32>
    %12 = vector.extract_strided_slice %11 {offsets = [0, 0], sizes = [16, 128], strides = [1, 1]} : vector<16x768xf32> to vector<16x128xf32>
    %13 = vector.shape_cast %12 : vector<16x128xf32> to vector<2x8x128xf32>
    %14 = vector.extract_strided_slice %11 {offsets = [0, 256], sizes = [16, 128], strides = [1, 1]} : vector<16x768xf32> to vector<16x128xf32>
    %15 = vector.shape_cast %14 : vector<16x128xf32> to vector<2x8x128xf32>
    %16 = vector.extract_strided_slice %11 {offsets = [0, 512], sizes = [16, 128], strides = [1, 1]} : vector<16x768xf32> to vector<16x128xf32>
    %17 = vector.shape_cast %16 : vector<16x128xf32> to vector<2x8x128xf32>
    %cst_8 = arith.constant dense<0.000000e+00> : vector<2x8x8xf32>
    %18 = tpu.matmul %13, %15, %cst_8 {dimension_numbers = #tpu.dot_dimension_numbers<[2], [2], [1], [1], [0, 0, 0, 1, 1, 1], [0], [0]>} : vector<2x8x128xf32>, vector<2x8x128xf32>, vector<2x8x8xf32> -> vector<2x8x8xf32>
    %cst_9 = arith.constant 0.0883883461 : f32
    %19 = vector.broadcast %cst_9 : f32 to vector<2x8x8xf32>
    %20 = arith.mulf %18, %19 : vector<2x8x8xf32>
    %cst_10 = arith.constant dense<0xFF800000> : vector<2x8xf32>
    %21 = vector.multi_reduction <maximumf>, %20, %cst_10 [2] : vector<2x8x8xf32> to vector<2x8xf32>
    %22 = vector.shape_cast %21 : vector<2x8xf32> to vector<2x8x1xf32>
    %23 = vector.broadcast %22 : vector<2x8x1xf32> to vector<2x8x8xf32>
    %24 = arith.subf %20, %23 : vector<2x8x8xf32>
    %25 = math.exp %24 : vector<2x8x8xf32>
    %cst_11 = arith.constant dense<0.000000e+00> : vector<2x8xf32>
    %26 = vector.multi_reduction <add>, %25, %cst_11 [2] : vector<2x8x8xf32> to vector<2x8xf32>
    %27 = vector.shape_cast %26 : vector<2x8xf32> to vector<2x8x1xf32>
    %28 = vector.broadcast %27 : vector<2x8x1xf32> to vector<2x8x8xf32>
    %29 = arith.divf %25, %28 : vector<2x8x8xf32>
    %cst_12 = arith.constant dense<0.000000e+00> : vector<2x8x128xf32>
    %30 = tpu.matmul %29, %17, %cst_12 {dimension_numbers = #tpu.dot_dimension_numbers<[2], [1], [1], [2], [0, 0, 0, 1, 1, 2], [0], [0]>} : vector<2x8x8xf32>, vector<2x8x128xf32>, vector<2x8x128xf32> -> vector<2x8x128xf32>
    %31 = vector.shape_cast %30 : vector<2x8x128xf32> to vector<16x128xf32>
    %32 = vector.extract_strided_slice %11 {offsets = [0, 128], sizes = [16, 128], strides = [1, 1]} : vector<16x768xf32> to vector<16x128xf32>
    %33 = vector.shape_cast %32 : vector<16x128xf32> to vector<2x8x128xf32>
    %34 = vector.extract_strided_slice %11 {offsets = [0, 384], sizes = [16, 128], strides = [1, 1]} : vector<16x768xf32> to vector<16x128xf32>
    %35 = vector.shape_cast %34 : vector<16x128xf32> to vector<2x8x128xf32>
    %36 = vector.extract_strided_slice %11 {offsets = [0, 640], sizes = [16, 128], strides = [1, 1]} : vector<16x768xf32> to vector<16x128xf32>
    %37 = vector.shape_cast %36 : vector<16x128xf32> to vector<2x8x128xf32>
    %cst_13 = arith.constant dense<0.000000e+00> : vector<2x8x8xf32>
    %38 = tpu.matmul %33, %35, %cst_13 {dimension_numbers = #tpu.dot_dimension_numbers<[2], [2], [1], [1], [0, 0, 0, 1, 1, 1], [0], [0]>} : vector<2x8x128xf32>, vector<2x8x128xf32>, vector<2x8x8xf32> -> vector<2x8x8xf32>
    %cst_14 = arith.constant 0.0883883461 : f32
    %39 = vector.broadcast %cst_14 : f32 to vector<2x8x8xf32>
    %40 = arith.mulf %38, %39 : vector<2x8x8xf32>
    %cst_15 = arith.constant dense<0xFF800000> : vector<2x8xf32>
    %41 = vector.multi_reduction <maximumf>, %40, %cst_15 [2] : vector<2x8x8xf32> to vector<2x8xf32>
    %42 = vector.shape_cast %41 : vector<2x8xf32> to vector<2x8x1xf32>
    %43 = vector.broadcast %42 : vector<2x8x1xf32> to vector<2x8x8xf32>
    %44 = arith.subf %40, %43 : vector<2x8x8xf32>
    %45 = math.exp %44 : vector<2x8x8xf32>
    %cst_16 = arith.constant dense<0.000000e+00> : vector<2x8xf32>
    %46 = vector.multi_reduction <add>, %45, %cst_16 [2] : vector<2x8x8xf32> to vector<2x8xf32>
    %47 = vector.shape_cast %46 : vector<2x8xf32> to vector<2x8x1xf32>
    %48 = vector.broadcast %47 : vector<2x8x1xf32> to vector<2x8x8xf32>
    %49 = arith.divf %45, %48 : vector<2x8x8xf32>
    %cst_17 = arith.constant dense<0.000000e+00> : vector<2x8x128xf32>
    %50 = tpu.matmul %49, %37, %cst_17 {dimension_numbers = #tpu.dot_dimension_numbers<[2], [1], [1], [2], [0, 0, 0, 1, 1, 2], [0], [0]>} : vector<2x8x8xf32>, vector<2x8x128xf32>, vector<2x8x128xf32> -> vector<2x8x128xf32>
    %51 = vector.shape_cast %50 : vector<2x8x128xf32> to vector<16x128xf32>
    %52 = tpu.concatenate %31, %51 in 1 : vector<16x128xf32>, vector<16x128xf32> -> vector<16x256xf32>
    %53 = arith.truncf %52 : vector<16x256xf32> to vector<16x256xbf16>
    %c0_18 = arith.constant 0 : index
    %c0_19 = arith.constant 0 : index
    %c0_20 = arith.constant 0 : index
    %54 = vector.load %arg7[%c0_18, %c0_19, %c0_20] : memref<1x256x256xbf16, #tpu.memory_space<vmem>>, vector<1x256x256xbf16>
    %55 = vector.shape_cast %54 : vector<1x256x256xbf16> to vector<256x256xbf16>
    %cst_21 = arith.constant dense<0.000000e+00> : vector<16x256xf32>
    %56 = tpu.matmul %53, %55, %cst_21 {dimension_numbers = #tpu.dot_dimension_numbers<[1], [0], [0], [1], [0, 0, 1, 1], [], []>} : vector<16x256xbf16>, vector<256x256xbf16>, vector<16x256xf32> -> vector<16x256xf32>
    %c0_22 = arith.constant 0 : index
    %c0_23 = arith.constant 0 : index
    %c0_24 = arith.constant 0 : index
    %57 = vector.load %arg8[%c0_22, %c0_23, %c0_24] : memref<1x1x256xf32, #tpu.memory_space<vmem>>, vector<1x1x256xf32>
    %58 = vector.shape_cast %57 : vector<1x1x256xf32> to vector<1x256xf32>
    %59 = vector.broadcast %58 : vector<1x256xf32> to vector<16x256xf32>
    %60 = arith.addf %56, %59 : vector<16x256xf32>
    %61 = arith.addf %3, %60 : vector<16x256xf32>
    %c0_25 = arith.constant 0 : index
    %c0_26 = arith.constant 0 : index
    %c0_27 = arith.constant 0 : index
    %62 = vector.load %arg9[%c0_25, %c0_26, %c0_27] : memref<1x1x256xf32, #tpu.memory_space<vmem>>, vector<1x1x256xf32>
    %63 = vector.shape_cast %62 : vector<1x1x256xf32> to vector<1x256xf32>
    %c0_28 = arith.constant 0 : index
    %c0_29 = arith.constant 0 : index
    %c0_30 = arith.constant 0 : index
    %64 = vector.load %arg10[%c0_28, %c0_29, %c0_30] : memref<1x1x256xf32, #tpu.memory_space<vmem>>, vector<1x1x256xf32>
    %65 = vector.shape_cast %64 : vector<1x1x256xf32> to vector<1x256xf32>
    %cst_31 = arith.constant dense<0.000000e+00> : vector<16xf32>
    %66 = vector.multi_reduction <add>, %61, %cst_31 [1] : vector<16x256xf32> to vector<16xf32>
    %67 = vector.shape_cast %66 : vector<16xf32> to vector<16x1xf32>
    %cst_32 = arith.constant 2.560000e+02 : f32
    %68 = vector.broadcast %cst_32 : f32 to vector<16x1xf32>
    %69 = arith.divf %67, %68 : vector<16x1xf32>
    %70 = vector.broadcast %69 : vector<16x1xf32> to vector<16x256xf32>
    %71 = arith.subf %61, %70 : vector<16x256xf32>
    %72 = arith.mulf %71, %71 : vector<16x256xf32>
    %cst_33 = arith.constant dense<0.000000e+00> : vector<16xf32>
    %73 = vector.multi_reduction <add>, %72, %cst_33 [1] : vector<16x256xf32> to vector<16xf32>
    %74 = vector.shape_cast %73 : vector<16xf32> to vector<16x1xf32>
    %cst_34 = arith.constant 2.560000e+02 : f32
    %75 = vector.broadcast %cst_34 : f32 to vector<16x1xf32>
    %76 = arith.divf %74, %75 : vector<16x1xf32>
    %cst_35 = arith.constant 9.99999974E-6 : f32
    %77 = vector.broadcast %cst_35 : f32 to vector<16x1xf32>
    %78 = arith.addf %76, %77 : vector<16x1xf32>
    %79 = math.rsqrt %78 : vector<16x1xf32>
    %80 = vector.broadcast %79 : vector<16x1xf32> to vector<16x256xf32>
    %81 = arith.mulf %71, %80 : vector<16x256xf32>
    %82 = vector.broadcast %63 : vector<1x256xf32> to vector<16x256xf32>
    %83 = arith.mulf %81, %82 : vector<16x256xf32>
    %84 = vector.broadcast %65 : vector<1x256xf32> to vector<16x256xf32>
    %85 = arith.addf %83, %84 : vector<16x256xf32>
    %86 = arith.truncf %85 : vector<16x256xf32> to vector<16x256xbf16>
    %c0_36 = arith.constant 0 : index
    %c0_37 = arith.constant 0 : index
    %c0_38 = arith.constant 0 : index
    %87 = vector.load %arg13[%c0_36, %c0_37, %c0_38] : memref<1x256x256xbf16, #tpu.memory_space<vmem>>, vector<1x256x256xbf16>
    %88 = vector.shape_cast %87 : vector<1x256x256xbf16> to vector<256x256xbf16>
    %cst_39 = arith.constant dense<0.000000e+00> : vector<16x256xf32>
    %89 = tpu.matmul %86, %88, %cst_39 {dimension_numbers = #tpu.dot_dimension_numbers<[1], [0], [0], [1], [0, 0, 1, 1], [], []>} : vector<16x256xbf16>, vector<256x256xbf16>, vector<16x256xf32> -> vector<16x256xf32>
    %c0_40 = arith.constant 0 : index
    %c0_41 = arith.constant 0 : index
    %c0_42 = arith.constant 0 : index
    %90 = vector.load %arg14[%c0_40, %c0_41, %c0_42] : memref<1x1x256xf32, #tpu.memory_space<vmem>>, vector<1x1x256xf32>
    %91 = vector.shape_cast %90 : vector<1x1x256xf32> to vector<1x256xf32>
    %92 = vector.broadcast %91 : vector<1x256xf32> to vector<16x256xf32>
    %93 = arith.addf %89, %92 : vector<16x256xf32>
    %cst_43 = arith.constant 0.000000e+00 : f32
    %94 = vector.broadcast %cst_43 : f32 to vector<16x256xf32>
    %95 = arith.maximumf %93, %94 : vector<16x256xf32>
    %96 = arith.truncf %95 : vector<16x256xf32> to vector<16x256xbf16>
    %c0_44 = arith.constant 0 : index
    %c0_45 = arith.constant 0 : index
    %c0_46 = arith.constant 0 : index
    %97 = vector.load %arg15[%c0_44, %c0_45, %c0_46] : memref<1x256x256xbf16, #tpu.memory_space<vmem>>, vector<1x256x256xbf16>
    %98 = vector.shape_cast %97 : vector<1x256x256xbf16> to vector<256x256xbf16>
    %cst_47 = arith.constant dense<0.000000e+00> : vector<16x256xf32>
    %99 = tpu.matmul %96, %98, %cst_47 {dimension_numbers = #tpu.dot_dimension_numbers<[1], [0], [0], [1], [0, 0, 1, 1], [], []>} : vector<16x256xbf16>, vector<256x256xbf16>, vector<16x256xf32> -> vector<16x256xf32>
    %c0_48 = arith.constant 0 : index
    %c0_49 = arith.constant 0 : index
    %c0_50 = arith.constant 0 : index
    %100 = vector.load %arg16[%c0_48, %c0_49, %c0_50] : memref<1x1x256xf32, #tpu.memory_space<vmem>>, vector<1x1x256xf32>
    %101 = vector.shape_cast %100 : vector<1x1x256xf32> to vector<1x256xf32>
    %102 = vector.broadcast %101 : vector<1x256xf32> to vector<16x256xf32>
    %103 = arith.addf %99, %102 : vector<16x256xf32>
    %104 = arith.addf %85, %103 : vector<16x256xf32>
    %c0_51 = arith.constant 0 : index
    %c0_52 = arith.constant 0 : index
    %c0_53 = arith.constant 0 : index
    %105 = vector.load %arg11[%c0_51, %c0_52, %c0_53] : memref<1x1x256xf32, #tpu.memory_space<vmem>>, vector<1x1x256xf32>
    %106 = vector.shape_cast %105 : vector<1x1x256xf32> to vector<1x256xf32>
    %c0_54 = arith.constant 0 : index
    %c0_55 = arith.constant 0 : index
    %c0_56 = arith.constant 0 : index
    %107 = vector.load %arg12[%c0_54, %c0_55, %c0_56] : memref<1x1x256xf32, #tpu.memory_space<vmem>>, vector<1x1x256xf32>
    %108 = vector.shape_cast %107 : vector<1x1x256xf32> to vector<1x256xf32>
    %cst_57 = arith.constant dense<0.000000e+00> : vector<16xf32>
    %109 = vector.multi_reduction <add>, %104, %cst_57 [1] : vector<16x256xf32> to vector<16xf32>
    %110 = vector.shape_cast %109 : vector<16xf32> to vector<16x1xf32>
    %cst_58 = arith.constant 2.560000e+02 : f32
    %111 = vector.broadcast %cst_58 : f32 to vector<16x1xf32>
    %112 = arith.divf %110, %111 : vector<16x1xf32>
    %113 = vector.broadcast %112 : vector<16x1xf32> to vector<16x256xf32>
    %114 = arith.subf %104, %113 : vector<16x256xf32>
    %115 = arith.mulf %114, %114 : vector<16x256xf32>
    %cst_59 = arith.constant dense<0.000000e+00> : vector<16xf32>
    %116 = vector.multi_reduction <add>, %115, %cst_59 [1] : vector<16x256xf32> to vector<16xf32>
    %117 = vector.shape_cast %116 : vector<16xf32> to vector<16x1xf32>
    %cst_60 = arith.constant 2.560000e+02 : f32
    %118 = vector.broadcast %cst_60 : f32 to vector<16x1xf32>
    %119 = arith.divf %117, %118 : vector<16x1xf32>
    %cst_61 = arith.constant 9.99999974E-6 : f32
    %120 = vector.broadcast %cst_61 : f32 to vector<16x1xf32>
    %121 = arith.addf %119, %120 : vector<16x1xf32>
    %122 = math.rsqrt %121 : vector<16x1xf32>
    %123 = vector.broadcast %122 : vector<16x1xf32> to vector<16x256xf32>
    %124 = arith.mulf %114, %123 : vector<16x256xf32>
    %125 = vector.broadcast %106 : vector<1x256xf32> to vector<16x256xf32>
    %126 = arith.mulf %124, %125 : vector<16x256xf32>
    %127 = vector.broadcast %108 : vector<1x256xf32> to vector<16x256xf32>
    %128 = arith.addf %126, %127 : vector<16x256xf32>
    %c0_62 = arith.constant 0 : index
    %c0_63 = arith.constant 0 : index
    %129 = vector.load %arg25[%c0_62, %c0_63] : memref<16x256xf32, #tpu.memory_space<vmem>>, vector<16x256xf32>
    tpu.vector_store %arg25[%c0_62, %c0_63], %128 {strides = array<i32>} : memref<16x256xf32, #tpu.memory_space<vmem>>, vector<16x256xf32>,
    %c1_i32 = arith.constant 1 : i32
    %130 = arith.cmpi eq, %arg0, %c1_i32 : i32
    %131 = arith.extui %130 : i1 to i32
    %c0_i32_64 = arith.constant 0 : i32
    %132 = arith.cmpi ne, %131, %c0_i32_64 : i32
    scf.if %132 {
      %c0_65 = arith.constant 0 : index
      %c0_66 = arith.constant 0 : index
      %133 = vector.load %arg25[%c0_65, %c0_66] : memref<16x256xf32, #tpu.memory_space<vmem>>, vector<16x256xf32>
      %c0_67 = arith.constant 0 : index
      %c0_68 = arith.constant 0 : index
      %134 = vector.load %arg17[%c0_67, %c0_68] : memref<256x128xf32, #tpu.memory_space<vmem>>, vector<256x128xf32>
      %cst_69 = arith.constant dense<0.000000e+00> : vector<16x128xf32>
      %135 = tpu.matmul %133, %134, %cst_69 {dimension_numbers = #tpu.dot_dimension_numbers<[1], [0], [0], [1], [0, 0, 1, 1], [], []>} : vector<16x256xf32>, vector<256x128xf32>, vector<16x128xf32> -> vector<16x128xf32>
      %c0_70 = arith.constant 0 : index
      %c0_71 = arith.constant 0 : index
      %136 = vector.load %arg18[%c0_70, %c0_71] : memref<1x128xf32, #tpu.memory_space<vmem>>, vector<1x128xf32>
      %137 = vector.broadcast %136 : vector<1x128xf32> to vector<16x128xf32>
      %138 = arith.addf %135, %137 : vector<16x128xf32>
      %c0_72 = arith.constant 0 : index
      %c0_73 = arith.constant 0 : index
      %139 = vector.load %arg23[%c0_72, %c0_73] : memref<16x128xf32, #tpu.memory_space<vmem>>, vector<16x128xf32>
      tpu.vector_store %arg23[%c0_72, %c0_73], %138 {strides = array<i32>} : memref<16x128xf32, #tpu.memory_space<vmem>>, vector<16x128xf32>,
      %140 = vector.shape_cast %138 : vector<16x128xf32> to vector<2x8x128xf32>
      %141 = vector.extract_strided_slice %140 {offsets = [0, 7, 0], sizes = [2, 1, 128], strides = [1, 1, 1]} : vector<2x8x128xf32> to vector<2x1x128xf32>
      %142 = vector.shape_cast %141 : vector<2x1x128xf32> to vector<2x128xf32>
      %c0_74 = arith.constant 0 : index
      %c0_75 = arith.constant 0 : index
      %143 = vector.load %arg19[%c0_74, %c0_75] : memref<128x128xf32, #tpu.memory_space<vmem>>, vector<128x128xf32>
      %cst_76 = arith.constant dense<0.000000e+00> : vector<2x128xf32>
      %144 = tpu.matmul %142, %143, %cst_76 {dimension_numbers = #tpu.dot_dimension_numbers<[1], [0], [0], [1], [0, 0, 1, 1], [], []>} : vector<2x128xf32>, vector<128x128xf32>, vector<2x128xf32> -> vector<2x128xf32>
      %c0_77 = arith.constant 0 : index
      %c0_78 = arith.constant 0 : index
      %145 = vector.load %arg20[%c0_77, %c0_78] : memref<1x128xf32, #tpu.memory_space<vmem>>, vector<1x128xf32>
      %146 = vector.broadcast %145 : vector<1x128xf32> to vector<2x128xf32>
      %147 = arith.addf %144, %146 : vector<2x128xf32>
      %cst_79 = arith.constant 0.000000e+00 : f32
      %148 = vector.broadcast %cst_79 : f32 to vector<2x128xf32>
      %149 = arith.maximumf %147, %148 : vector<2x128xf32>
      %c0_80 = arith.constant 0 : index
      %c0_81 = arith.constant 0 : index
      %150 = vector.load %arg21[%c0_80, %c0_81] : memref<128x128xf32, #tpu.memory_space<vmem>>, vector<128x128xf32>
      %cst_82 = arith.constant dense<0.000000e+00> : vector<2x128xf32>
      %151 = tpu.matmul %149, %150, %cst_82 {dimension_numbers = #tpu.dot_dimension_numbers<[1], [0], [0], [1], [0, 0, 1, 1], [], []>} : vector<2x128xf32>, vector<128x128xf32>, vector<2x128xf32> -> vector<2x128xf32>
      %c0_83 = arith.constant 0 : index
      %c0_84 = arith.constant 0 : index
      %152 = vector.load %arg22[%c0_83, %c0_84] : memref<1x128xf32, #tpu.memory_space<vmem>>, vector<1x128xf32>
      %153 = vector.broadcast %152 : vector<1x128xf32> to vector<2x128xf32>
      %154 = arith.addf %151, %153 : vector<2x128xf32>
      %c0_85 = arith.constant 0 : index
      %c0_86 = arith.constant 0 : index
      %155 = vector.load %arg24[%c0_85, %c0_86] : memref<2x128xf32, #tpu.memory_space<vmem>>, vector<2x128xf32>
      tpu.vector_store %arg24[%c0_85, %c0_86], %154 {strides = array<i32>} : memref<2x128xf32, #tpu.memory_space<vmem>>, vector<2x128xf32>,
    } else {
    }
    return
  }
  func.func @transform_0(%arg0: i32) -> (i32, i32) {
    %c0_i32 = arith.constant 0 : i32
    %c0_i32_0 = arith.constant 0 : i32
    %c0_i32_1 = arith.constant 0 : i32
    return %c0_i32, %c0_i32_0 : i32, i32
  }
  func.func @transform_1(%arg0: i32) -> (i32, i32) {
    %c0_i32 = arith.constant 0 : i32
    %c0_i32_0 = arith.constant 0 : i32
    %c0_i32_1 = arith.constant 0 : i32
    return %c0_i32, %c0_i32_0 : i32, i32
  }
  func.func @transform_2(%arg0: i32) -> (i32, i32) {
    %c0_i32 = arith.constant 0 : i32
    %c0_i32_0 = arith.constant 0 : i32
    %c0_i32_1 = arith.constant 0 : i32
    return %c0_i32, %c0_i32_0 : i32, i32
  }
  func.func @transform_3(%arg0: i32) -> (i32, i32) {
    %c0_i32 = arith.constant 0 : i32
    %c0_i32_0 = arith.constant 0 : i32
    %c0_i32_1 = arith.constant 0 : i32
    return %c0_i32, %c0_i32_0 : i32, i32
  }
  func.func @transform_4(%arg0: i32) -> (i32, i32, i32) {
    %c0_i32 = arith.constant 0 : i32
    %c0_i32_0 = arith.constant 0 : i32
    %c0_i32_1 = arith.constant 0 : i32
    return %arg0, %c0_i32, %c0_i32_0 : i32, i32, i32
  }
  func.func @transform_5(%arg0: i32) -> (i32, i32, i32) {
    %c0_i32 = arith.constant 0 : i32
    %c0_i32_0 = arith.constant 0 : i32
    %c0_i32_1 = arith.constant 0 : i32
    return %arg0, %c0_i32, %c0_i32_0 : i32, i32, i32
  }
  func.func @transform_6(%arg0: i32) -> (i32, i32, i32) {
    %c0_i32 = arith.constant 0 : i32
    %c0_i32_0 = arith.constant 0 : i32
    %c0_i32_1 = arith.constant 0 : i32
    return %arg0, %c0_i32, %c0_i32_0 : i32, i32, i32
  }
  func.func @transform_7(%arg0: i32) -> (i32, i32, i32) {
    %c0_i32 = arith.constant 0 : i32
    %c0_i32_0 = arith.constant 0 : i32
    %c0_i32_1 = arith.constant 0 : i32
    return %arg0, %c0_i32, %c0_i32_0 : i32, i32, i32
  }
  func.func @transform_8(%arg0: i32) -> (i32, i32, i32) {
    %c0_i32 = arith.constant 0 : i32
    %c0_i32_0 = arith.constant 0 : i32
    %c0_i32_1 = arith.constant 0 : i32
    return %arg0, %c0_i32, %c0_i32_0 : i32, i32, i32
  }
  func.func @transform_9(%arg0: i32) -> (i32, i32, i32) {
    %c0_i32 = arith.constant 0 : i32
    %c0_i32_0 = arith.constant 0 : i32
    %c0_i32_1 = arith.constant 0 : i32
    return %arg0, %c0_i32, %c0_i32_0 : i32, i32, i32
  }
  func.func @transform_10(%arg0: i32) -> (i32, i32, i32) {
    %c0_i32 = arith.constant 0 : i32
    %c0_i32_0 = arith.constant 0 : i32
    %c0_i32_1 = arith.constant 0 : i32
    return %arg0, %c0_i32, %c0_i32_0 : i32, i32, i32
  }
  func.func @transform_11(%arg0: i32) -> (i32, i32, i32) {
    %c0_i32 = arith.constant 0 : i32
    %c0_i32_0 = arith.constant 0 : i32
    %c0_i32_1 = arith.constant 0 : i32
    return %arg0, %c0_i32, %c0_i32_0 : i32, i32, i32
  }
  func.func @transform_12(%arg0: i32) -> (i32, i32, i32) {
    %c0_i32 = arith.constant 0 : i32
    %c0_i32_0 = arith.constant 0 : i32
    %c0_i32_1 = arith.constant 0 : i32
    return %arg0, %c0_i32, %c0_i32_0 : i32, i32, i32
  }
  func.func @transform_13(%arg0: i32) -> (i32, i32, i32) {
    %c0_i32 = arith.constant 0 : i32
    %c0_i32_0 = arith.constant 0 : i32
    %c0_i32_1 = arith.constant 0 : i32
    return %arg0, %c0_i32, %c0_i32_0 : i32, i32, i32
  }
  func.func @transform_14(%arg0: i32) -> (i32, i32, i32) {
    %c0_i32 = arith.constant 0 : i32
    %c0_i32_0 = arith.constant 0 : i32
    %c0_i32_1 = arith.constant 0 : i32
    return %arg0, %c0_i32, %c0_i32_0 : i32, i32, i32
  }
  func.func @transform_15(%arg0: i32) -> (i32, i32, i32) {
    %c0_i32 = arith.constant 0 : i32
    %c0_i32_0 = arith.constant 0 : i32
    %c0_i32_1 = arith.constant 0 : i32
    return %arg0, %c0_i32, %c0_i32_0 : i32, i32, i32
  }
  func.func @transform_16(%arg0: i32) -> (i32, i32) {
    %c0_i32 = arith.constant 0 : i32
    %c0_i32_0 = arith.constant 0 : i32
    %c0_i32_1 = arith.constant 0 : i32
    return %c0_i32, %c0_i32_0 : i32, i32
  }
  func.func @transform_17(%arg0: i32) -> (i32, i32) {
    %c0_i32 = arith.constant 0 : i32
    %c0_i32_0 = arith.constant 0 : i32
    %c0_i32_1 = arith.constant 0 : i32
    return %c0_i32, %c0_i32_0 : i32, i32
  }
  func.func @transform_18(%arg0: i32) -> (i32, i32) {
    %c0_i32 = arith.constant 0 : i32
    %c0_i32_0 = arith.constant 0 : i32
    %c0_i32_1 = arith.constant 0 : i32
    return %c0_i32, %c0_i32_0 : i32, i32
  }
  func.func @transform_19(%arg0: i32) -> (i32, i32) {
    %c0_i32 = arith.constant 0 : i32
    %c0_i32_0 = arith.constant 0 : i32
    %c0_i32_1 = arith.constant 0 : i32
    return %c0_i32, %c0_i32_0 : i32, i32
  }
  func.func @transform_20(%arg0: i32) -> (i32, i32) {
    %c0_i32 = arith.constant 0 : i32
    %c0_i32_0 = arith.constant 0 : i32
    %c0_i32_1 = arith.constant 0 : i32
    return %c0_i32, %c0_i32_0 : i32, i32
  }
  func.func @transform_21(%arg0: i32) -> (i32, i32) {
    %c0_i32 = arith.constant 0 : i32
    %c0_i32_0 = arith.constant 0 : i32
    %c0_i32_1 = arith.constant 0 : i32
    return %c0_i32, %c0_i32_0 : i32, i32
  }
  func.func @transform_22(%arg0: i32) -> (i32, i32) {
    %c0_i32 = arith.constant 0 : i32
    %c0_i32_0 = arith.constant 0 : i32
    %c0_i32_1 = arith.constant 0 : i32
    return %c0_i32, %c0_i32_0 : i32, i32
  }
  func.func @transform_23(%arg0: i32) -> (i32, i32) {
    %c0_i32 = arith.constant 0 : i32
    %c0_i32_0 = arith.constant 0 : i32
    %c0_i32_1 = arith.constant 0 : i32
    return %c0_i32, %c0_i32_0 : i32, i32
  }
}

</mosaic_0001>

<bundles_post_ra>
// kernel: tpu_custom_call.1
= control target key start
LH: loop header
LB: loop body
LE: loop exit
PB: predicated region body
PF: predicated region fallthrough
CT: control target
= control target key end

     0   :  { %s6501_s0 = inlined_call_operand.hbm [shape: f32[16,16], index: 0, kind: input, shape index: {}]   ;;  %s6502_s1 = inlined_call_operand.hbm [shape: f32[16,256], index: 1, kind: input, shape index: {}]   ;;  %s6503_s2 = inlined_call_operand.hbm [shape: f32[16,256], index: 2, kind: input, shape index: {}]   ;;  %s6504_s3 = inlined_call_operand.hbm [shape: f32[1,256], index: 3, kind: input, shape index: {}]   ;;  %s6505_s4 = inlined_call_operand.hbm [shape: bf16[2,256,768], index: 4, kind: input, shape index: {}]   ;;  %s6506_s5 = inlined_call_operand.vmem [shape: f32[2,1,768], index: 5, kind: input, shape index: {}]   ;;  %s6507_s6 = inlined_call_operand.hbm [shape: bf16[2,256,256], index: 6, kind: input, shape index: {}]   ;;  %s6508_s7 = inlined_call_operand.vmem [shape: f32[2,1,256], index: 7, kind: input, shape index: {}]   ;;  %s6509_s8 = inlined_call_operand.vmem [shape: f32[2,1,256], index: 8, kind: input, shape index: {}]   ;;  %s6510_s9 = inlined_call_operand.vmem [shape: f32[2,1,256], index: 9, kind: input, shape index: {}]   ;;  %s6511_s10 = inlined_call_operand.vmem [shape: f32[2,1,256], index: 10, kind: input, shape index: {}]   ;;  %s6512_s11 = inlined_call_operand.vmem [shape: f32[2,1,256], index: 11, kind: input, shape index: {}]   ;;  %s6513_s12 = inlined_call_operand.hbm [shape: bf16[2,256,256], index: 12, kind: input, shape index: {}]   ;;  %s6514_s13 = inlined_call_operand.vmem [shape: f32[2,1,256], index: 13, kind: input, shape index: {}]   ;;  %s6515_s14 = inlined_call_operand.hbm [shape: bf16[2,256,256], index: 14, kind: input, shape index: {}]   ;;  %s6516_s15 = inlined_call_operand.vmem [shape: f32[2,1,256], index: 15, kind: input, shape index: {}]   ;;  %s6517_s16 = inlined_call_operand.hbm [shape: f32[256,128], index: 16, kind: input, shape index: {}]   ;;  %s6518_s17 = inlined_call_operand.vmem [shape: f32[1,128], index: 17, kind: input, shape index: {}]   ;;  %s6519_s18 = inlined_call_operand.hbm [shape: f32[128,128], index: 18, kind: input, shape index: {}]   ;;  %s6520_s19 = inlined_call_operand.vmem [shape: f32[1,128], index: 19, kind: input, shape index: {}]   ;;  %s6521_s20 = inlined_call_operand.hbm [shape: f32[128,128], index: 20, kind: input, shape index: {}]   ;;  %s6522_s21 = inlined_call_operand.vmem [shape: f32[1,128], index: 21, kind: input, shape index: {}]   ;;  %s6523_s22 = inlined_call_operand.hbm [shape: f32[16,128], index: 22, kind: output, shape index: {0}]   ;;  %s6524_s23 = inlined_call_operand.hbm [shape: f32[2,128], index: 23, kind: output, shape index: {1}]  }
   0x1   :  { %6564 = sst [smem:[#allocation36_spill]] %s6501_s0 }
   0x2   :  { %6565 = sst [smem:[#allocation37_spill]] %s6502_s1 }
   0x3   :  { %6566 = sst [smem:[#allocation38_spill]] %s6503_s2 }
   0x4   :  { %6567 = sst [smem:[#allocation39_spill]] %s6504_s3 }
   0x5   :  { %6568 = sst [smem:[#allocation40_spill]] %s6505_s4 }
   0x6   :  { %6569 = sst [smem:[#allocation41_spill]] %s6506_s5 }
   0x7   :  { %6570 = sst [smem:[#allocation42_spill]] %s6507_s6 }
   0x8   :  { %6571 = sst [smem:[#allocation43_spill]] %s6508_s7 }
   0x9   :  { %6572 = sst [smem:[#allocation44_spill]] %s6509_s8 }
   0xa   :  { %6573 = sst [smem:[#allocation45_spill]] %s6510_s9 }
   0xb   :  { %6574 = sst [smem:[#allocation46_spill]] %s6511_s10 }
   0xc   :  { %6575 = sst [smem:[#allocation47_spill]] %s6512_s11 }
   0xd   :  { %6576 = sst [smem:[#allocation48_spill]] %s6513_s12 }
   0xe   :  { %6577 = sst [smem:[#allocation49_spill]] %s6514_s13 }
   0xf   :  { %6578 = sst [smem:[#allocation50_spill]] %s6515_s14 }
  0x10   :  { %6579 = sst [smem:[#allocation51_spill]] %s6516_s15 }
  0x11   :  { %6580 = sst [smem:[#allocation52_spill]] %s6517_s16 }
  0x12   :  { %6581 = sst [smem:[#allocation53_spill]] %s6518_s17 }
  0x13   :  { %6582 = sst [smem:[#allocation54_spill]] %s6520_s19 }
  0x14   :  { %6583 = sst [smem:[#allocation55_spill]] %s6522_s21 }
  0x15   :  { %6584 = sst [smem:[#allocation56_spill]] %s6523_s22 }
  0x16   :  { %6585 = sst [smem:[#allocation57_spill]] %s6524_s23 }
  0x17   :  { %29 = vsyncpa [#allocation4], 0 }
  0x18   :  { %30 = vsyncpa [#allocation7], 0 }
  0x19   :  { %31 = vsyncpa [#allocation10], 0 }
  0x1a   :  { %32 = vsyncpa [#allocation18], 0 }
  0x1b   :  { %33 = vsyncpa [#allocation5], 0 }
  0x1c   :  { %34 = vsyncpa [#allocation21], 0  ;;  %s5642_s4 = smov 0   ;;  %s5644_s30 = smov 0  }
  0x1d   :  { %s5646_s24 = smov 0   ;;  %s5648_s25 = smov 0  }
  0x1e LB: > { %6586 = sst [smem:[#allocation31_spill]] %s5485_s30  ;;  %s5495_s5 = smov [#allocation3]   ;;  %s5493_s25 = sphi %s5648_s25, %s6662_s25   ;;  %s5489_s24 = sphi %s5646_s24, %s6665_s24   ;;  %s5485_s30 = sphi %s5644_s30, %s6664_s30   ;;  %s5481_s4 = sphi %s5642_s4, %s6663_s4  }
  0x1f   : > { %6587 = sst [smem:[#allocation32_spill]] %s5489_s24  ;;  %s621_s1 = sshll.u32 %s5495_s5, 4  ;;  %s622_s1 = int_to_ptr.vmem [resolvable:$true] %s621_s1 }
  0x20   : > { %s5663_s26 = sadd.s32 4294967295, %s5493_s25   ;;  %p4057_p0 = scmp.ge.s32.totalorder %s5493_s25, 1 }
  0x21   : > { %p6533_p1 = scmp.eq.s32.totalorder %s5663_s26, 0  ;;  %p609_p2 = scmp.lt.s32.totalorder %s5493_s25, 3 }
  0x22   : > { %s5682_s27 = sadd.s32 1, %s5493_s25   ;;  %s6591_s29 = sld [smem:[#allocation36_spill]] }
  0x23   : > { %p5669_p4 = pnand %p4057_p0, %p609_p2  ;;  %6590 = sst [smem:[#allocation33_spill]] %s5682_s27 }
  0x25   : > { %s6588_s2 = scalar_select %p5669_p4, 1, 0 }
  0x26   : > { %p4638_p5 = pneg %p5669_p4 }
  0x28   : > { %p5677_p6 = pnand %p4638_p5, %p6533_p1  ;;  %s5059_s3 = scalar_lea.hbm %s6591_s29, 256 }
  0x29   : > { %p5060_p7 = scmp.ne.s32.totalorder %s6591_s29, %s5059_s3  ;;  %p5066_p11 = scmp.lt.u32.totalorder %s5059_s3, %s6591_s29 }
  0x2a   : > { %s6589_s6 = scalar_select %p5677_p6, 1, 0 }
  0x2b   : > { %p5692_p8 = pneg %p5677_p6 }
  0x2d   : > { %s6592_s23 = scalar_select %p5692_p8, 1, 0 }
  0x2e   : > { %p5062_p9 = pnand %p5692_p8, %p5060_p7 }
  0x30   : > { %p5063_p10 = pneg %p5062_p9 }
  0x32   : > { %p5068_p12 = pnand %p5066_p11, %p5063_p10 }
  0x34   : > { %5071 = shalt.err (!%p5068_p12)
}
  0x35   : > { %s5072_s7 = scalar_lea.vmem %s622_s1, 256  ;;  %p5080_p5 = scmp.lt.s32.totalorder %s622_s1, %s622_s1 }
  0x36   : > { %p5073_p13 = scmp.ne.s32.totalorder %s622_s1, %s5072_s7  ;;  %p5081_p3 = scmp.lt.s32.totalorder %s5072_s7, %s5072_s7 }
  0x38   : > { %p5075_p0 = pnand %p5073_p13, %p5692_p8  ;;  %p5082_p1 = por %p5081_p3, %p5080_p5 }
  0x3a   : > { %p5076_p2 = pneg %p5075_p0 }
  0x3c   : > { %p5083_p4 = pnand %p5082_p1, %p5076_p2 }
  0x3e   : > { %5086 = shalt.err (!%p5083_p4)
}
  0x3f   : > { %s6535_s28 = smov 128   ;;  %s6537_s21 = smov 8  }
  0x40   : > { %4641 = dma.hbm_to_vmem [thread:$0]  (!%p5677_p6), %s6591_s29, 256, %s622_s1, [#allocation4], %s6535_s28, %s6535_s28, %s6537_s21  }
  0x41   : > { %s128_s0 = ssub.s32 %s5493_s25, %s5682_s27  ;;  %s131_s5 = sadd.s32 1, %s5489_s24 }
  0x42   : > { %p129_p1 = scmp.eq.s32.totalorder %s128_s0, 0  ;;  %p138_p3 = scmp.ne.s32.totalorder %s5489_s24, %s5485_s30 }
  0x43   : > { %p139_p4 = scmp.eq.s32.totalorder %s5493_s25, 0  ;;  %p144_p7 = scmp.ne.s32.totalorder %s5485_s30, %s5481_s4 }
  0x44   : > { %s5720_s7 = scalar_select %p129_p1, %s5489_s24, %s131_s5  }
  0x45   : > { %p140_p9 = por %p139_p4, %p138_p3  ;;  %p6594_p10 = scmp.eq.s32.totalorder %s5663_s26, 0 }
  0x46   : > { %6593 = sst [smem:[#allocation34_spill]] %s5720_s7  ;;  %p4680_p12 = scmp.lt.s32.totalorder %s5493_s25, 2 }
  0x47   : > { %p5724_p11 = por %p6594_p10, %p144_p7  ;;  %s720_s17 = sand.u32 1, %s5493_s25  }
  0x48   : > { %s6540_s15 = sand.u32 1, %s5489_s24   ;;  %p5733_p13 = pnand %p4680_p12, %p140_p9 }
  0x49   : > { %s6595_s19 = scalar_select %p5724_p11, 1, 0 }
  0x4a   : > { %s4590_s22 = smul.u32 768, %s6540_s15  ;;  %s6598_s5 = sld [smem:[#allocation40_spill]] }
  0x4b   : > { %6596 = sst [smem:[#allocation35_spill]] %s6595_s19  ;;  %s4591_s3 = smul.u32 12288, %s5493_s25 }
  0x4c   : > { %s6597_s1 = scalar_select %p5733_p13, 1, 0 }
  0x4d   : > { %s724_s21 = scalar_lea.vmem [#allocation11], %s4590_s22  ;;  %s5745_s15 = scalar_lea.sflag [#allocation4], %s720_s17 }
  0x4e   : > { %s731_s29 = sshll.u32 %s724_s21, 4  ;;  %p5751_p2 = pneg %p5733_p13  ;;  %s5743_s29 = int_to_ptr.vmem [resolvable:$true] %s731_s29 }
  0x50   : > { %s5741_s28 = scalar_lea.hbm %s6598_s5, %s4591_s3  ;;  %s5092_s22 = scalar_lea.hbm %s6598_s5, 24576 }
  0x51   : > { %s5087_s7 = scalar_lea.hbm %s5741_s28, 12288  ;;  %p5093_p3 = scmp.lt.u32.totalorder %s5741_s28, %s6598_s5 }
  0x52   : > { %p5088_p0 = scmp.ne.s32.totalorder %s5741_s28, %s5087_s7  ;;  %p5094_p4 = scmp.lt.u32.totalorder %s5092_s22, %s5087_s7 }
  0x53   : > { %s6599_s27 = scalar_select %p5751_p2, 1, 0 }
  0x54   : > { %p5090_p5 = pnand %p5751_p2, %p5088_p0  ;;  %p5095_p7 = por %p5094_p4, %p5093_p3 }
  0x55   : > { %p5096_p9 = scmp.lt.u32.totalorder %s5087_s7, %s5741_s28 }
  0x56   : > { %p5091_p1 = pneg %p5090_p5 }
  0x57   : > { %p5097_p10 = por %p5096_p9, %p5095_p7 }
  0x59   : > { %p5098_p12 = pnand %p5097_p10, %p5091_p1 }
  0x5b   : > { %5101 = shalt.err (!%p5098_p12)
}
  0x5c   : > { %s5102_s17 = scalar_lea.vmem %s5743_s29, 12288  ;;  %s5498_s3 = smov [#allocation11]  }
  0x5d   : > { %p5103_p0 = scmp.ne.s32.totalorder %s5743_s29, %s5102_s17  ;;  %s5107_s4 = sshll.u32 %s5498_s3, 4  ;;  %s5108_s4 = int_to_ptr.vmem [resolvable:$false] %s5107_s4 }
  0x5e   : > { %s5109_s21 = scalar_lea.vmem %s5108_s4, 24576  ;;  %p5110_p6 = scmp.lt.s32.totalorder %s5743_s29, %s5108_s4 }
  0x5f   : > { %p5105_p5 = pnand %p5103_p0, %p5751_p2  ;;  %p5111_p8 = scmp.lt.s32.totalorder %s5109_s21, %s5102_s17 }
  0x61   : > { %p5106_p11 = pneg %p5105_p5  ;;  %p5112_p3 = por %p5111_p8, %p5110_p6 }
  0x63   : > { %p5113_p4 = pnand %p5112_p3, %p5106_p11 }
  0x65   : > { %5116 = shalt.err (!%p5113_p4)
}
  0x66   : > { %s5499_s7 = smov 384   ;;  %s5500_s22 = smov 24  }
  0x67   : > { %4663 = dma.hbm_to_vmem [thread:$0]  (!%p5733_p13), %s5741_s28, 12288, %s5743_s29, %s5745_s15, %s5499_s7, %s5499_s7, %s5500_s22  }
  0x68   : > { %s5501_s0 = smov [#allocation6]   ;;  %s6600_s3 = sand.u32 1, %s5489_s24  }
  0x69   : > { %s634_s5 = sshll.u32 %s5501_s0, 4  ;;  %s5777_s13 = sshll.u32 %s6600_s3, 8  ;;  %s635_s5 = int_to_ptr.vmem [resolvable:$true] %s634_s5 }
  0x6a   : > { %s6601_s21 = sld [smem:[#allocation37_spill]]  ;;  %p6602_p8 = scmp.ne.s32.totalorder %s6592_s23, 0 }
  0x70   : > { %s5117_s11 = scalar_lea.hbm %s6601_s21, 512 }
  0x71   : > { %p5118_p6 = scmp.ne.s32.totalorder %s6601_s21, %s5117_s11  ;;  %p5124_p7 = scmp.lt.u32.totalorder %s5117_s11, %s6601_s21 }
  0x73   : > { %p5120_p11 = pnand %p5118_p6, %p6602_p8 }
  0x75   : > { %p5121_p1 = pneg %p5120_p11 }
  0x77   : > { %p5126_p9 = pnand %p5124_p7, %p5121_p1 }
  0x79   : > { %5129 = shalt.err (!%p5126_p9)
}
  0x7a   : > { %s5130_s29 = scalar_lea.vmem %s635_s5, 512  ;;  %p5138_p5 = scmp.lt.s32.totalorder %s635_s5, %s635_s5 }
  0x7b   : > { %p5131_p10 = scmp.ne.s32.totalorder %s635_s5, %s5130_s29  ;;  %p5139_p3 = scmp.lt.s32.totalorder %s5130_s29, %s5130_s29 }
  0x7d   : > { %p5133_p12 = pnand %p5131_p10, %p6602_p8  ;;  %p5140_p4 = por %p5139_p3, %p5138_p5 }
  0x7f   : > { %p5134_p0 = pneg %p5133_p12 }
  0x81   : > { %p5141_p13 = pnand %p5140_p4, %p5134_p0 }
  0x83   : > { %5144 = shalt.err (!%p5141_p13)
}
  0x84   : > { %s6553_s9 = smov 256   ;;  %s6554_s8 = smov 16  }
  0x85   : > { %p6603_p6 = scmp.ne.s32.totalorder %s6589_s6, 0  ;;  %s5801_s19 = sshll.u32 %s5493_s25, 12 }
  0x86   : > { %s6604_s22 = sld [smem:[#allocation42_spill]]  ;;  %s752_s3 = scalar_lea.vmem [#allocation12], %s5777_s13 }
  0x87   : > { %4644 = dma.hbm_to_vmem [thread:$0]  (!%p6603_p6), %s6601_s21, 512, %s635_s5, [#allocation7], %s6553_s9, %s6553_s9, %s6554_s8  }
  0x88   : > { %s759_s17 = sshll.u32 %s752_s3, 4  ;;  %s5810_s17 = int_to_ptr.vmem [resolvable:$true] %s759_s17 }
  0x8c   : > { %s5807_s0 = scalar_lea.hbm %s6604_s22, %s5801_s19  ;;  %s5150_s29 = scalar_lea.hbm %s6604_s22, 8192 }
  0x8d   : > { %s5145_s4 = scalar_lea.hbm %s5807_s0, 4096  ;;  %p5151_p7 = scmp.lt.u32.totalorder %s5807_s0, %s6604_s22 }
  0x8e   : > { %p5146_p13 = scmp.ne.s32.totalorder %s5807_s0, %s5145_s4  ;;  %p5152_p9 = scmp.lt.u32.totalorder %s5150_s29, %s5145_s4 }
  0x8f   : > { %p5154_p12 = scmp.lt.u32.totalorder %s5145_s4, %s5807_s0 }
  0x90   : > { %p5148_p11 = pnand %p5146_p13, %p5751_p2  ;;  %p5153_p10 = por %p5152_p9, %p5151_p7 }
  0x92   : > { %p5149_p1 = pneg %p5148_p11  ;;  %p5155_p0 = por %p5154_p12, %p5153_p10 }
  0x94   : > { %p5156_p5 = pnand %p5155_p0, %p5149_p1 }
  0x96   : > { %5159 = shalt.err (!%p5156_p5)
}
  0x97   : > { %s5160_s28 = scalar_lea.vmem %s5810_s17, 4096  ;;  %s5504_s7 = smov [#allocation12]  }
  0x98   : > { %p5161_p3 = scmp.ne.s32.totalorder %s5810_s17, %s5160_s28  ;;  %s5165_s3 = sshll.u32 %s5504_s7, 4  ;;  %s5166_s3 = int_to_ptr.vmem [resolvable:$false] %s5165_s3 }
  0x99   : > { %s5167_s25 = scalar_lea.vmem %s5166_s3, 8192  ;;  %p5168_p11 = scmp.lt.s32.totalorder %s5810_s17, %s5166_s3 }
  0x9a   : > { %p5163_p4 = pnand %p5161_p3, %p5751_p2  ;;  %p5169_p6 = scmp.lt.s32.totalorder %s5167_s25, %s5160_s28 }
  0x9c   : > { %p5164_p13 = pneg %p5163_p4  ;;  %p5170_p7 = por %p5169_p6, %p5168_p11 }
  0x9e   : > { %p5171_p9 = pnand %p5170_p7, %p5164_p13 }
  0xa0   : > { %5174 = shalt.err (!%p5171_p9)
}
  0xa1   : > { %p6605_p1 = scmp.ne.s32.totalorder %s6597_s1, 0  ;;  %s6606_s4 = smov 8  }
  0xa2   : > { %s6607_s5 = smov 128   ;;  %s5505_s29 = smov [#allocation8]  }
  0xa3   : > { %4666 = dma.hbm_to_vmem [thread:$0]  (!%p6605_p1), %s5807_s0, 4096, %s5810_s17, %s5745_s15, %s6607_s5, %s6607_s5, %s6606_s4  }
  0xa4   : > { %s647_s10 = sshll.u32 %s5505_s29, 4  ;;  %s5506_s11 = smov [#allocation9]   ;;  %s648_s10 = int_to_ptr.vmem [resolvable:$true] %s647_s10 }
  0xa5   : > { %s661_s7 = sshll.u32 %s5506_s11, 4  ;;  %s6608_s25 = sld [smem:[#allocation38_spill]]  ;;  %s662_s7 = int_to_ptr.vmem [resolvable:$true] %s661_s7 }
  0xab   : > { %s6609_s9 = smov %s6608_s25  ;;  %s5175_s8 = scalar_lea.hbm %s6608_s25, 512 }
  0xac   : > { %p5176_p6 = scmp.ne.s32.totalorder %s6609_s9, %s5175_s8  ;;  %p5182_p0 = scmp.lt.u32.totalorder %s5175_s8, %s6609_s9 }
  0xae   : > { %p5178_p10 = pnand %p5176_p6, %p6602_p8 }
  0xb0   : > { %p5179_p12 = pneg %p5178_p10 }
  0xb2   : > { %p5184_p5 = pnand %p5182_p0, %p5179_p12 }
  0xb4   : > { %5187 = shalt.err (!%p5184_p5)
}
  0xb5   : > { %s5188_s0 = scalar_lea.vmem %s648_s10, 512  ;;  %p5196_p11 = scmp.lt.s32.totalorder %s648_s10, %s648_s10 }
  0xb6   : > { %p5189_p3 = scmp.ne.s32.totalorder %s648_s10, %s5188_s0  ;;  %p5197_p7 = scmp.lt.s32.totalorder %s5188_s0, %s5188_s0 }
  0xb8   : > { %p5191_p4 = pnand %p5189_p3, %p6602_p8  ;;  %p5198_p9 = por %p5197_p7, %p5196_p11 }
  0xba   : > { %p5192_p13 = pneg %p5191_p4 }
  0xbc   : > { %p5199_p1 = pnand %p5198_p9, %p5192_p13 }
  0xbe   : > { %5202 = shalt.err (!%p5199_p1)
}
  0xbf   : > { %p6610_p6 = scmp.ne.s32.totalorder %s6589_s6, 0  ;;  %s6611_s21 = smov 16  }
  0xc0   : > { %s6612_s22 = smov 256   ;;  %s6613_s29 = sld [smem:[#allocation39_spill]] }
  0xc1   : > { %4647 = dma.hbm_to_vmem [thread:$0]  (!%p6610_p6), %s6609_s9, 512, %s648_s10, [#allocation7], %s6612_s22, %s6612_s22, %s6611_s21  }
  0xc6   : > { %s5203_s11 = scalar_lea.hbm %s6613_s29, 32 }
  0xc7   : > { %p5204_p10 = scmp.ne.s32.totalorder %s6613_s29, %s5203_s11  ;;  %p5210_p0 = scmp.lt.u32.totalorder %s5203_s11, %s6613_s29 }
  0xc9   : > { %p5206_p1 = pnand %p5204_p10, %p6602_p8 }
  0xcb   : > { %p5207_p12 = pneg %p5206_p1 }
  0xcd   : > { %p5212_p5 = pnand %p5210_p0, %p5207_p12 }
  0xcf   : > { %5215 = shalt.err (!%p5212_p5)
}
  0xd0   : > { %s5216_s30 = scalar_lea.vmem %s662_s7, 32  ;;  %p5224_p11 = scmp.lt.s32.totalorder %s662_s7, %s662_s7 }
  0xd1   : > { %p5217_p3 = scmp.ne.s32.totalorder %s662_s7, %s5216_s30  ;;  %p5225_p7 = scmp.lt.s32.totalorder %s5216_s30, %s5216_s30 }
  0xd3   : > { %p5219_p4 = pnand %p5217_p3, %p6602_p8  ;;  %p5226_p9 = por %p5225_p7, %p5224_p11 }
  0xd5   : > { %p5220_p13 = pneg %p5219_p4 }
  0xd7   : > { %p5227_p2 = pnand %p5226_p9, %p5220_p13 }
  0xd9   : > { %5230 = shalt.err (!%p5227_p2)
}
  0xda   : > { %4650 = dma.hbm_to_vmem [thread:$0]  (!%p6610_p6), %s6613_s29, 32, %s662_s7, [#allocation10]  }
  0xdb   : > { %s6614_s12 = sld [smem:[#allocation48_spill]]  ;;  %s808_s17 = scalar_lea.vmem [#allocation13], %s5777_s13 }
  0xdc   : > { %s815_s11 = sshll.u32 %s808_s17, 4  ;;  %p6615_p10 = scmp.ne.s32.totalorder %s6599_s27, 0  ;;  %s5883_s11 = int_to_ptr.vmem [resolvable:$true] %s815_s11 }
  0xe1   : > { %s5880_s8 = scalar_lea.hbm %s6614_s12, %s5801_s19  ;;  %s5236_s25 = scalar_lea.hbm %s6614_s12, 8192 }
  0xe2   : > { %s5231_s3 = scalar_lea.hbm %s5880_s8, 4096  ;;  %p5237_p0 = scmp.lt.u32.totalorder %s5880_s8, %s6614_s12 }
  0xe3   : > { %p5232_p2 = scmp.ne.s32.totalorder %s5880_s8, %s5231_s3  ;;  %p5238_p5 = scmp.lt.u32.totalorder %s5236_s25, %s5231_s3 }
  0xe4   : > { %p5240_p4 = scmp.lt.u32.totalorder %s5231_s3, %s5880_s8 }
  0xe5   : > { %p5234_p1 = pnand %p5232_p2, %p6615_p10  ;;  %p5239_p3 = por %p5238_p5, %p5237_p0 }
  0xe7   : > { %p5235_p12 = pneg %p5234_p1  ;;  %p5241_p13 = por %p5240_p4, %p5239_p3 }
  0xe9   : > { %p5242_p11 = pnand %p5241_p13, %p5235_p12 }
  0xeb   : > { %5245 = shalt.err (!%p5242_p11)
}
  0xec   : > { %s5246_s10 = scalar_lea.vmem %s5883_s11, 4096  ;;  %s5507_s21 = smov [#allocation13]  }
  0xed   : > { %p5247_p7 = scmp.ne.s32.totalorder %s5883_s11, %s5246_s10  ;;  %s5251_s22 = sshll.u32 %s5507_s21, 4  ;;  %s5252_s22 = int_to_ptr.vmem [resolvable:$false] %s5251_s22 }
  0xee   : > { %s5253_s24 = scalar_lea.vmem %s5252_s22, 8192  ;;  %p5254_p1 = scmp.lt.s32.totalorder %s5883_s11, %s5252_s22 }
  0xef   : > { %p5249_p9 = pnand %p5247_p7, %p6615_p10  ;;  %p5255_p6 = scmp.lt.s32.totalorder %s5253_s24, %s5246_s10 }
  0xf1   : > { %p5250_p2 = pneg %p5249_p9  ;;  %p5256_p0 = por %p5255_p6, %p5254_p1 }
  0xf3   : > { %p5257_p5 = pnand %p5256_p0, %p5250_p2 }
  0xf5   : > { %5260 = shalt.err (!%p5257_p5)
}
  0xf6   : > { %p6616_p12 = scmp.ne.s32.totalorder %s6597_s1, 0  ;;  %s5508_s17 = smov [#allocation15]  }
  0xf7   : > { %s671_s3 = sshll.u32 %s5508_s17, 4  ;;  %s5509_s28 = smov [#allocation16]   ;;  %s672_s3 = int_to_ptr.vmem [resolvable:$true] %s671_s3 }
  0xf8   : > { %4669 = dma.hbm_to_vmem [thread:$0]  (!%p6616_p12), %s5880_s8, 4096, %s5883_s11, %s5745_s15, %s6607_s5, %s6607_s5, %s6606_s4  }
  0xf9   : > { %s687_s7 = sshll.u32 %s5509_s28, 4  ;;  %s6617_s16 = sld [smem:[#allocation52_spill]]  ;;  %s688_s7 = int_to_ptr.vmem [resolvable:$true] %s687_s7 }
  0xff   : > { %s5261_s30 = scalar_lea.hbm %s6617_s16, 4096 }
 0x100   : > { %p5262_p6 = scmp.ne.s32.totalorder %s6617_s16, %s5261_s30  ;;  %p5268_p13 = scmp.lt.u32.totalorder %s5261_s30, %s6617_s16 }
 0x102   : > { %p5264_p3 = pnand %p5262_p6, %p6602_p8 }
 0x104   : > { %p5265_p4 = pneg %p5264_p3 }
 0x106   : > { %p5270_p11 = pnand %p5268_p13, %p5265_p4 }
 0x108   : > { %5273 = shalt.err (!%p5270_p11)
}
 0x109   : > { %s5274_s8 = scalar_lea.vmem %s672_s3, 4096  ;;  %p5282_p1 = scmp.lt.s32.totalorder %s672_s3, %s672_s3 }
 0x10a   : > { %p5275_p7 = scmp.ne.s32.totalorder %s672_s3, %s5274_s8  ;;  %p5283_p0 = scmp.lt.s32.totalorder %s5274_s8, %s5274_s8 }
 0x10c   : > { %p5277_p9 = pnand %p5275_p7, %p6602_p8  ;;  %p5284_p5 = por %p5283_p0, %p5282_p1 }
 0x10e   : > { %p5278_p2 = pneg %p5277_p9 }
 0x110   : > { %p5285_p12 = pnand %p5284_p5, %p5278_p2 }
 0x112   : > { %5288 = shalt.err (!%p5285_p12)
}
 0x113   : > { %p6618_p6 = scmp.ne.s32.totalorder %s6589_s6, 0  ;;  %s5289_s0 = scalar_lea.hbm %s6519_s18, 2048 }
 0x114   : > { %p5290_p3 = scmp.ne.s32.totalorder %s6519_s18, %s5289_s0  ;;  %p5296_p13 = scmp.lt.u32.totalorder %s5289_s0, %s6519_s18 }
 0x115   : > { %4653 = dma.hbm_to_vmem [thread:$0]  (!%p6618_p6), %s6617_s16, 4096, %s672_s3, [#allocation7], %s6607_s5, %s6607_s5, %s6606_s4  }
 0x116   : > { %p5292_p12 = pnand %p5290_p3, %p6602_p8 }
 0x118   : > { %p5293_p4 = pneg %p5292_p12 }
 0x11a   : > { %p5298_p11 = pnand %p5296_p13, %p5293_p4 }
 0x11c   : > { %5301 = shalt.err (!%p5298_p11)
}
 0x11d   : > { %s5302_s24 = scalar_lea.vmem %s688_s7, 2048  ;;  %p5310_p1 = scmp.lt.s32.totalorder %s688_s7, %s688_s7 }
 0x11e   : > { %p5303_p7 = scmp.ne.s32.totalorder %s688_s7, %s5302_s24  ;;  %p5311_p0 = scmp.lt.s32.totalorder %s5302_s24, %s5302_s24 }
 0x120   : > { %p5305_p9 = pnand %p5303_p7, %p6602_p8  ;;  %p5312_p5 = por %p5311_p0, %p5310_p1 }
 0x122   : > { %p5306_p2 = pneg %p5305_p9 }
 0x124   : > { %p5313_p10 = pnand %p5312_p5, %p5306_p2 }
 0x126   : > { %5316 = shalt.err (!%p5313_p10)
}
 0x127   : > { %4656 = dma.hbm_to_vmem [thread:$0]  (!%p6618_p6), %s6519_s18, 2048, %s688_s7, [#allocation10], %s6607_s5, %s6607_s5, %s6606_s4  }
 0x128   : > { %s5510_s11 = smov [#allocation17]   ;;  %s6619_s14 = sld [smem:[#allocation50_spill]] }
 0x129   : > { %s703_s17 = sshll.u32 %s5510_s11, 4  ;;  %s5317_s21 = scalar_lea.hbm %s6521_s20, 2048  ;;  %s704_s17 = int_to_ptr.vmem [resolvable:$true] %s703_s17 }
 0x12a   : > { %p5318_p10 = scmp.ne.s32.totalorder %s6521_s20, %s5317_s21  ;;  %p5324_p4 = scmp.lt.u32.totalorder %s5317_s21, %s6521_s20 }
 0x12c   : > { %p5320_p3 = pnand %p5318_p10, %p6602_p8 }
 0x12e   : > { %s5956_s0 = scalar_lea.hbm %s6619_s14, %s5801_s19  ;;  %p5321_p12 = pneg %p5320_p3 }
 0x130   : > { %p5326_p13 = pnand %p5324_p4, %p5321_p12 }
 0x132   : > { %5329 = shalt.err (!%p5326_p13)
}
 0x133   : > { %s5330_s8 = scalar_lea.vmem %s704_s17, 2048  ;;  %p5338_p2 = scmp.lt.s32.totalorder %s704_s17, %s704_s17 }
 0x134   : > { %p5331_p11 = scmp.ne.s32.totalorder %s704_s17, %s5330_s8  ;;  %p5339_p1 = scmp.lt.s32.totalorder %s5330_s8, %s5330_s8 }
 0x136   : > { %p5333_p7 = pnand %p5331_p11, %p6602_p8  ;;  %p5340_p0 = por %p5339_p1, %p5338_p2 }
 0x138   : > { %p5334_p9 = pneg %p5333_p7 }
 0x13a   : > { %p5341_p5 = pnand %p5340_p0, %p5334_p9 }
 0x13c   : > { %5344 = shalt.err (!%p5341_p5)
}
 0x13d   : > { %4659 = dma.hbm_to_vmem [thread:$0]  (!%p6618_p6), %s6521_s20, 2048, %s704_s17, [#allocation18], %s6607_s5, %s6607_s5, %s6606_s4  }
 0x13e   : > { %s836_s23 = scalar_lea.vmem [#allocation14], %s5777_s13  ;;  %s5345_s25 = scalar_lea.hbm %s5956_s0, 4096 }
 0x13f   : > { %s843_s28 = sshll.u32 %s836_s23, 4  ;;  %p5346_p8 = scmp.ne.s32.totalorder %s5956_s0, %s5345_s25  ;;  %s5980_s28 = int_to_ptr.vmem [resolvable:$true] %s843_s28 }
 0x140   : > { %p6620_p10 = scmp.ne.s32.totalorder %s6599_s27, 0  ;;  %s5350_s10 = scalar_lea.hbm %s6619_s14, 8192 }
 0x141   : > { %p5351_p4 = scmp.lt.u32.totalorder %s5956_s0, %s6619_s14  ;;  %p5352_p13 = scmp.lt.u32.totalorder %s5350_s10, %s5345_s25 }
 0x142   : > { %p5348_p3 = pnand %p5346_p8, %p6620_p10  ;;  %p5354_p6 = scmp.lt.u32.totalorder %s5345_s25, %s5956_s0 }
 0x143   : > { %p5353_p11 = por %p5352_p13, %p5351_p4 }
 0x144   : > { %p5349_p12 = pneg %p5348_p3 }
 0x145   : > { %p5355_p7 = por %p5354_p6, %p5353_p11 }
 0x147   : > { %p5356_p9 = pnand %p5355_p7, %p5349_p12 }
 0x149   : > { %5359 = shalt.err (!%p5356_p9)
}
 0x14a   : > { %s5360_s13 = scalar_lea.vmem %s5980_s28, 4096  ;;  %s5511_s17 = smov [#allocation14]  }
 0x14b   : > { %p5361_p2 = scmp.ne.s32.totalorder %s5980_s28, %s5360_s13  ;;  %s5365_s24 = sshll.u32 %s5511_s17, 4  ;;  %s5366_s24 = int_to_ptr.vmem [resolvable:$false] %s5365_s24 }
 0x14c   : > { %s5367_s7 = scalar_lea.vmem %s5366_s24, 8192  ;;  %p5368_p5 = scmp.lt.s32.totalorder %s5980_s28, %s5366_s24 }
 0x14d   : > { %p5363_p1 = pnand %p5361_p2, %p6620_p10  ;;  %p5369_p8 = scmp.lt.s32.totalorder %s5367_s7, %s5360_s13 }
 0x14f   : > { %p5364_p0 = pneg %p5363_p1  ;;  %p5370_p3 = por %p5369_p8, %p5368_p5 }
 0x151   : > { %p5371_p4 = pnand %p5370_p3, %p5364_p0 }
 0x153   : > { %5374 = shalt.err (!%p5371_p4)
}
 0x154   : > { %p6621_p12 = scmp.ne.s32.totalorder %s6597_s1, 0  ;;  %p6622_p10 = scmp.ne.s32.totalorder %s6588_s2, 0 }
 0x155   : > { %p6623_p13 = scmp.eq.s32.totalorder (!%p6622_p10), %s5663_s26, 0 }
 0x156   : > { %4672 = dma.hbm_to_vmem [thread:$0]  (!%p6621_p12), %s5956_s0, 4096, %s5980_s28, %s5745_s15, %s6607_s5, %s6607_s5, %s6606_s4  }
 0x157   : > { %862 = sbr.rel (%p6622_p10) target bundleno = 3668 (0xe54), region = 108 }
 0x15e   : > { %5444 = dma.done.wait (%p6623_p13), [#allocation4], 256   ;;  %p6624_p11 = pmov %p6623_p13 }
 0x160   : > { %5446 = vsyncadd (%p6624_p11), [#allocation4], 4294967040  ;;  %p6625_p6 = pmov %p6624_p11 }
 0x162   : > { %5448 = dma.done.wait (%p6625_p6), [#allocation7], 1024   ;;  %p6626_p7 = pmov %p6625_p6 }
 0x163   : > { %p6627_p9 = pmov %p6625_p6 }
 0x164   : > { %5450 = vsyncadd (%p6626_p7), [#allocation7], 4294966272 }
 0x165   : > { %5452 = dma.done.wait (%p6627_p9), [#allocation10], 32   ;;  %p6628_p2 = pmov %p6625_p6 }
 0x166   : > { %s6629_s15 = sld [smem:[#allocation31_spill]]  ;;  %s6630_s2 = sld [smem:[#allocation35_spill]] }
 0x167   : > { %5454 = vsyncadd (%p6628_p2), [#allocation10], 4294967264  ;;  %s880_s27 = sand.u32 1, %s5663_s26  }
 0x168   : > { %s881_s5 = scalar_lea.sflag [#allocation4], %s880_s27 }
 0x16c   : > { %s882_s1 = sand.u32 1, %s6629_s15   ;;  %p6631_p1 = scmp.ne.s32.totalorder %s6630_s2, 0 }
 0x16d   : > { %s4592_s4 = smul.u32 768, %s882_s1 }
 0x16f   : > { %s6023_s0 = scalar_lea.vmem [#allocation11], %s4592_s4 }
 0x170   : > { %5456 = dma.done.wait (%p6631_p1), %s881_s5, 24576  }
 0x171   : > { %5458 = vsyncadd (%p6631_p1), %s881_s5, 4294942720  ;;  %s4081_s3 = sshll.u32 %s882_s1, 8  ;;  %p6632_p0 = pmov %p6628_p2 }
 0x172   : > { %s6029_s8 = scalar_lea.vmem [#allocation12], %s4081_s3  ;;  %s6031_s19 = scalar_lea.vmem [#allocation13], %s4081_s3 }
 0x173   : > { %s6033_s11 = scalar_lea.vmem [#allocation14], %s4081_s3 }
 0x174   : > { %5460 = dma.done.wait (%p6632_p0), [#allocation7], 4096   ;;  %p6633_p5 = pmov %p6632_p0 }
 0x175   : > { %p6634_p8 = pmov %p6632_p0 }
 0x176   : > { %5462 = vsyncadd (%p6633_p5), [#allocation7], 4294963200 }
 0x177   : > { %5464 = dma.done.wait (%p6634_p8), [#allocation10], 2048   ;;  %p6635_p3 = pmov %p6632_p0 }
 0x178   : > { %p6636_p4 = pmov %p6632_p0 }
 0x179   : > { %5466 = vsyncadd (%p6635_p3), [#allocation10], 4294965248 }
 0x17a   : > { %5468 = dma.done.wait (%p6636_p4), [#allocation18], 2048   ;;  %p6637_p12 = pmov %p6632_p0 }
 0x17b   : > { %p1028_p10 = scmp.lt.s32.totalorder %s5663_s26, 1  ;;  %s6640_s2 = sld [smem:[#allocation41_spill]] }
 0x17c   : > { %5470 = vsyncadd (%p6637_p12), [#allocation18], 4294965248  ;;  %s6641_s5 = sld [smem:[#allocation45_spill]]  ;;  %s6642_s30 = sld [smem:[#allocation46_spill]] }
 0x17d   : > { %s1029_s23 = scalar_select %p1028_p10, %s5663_s26, 1 }
 0x17e   : > { %s6643_s10 = sld [smem:[#allocation47_spill]]  ;;  %s6644_s13 = sld [smem:[#allocation49_spill]] }
 0x17f   : > { %s4593_s28 = smul.u32 6, %s1029_s23  ;;  %s6049_s25 = sshll.u32 %s1029_s23, 1 }
 0x180   : > { %p6646_p13 = scmp.ne.s32.totalorder %s5663_s26, 0 }
 0x181   : > { %s6062_s27 = scalar_lea.vmem %s6640_s2, %s4593_s28  ;;  %s6645_s28 = sld [smem:[#allocation51_spill]]  ;;  %v1067_v0 = vld [vmem:[#allocation8 + $0x8] sm:$0xff] (!%p6646_p13)  ;;  %v1069_v1 = vld [vmem:[#allocation8 + $0x18] sm:$0xff] (!%p6646_p13)  ;;  %v1066_v2 = vld [vmem:[#allocation8] sm:$0xff] (!%p6646_p13)  ;;  %v5512_v5 = vmov (!%p6646_p13), 0.0   ;;  %vm1082_vm0 = vcmask (!%p6646_p13), 130048   ;;  %v1072_v9 = vlaneseq (!%p6646_p13) }
 0x182   : > { %s1043_s3 = scalar_lea.vmem %s6641_s5, %s6049_s25  ;;  %s1047_s9 = scalar_lea.vmem %s6642_s30, %s6049_s25  ;;  %v4504_v3 = vpack.c.bf16 (!%p6646_p13), %v1069_v1, %v1067_v0  ;;  %v1068_v4 = vld [vmem:[#allocation8 + $0x10] sm:$0xff] (!%p6646_p13)  ;;  %1153 = vmatprep.mubr.f32.mxu0 (!%p6646_p13), %v5512_v5  ;;  %1159 = vmatprep.mubr.f32.mxu1 (!%p6646_p13), %v5512_v5  ;;  %v1065_v8 = vld [vmem:[#allocation3 + $0x8] sm:$0xff] (!%p6646_p13)  ;;  %v1070_v12 = vld [vmem:[#allocation9] sm:$0x3] (!%p6646_p13) }
 0x183   : > { %1063 = sbr.rel (%p6646_p13) target bundleno = 610 (0x262), region = 156  ;;  %v4506_v6 = vpack.c.bf16 (!%p6646_p13), %v1068_v4, %v1066_v2  ;;  %v1064_v7 = vld [vmem:[#allocation3] sm:$0xff] (!%p6646_p13)  ;;  %v1073_v10 = vshrl.u32 (!%p6646_p13), %v1072_v9, 7  ;;  %v1166_v17 = vld [vmem:[#allocation6] sm:$0xff] (!%p6646_p13)  ;;  %v1167_v23 = vld [vmem:[#allocation6 + $0x8] sm:$0xff] (!%p6646_p13) }
 0x184   : > { %s1051_s21 = scalar_lea.vmem %s6643_s10, %s6049_s25  ;;  %s1055_s17 = scalar_lea.vmem %s6644_s13, %s6049_s25  ;;  %4505 = vmatprep.subr.bf16.mxu0 (!%p6646_p13), %v4504_v3  ;;  %4588 = vmatprep.subr.bf16.mxu1 (!%p6646_p13), %v4504_v3  ;;  %v1168_v19 = vld [vmem:[#allocation6 + $0x10] sm:$0xff] (!%p6646_p13)  ;;  %v1169_v25 = vld [vmem:[#allocation6 + $0x18] sm:$0xff] (!%p6646_p13) }
 0x185   : > { %4507 = vmatpush1.bf16.msra.mxu0 (!%p6646_p13), %v4506_v6  ;;  %4589 = vmatpush1.bf16.msra.mxu1 (!%p6646_p13), %v4506_v6  ;;  %v1074_v11 = vsub.s32 (!%p6646_p13), 0, %v1073_v10  ;;  %v1078_v13 = vsub.s32 (!%p6646_p13), 1, %v1073_v10 }
 0x187   : > { %s1059_s15 = scalar_lea.vmem %s6645_s28, %s6049_s25  ;;  %v1075_v14 = vrot.slane (!%p6646_p13), %v1070_v12, %v1074_v11  ;;  %v1079_v15 = vrot.slane (!%p6646_p13), %v1070_v12, %v1078_v13 }
 0x188   : > { %4095 = vmatmul.mubr.msk.f32.vlgmr.msra.gmra.mrb[0].mxu0 (!%p6646_p13), %vm1082_vm0, %v1064_v7  ;;  %4096 = vmatmul.mubr.msk.f32.vlgmr.msra.gmra.mrb[0].mxu1 (!%p6646_p13), %vm1082_vm0, %v1065_v8 }
 0x25b   : > { %v1155_v16 = vpop.f32.mrb[0].mxu0  ;;  %v1161_v18 = vpop.f32.mrb[0].mxu1 }
 0x25c   : > { %v1156_v20 = vadd.f32 %v1155_v16, %v1075_v14  ;;  %v1162_v21 = vadd.f32 %v1161_v18, %v1075_v14  ;;  %v1157_v22 = vpop.f32.mrb[1].mxu0  ;;  %v1163_v24 = vpop.f32.mrb[1].mxu1 }
 0x25d   : > { %v1158_v26 = vadd.f32 %v1157_v22, %v1079_v15  ;;  %v1164_v27 = vadd.f32 %v1163_v24, %v1079_v15 }
 0x25e   : > { %v1170_v28 = vadd.f32 %v1166_v17, %v1156_v20  ;;  %v1172_v29 = vadd.f32 %v1168_v19, %v1162_v21 }
 0x25f   : > { %v1171_v30 = vadd.f32 %v1167_v23, %v1158_v26  ;;  %v1173_v31 = vadd.f32 %v1169_v25, %v1164_v27 }
 0x260   : > { %1174 = vst [vmem:[#allocation2] sm:$0xff] %v1170_v28  ;;  %1176 = vst [vmem:[#allocation2 + $0x10] sm:$0xff] %v1172_v29 }
 0x261   : > { %1175 = vst [vmem:[#allocation2 + $0x8] sm:$0xff] %v1171_v30  ;;  %1177 = vst [vmem:[#allocation2 + $0x18] sm:$0xff] %v1173_v31 }
 0x262 PF: > { %v4747_v32 = vld [vmem:[%s6023_s0 + $0xc] ss:$24 sps:$4 sm:$0xff]   ;;  %v4749_v33 = vld [vmem:[%s6023_s0 + $0x8] ss:$24 sps:$4 sm:$0xff]   ;;  %v4753_v36 = vld [vmem:[%s6023_s0 + $0x3c] ss:$24 sps:$4 sm:$0xff]  }
 0x263   : > { %1835 = vmatprep.subr.bf16.mxu1 %v4747_v32  ;;  %v4750_v34 = vld [vmem:[%s6023_s0 + $0x4] ss:$24 sps:$4 sm:$0xff]   ;;  %v4752_v35 = vld [vmem:[%s6023_s0] ss:$24 sps:$4 sm:$0xff]   ;;  %v4756_v38 = vld [vmem:[%s6023_s0 + $0x34] ss:$24 sps:$4 sm:$0xff]  }
 0x264   : > { %1836 = vmatpush1.bf16.msra.mxu1 %v4749_v33  ;;  %v4755_v37 = vld [vmem:[%s6023_s0 + $0x38] ss:$24 sps:$4 sm:$0xff]   ;;  %1792 = vmatprep.subr.bf16.mxu0 %v4750_v34  ;;  %v4759_v40 = vld [vmem:[%s6023_s0 + $0x6c] ss:$24 sps:$4 sm:$0xff]   ;;  %v4761_v41 = vld [vmem:[%s6023_s0 + $0x68] ss:$24 sps:$4 sm:$0xff]  }
 0x265   : > { %1793 = vmatpush1.bf16.msra.mxu0 %v4752_v35  ;;  %1837 = vmatprep.subr.bf16.mxu1 %v4753_v36  ;;  %v4758_v39 = vld [vmem:[%s6023_s0 + $0x30] ss:$24 sps:$4 sm:$0xff]   ;;  %v4762_v42 = vld [vmem:[%s6023_s0 + $0x64] ss:$24 sps:$4 sm:$0xff]   ;;  %v4764_v44 = vld [vmem:[%s6023_s0 + $0x60] ss:$24 sps:$4 sm:$0xff]  }
 0x266   : > { %1794 = vmatprep.subr.bf16.mxu0 %v4756_v38  ;;  %v4765_v43 = vld [vmem:[%s6023_s0 + $0x9c] ss:$24 sps:$4 sm:$0xff]   ;;  %v4767_v46 = vld [vmem:[%s6023_s0 + $0x98] ss:$24 sps:$4 sm:$0xff]   ;;  %v4771_v47 = vld [vmem:[%s6023_s0 + $0xcc] ss:$24 sps:$4 sm:$0xff]  }
 0x267   : > { %v4768_v45 = vld [vmem:[%s6023_s0 + $0x94] ss:$24 sps:$4 sm:$0xff]   ;;  %v4770_v48 = vld [vmem:[%s6023_s0 + $0x90] ss:$24 sps:$4 sm:$0xff]   ;;  %v4774_v49 = vld [vmem:[%s6023_s0 + $0xc4] ss:$24 sps:$4 sm:$0xff]  }
 0x268   : > { %1838 = vmatpush1.bf16.msra.mxu1 %v4755_v37  ;;  %v4773_v50 = vld [vmem:[%s6023_s0 + $0xc8] ss:$24 sps:$4 sm:$0xff]   ;;  %v4777_v51 = vld [vmem:[%s6023_s0 + $0xfc] ss:$24 sps:$4 sm:$0xff]   ;;  %v4779_v54 = vld [vmem:[%s6023_s0 + $0xf8] ss:$24 sps:$4 sm:$0xff]  }
 0x269   : > { %1839 = vmatprep.subr.bf16.mxu1 %v4759_v40  ;;  %1795 = vmatpush1.bf16.msra.mxu0 %v4758_v39  ;;  %v4776_v52 = vld [vmem:[%s6023_s0 + $0xc0] ss:$24 sps:$4 sm:$0xff]   ;;  %v4780_v53 = vld [vmem:[%s6023_s0 + $0xf4] ss:$24 sps:$4 sm:$0xff]   ;;  %v4782_v56 = vld [vmem:[%s6023_s0 + $0xf0] ss:$24 sps:$4 sm:$0xff]  }
 0x26a   : > { %1796 = vmatprep.subr.bf16.mxu0 %v4762_v42  ;;  %v4783_v55 = vld [vmem:[%s6023_s0 + $0x12c] ss:$24 sps:$4 sm:$0xff]   ;;  %v4785_v58 = vld [vmem:[%s6023_s0 + $0x128] ss:$24 sps:$4 sm:$0xff]   ;;  %v4789_v59 = vld [vmem:[%s6023_s0 + $0x15c] ss:$24 sps:$4 sm:$0xff]  }
 0x26b   : > { %v4786_v57 = vld [vmem:[%s6023_s0 + $0x124] ss:$24 sps:$4 sm:$0xff]   ;;  %v4788_v60 = vld [vmem:[%s6023_s0 + $0x120] ss:$24 sps:$4 sm:$0xff]   ;;  %v4792_v61 = vld [vmem:[%s6023_s0 + $0x154] ss:$24 sps:$4 sm:$0xff]  }
 0x26c   : > { %1840 = vmatpush1.bf16.msra.mxu1 %v4761_v41  ;;  %v4791_v62 = vld [vmem:[%s6023_s0 + $0x158] ss:$24 sps:$4 sm:$0xff]   ;;  %v4795_v63 = vld [vmem:[%s6023_s0 + $0x18c] ss:$24 sps:$4 sm:$0xff]   ;;  %v4797_v2 = vld [vmem:[%s6023_s0 + $0x188] ss:$24 sps:$4 sm:$0xff]  }
 0x26d   : > { %1841 = vmatprep.subr.bf16.mxu1 %v4765_v43  ;;  %1797 = vmatpush1.bf16.msra.mxu0 %v4764_v44  ;;  %v4794_v0 = vld [vmem:[%s6023_s0 + $0x150] ss:$24 sps:$4 sm:$0xff]   ;;  %v4798_v1 = vld [vmem:[%s6023_s0 + $0x184] ss:$24 sps:$4 sm:$0xff]   ;;  %v4800_v4 = vld [vmem:[%s6023_s0 + $0x180] ss:$24 sps:$4 sm:$0xff]  }
 0x26e   : > { %1798 = vmatprep.subr.bf16.mxu0 %v4768_v45  ;;  %v4801_v3 = vld [vmem:[%s6023_s0 + $0x1bc] ss:$24 sps:$4 sm:$0xff]   ;;  %v4803_v6 = vld [vmem:[%s6023_s0 + $0x1b8] ss:$24 sps:$4 sm:$0xff]   ;;  %v4807_v7 = vld [vmem:[%s6023_s0 + $0x1ec] ss:$24 sps:$4 sm:$0xff]  }
 0x26f   : > { %v4804_v5 = vld [vmem:[%s6023_s0 + $0x1b4] ss:$24 sps:$4 sm:$0xff]   ;;  %v4806_v8 = vld [vmem:[%s6023_s0 + $0x1b0] ss:$24 sps:$4 sm:$0xff]   ;;  %v4810_v9 = vld [vmem:[%s6023_s0 + $0x1e4] ss:$24 sps:$4 sm:$0xff]  }
 0x270   : > { %1842 = vmatpush1.bf16.msra.mxu1 %v4767_v46  ;;  %v4809_v10 = vld [vmem:[%s6023_s0 + $0x1e8] ss:$24 sps:$4 sm:$0xff]   ;;  %v4813_v11 = vld [vmem:[%s6023_s0 + $0x21c] ss:$24 sps:$4 sm:$0xff]   ;;  %v4815_v16 = vld [vmem:[%s6023_s0 + $0x218] ss:$24 sps:$4 sm:$0xff]  }
 0x271   : > { %1843 = vmatprep.subr.bf16.mxu1 %v4771_v47  ;;  %1799 = vmatpush1.bf16.msra.mxu0 %v4770_v48  ;;  %v4812_v12 = vld [vmem:[%s6023_s0 + $0x1e0] ss:$24 sps:$4 sm:$0xff]   ;;  %v4816_v13 = vld [vmem:[%s6023_s0 + $0x214] ss:$24 sps:$4 sm:$0xff]   ;;  %v4818_v19 = vld [vmem:[%s6023_s0 + $0x210] ss:$24 sps:$4 sm:$0xff]  }
 0x272   : > { %1800 = vmatprep.subr.bf16.mxu0 %v4774_v49  ;;  %v6132_v14 = vld [vmem:[#allocation2 + $0x8] sm:$0xff]  ;;  %v6134_v15 = vld [vmem:[#allocation2 + $0x18] sm:$0xff]  ;;  %v6155_v34 = vld [vmem:[#allocation2] sm:$0xff]  ;;  %vm5514_vm1 = vmmov 0   ;;  %vm2063_vm2 = vcmask 64512   ;;  %s6647_s16 = sld [smem:[#allocation43_spill]] }
 0x273   : > { %v1183_v17 = vpack.c.bf16 %v6134_v15, %v6132_v14  ;;  %v4819_v18 = vld [vmem:[%s6023_s0 + $0x24c] ss:$24 sps:$4 sm:$0xff]   ;;  %v4821_v21 = vld [vmem:[%s6023_s0 + $0x248] ss:$24 sps:$4 sm:$0xff]   ;;  %v4825_v22 = vld [vmem:[%s6023_s0 + $0x27c] ss:$24 sps:$4 sm:$0xff]  }
 0x274   : > { %1844 = vmatpush1.bf16.msra.mxu1 %v4773_v50  ;;  %v4822_v20 = vld [vmem:[%s6023_s0 + $0x244] ss:$24 sps:$4 sm:$0xff]   ;;  %v4824_v23 = vld [vmem:[%s6023_s0 + $0x240] ss:$24 sps:$4 sm:$0xff]   ;;  %v4828_v24 = vld [vmem:[%s6023_s0 + $0x274] ss:$24 sps:$4 sm:$0xff]  }
 0x275   : > { %1845 = vmatprep.subr.bf16.mxu1 %v4777_v51  ;;  %1801 = vmatpush1.bf16.msra.mxu0 %v4776_v52  ;;  %v4827_v25 = vld [vmem:[%s6023_s0 + $0x278] ss:$24 sps:$4 sm:$0xff]   ;;  %v4831_v26 = vld [vmem:[%s6023_s0 + $0x2ac] ss:$24 sps:$4 sm:$0xff]   ;;  %v4833_v29 = vld [vmem:[%s6023_s0 + $0x2a8] ss:$24 sps:$4 sm:$0xff]  }
 0x276   : > { %1802 = vmatprep.subr.bf16.mxu0 %v4780_v53  ;;  %1867 = vmatprep.mubr.bf16.mxu1 %v1183_v17  ;;  %v4830_v27 = vld [vmem:[%s6023_s0 + $0x270] ss:$24 sps:$4 sm:$0xff]   ;;  %v4834_v28 = vld [vmem:[%s6023_s0 + $0x2a4] ss:$24 sps:$4 sm:$0xff]   ;;  %v4836_v31 = vld [vmem:[%s6023_s0 + $0x2a0] ss:$24 sps:$4 sm:$0xff]  }
 0x277   : > { %1824 = vmatprep.mubr.bf16.mxu0 %v1183_v17  ;;  %v4837_v30 = vld [vmem:[%s6023_s0 + $0x2dc] ss:$24 sps:$4 sm:$0xff]   ;;  %v4839_v32 = vld [vmem:[%s6023_s0 + $0x2d8] ss:$24 sps:$4 sm:$0xff]   ;;  %s6649_s24 = sld [smem:[#allocation44_spill]]  ;;  %p4293_p11 = scmp.ne.s32.totalorder %s5663_s26, 1 }
 0x278   : > { %1846 = vmatpush1.bf16.msra.mxu1 %v4779_v54  ;;  %v4840_v33 = vld [vmem:[%s6023_s0 + $0x2d4] ss:$24 sps:$4 sm:$0xff]   ;;  %v6157_v35 = vld [vmem:[#allocation2 + $0x10] sm:$0xff]  ;;  %v4842_v36 = vld [vmem:[%s6023_s0 + $0x2d0] ss:$24 sps:$4 sm:$0xff]   ;;  %vm5516_vm3 = vmmov (!%p4293_p11), 0  }
 0x279   : > { %1847 = vmatprep.subr.bf16.mxu1 %v4783_v55  ;;  %1803 = vmatpush1.bf16.msra.mxu0 %v4782_v56  ;;  %v6162_v37 = vpack.c.bf16 %v6157_v35, %v6155_v34  ;;  %v4845_v38 = vld [vmem:[%s6023_s0 + $0x14] ss:$24 sps:$4 sm:$0xff]   ;;  %v4843_v39 = vld [vmem:[%s6023_s0 + $0x10] ss:$24 sps:$4 sm:$0xff]   ;;  %v4848_v40 = vld [vmem:[%s6023_s0 + $0x44] ss:$24 sps:$4 sm:$0xff]  }
 0x27a   : > { %1804 = vmatprep.subr.bf16.mxu0 %v4786_v57  ;;  %v4846_v41 = vld [vmem:[%s6023_s0 + $0x40] ss:$24 sps:$4 sm:$0xff]   ;;  %v4851_v42 = vld [vmem:[%s6023_s0 + $0x74] ss:$24 sps:$4 sm:$0xff]   ;;  %v4849_v43 = vld [vmem:[%s6023_s0 + $0x70] ss:$24 sps:$4 sm:$0xff]  }
 0x27b   : > { %v4854_v44 = vld [vmem:[%s6023_s0 + $0xa4] ss:$24 sps:$4 sm:$0xff]   ;;  %v4852_v45 = vld [vmem:[%s6023_s0 + $0xa0] ss:$24 sps:$4 sm:$0xff]   ;;  %v4857_v46 = vld [vmem:[%s6023_s0 + $0xd4] ss:$24 sps:$4 sm:$0xff]  }
 0x27c   : > { %1848 = vmatpush1.bf16.msra.mxu1 %v4785_v58  ;;  %v4855_v47 = vld [vmem:[%s6023_s0 + $0xd0] ss:$24 sps:$4 sm:$0xff]   ;;  %v4860_v48 = vld [vmem:[%s6023_s0 + $0x104] ss:$24 sps:$4 sm:$0xff]   ;;  %v4858_v49 = vld [vmem:[%s6023_s0 + $0x100] ss:$24 sps:$4 sm:$0xff]  }
 0x27d   : > { %1849 = vmatprep.subr.bf16.mxu1 %v4789_v59  ;;  %1805 = vmatpush1.bf16.msra.mxu0 %v4788_v60  ;;  %v4863_v50 = vld [vmem:[%s6023_s0 + $0x134] ss:$24 sps:$4 sm:$0xff]   ;;  %v4861_v51 = vld [vmem:[%s6023_s0 + $0x130] ss:$24 sps:$4 sm:$0xff]   ;;  %v4866_v52 = vld [vmem:[%s6023_s0 + $0x164] ss:$24 sps:$4 sm:$0xff]   ;;  %s6650_s2 = scalar_lea.vmem %s6649_s24, %s6049_s25 }
 0x27e   : > { %1806 = vmatprep.subr.bf16.mxu0 %v4792_v61  ;;  %v4864_v53 = vld [vmem:[%s6023_s0 + $0x160] ss:$24 sps:$4 sm:$0xff]   ;;  %v4869_v54 = vld [vmem:[%s6023_s0 + $0x194] ss:$24 sps:$4 sm:$0xff]   ;;  %v4867_v55 = vld [vmem:[%s6023_s0 + $0x190] ss:$24 sps:$4 sm:$0xff]  }
 0x27f   : > { %v4872_v56 = vld [vmem:[%s6023_s0 + $0x1c4] ss:$24 sps:$4 sm:$0xff]   ;;  %v4870_v57 = vld [vmem:[%s6023_s0 + $0x1c0] ss:$24 sps:$4 sm:$0xff]   ;;  %v4875_v58 = vld [vmem:[%s6023_s0 + $0x1f4] ss:$24 sps:$4 sm:$0xff]  }
 0x280   : > { %1850 = vmatpush1.bf16.msra.mxu1 %v4791_v62  ;;  %v4873_v59 = vld [vmem:[%s6023_s0 + $0x1f0] ss:$24 sps:$4 sm:$0xff]   ;;  %v4878_v60 = vld [vmem:[%s6023_s0 + $0x224] ss:$24 sps:$4 sm:$0xff]   ;;  %v4876_v61 = vld [vmem:[%s6023_s0 + $0x220] ss:$24 sps:$4 sm:$0xff]  }
 0x281   : > { %1851 = vmatprep.subr.bf16.mxu1 %v4795_v63  ;;  %1807 = vmatpush1.bf16.msra.mxu0 %v4794_v0  ;;  %v4881_v62 = vld [vmem:[%s6023_s0 + $0x254] ss:$24 sps:$4 sm:$0xff]   ;;  %v4879_v63 = vld [vmem:[%s6023_s0 + $0x250] ss:$24 sps:$4 sm:$0xff]   ;;  %v4884_v0 = vld [vmem:[%s6023_s0 + $0x284] ss:$24 sps:$4 sm:$0xff]  }
 0x282   : > { %1808 = vmatprep.subr.bf16.mxu0 %v4798_v1  ;;  %v4882_v1 = vld [vmem:[%s6023_s0 + $0x280] ss:$24 sps:$4 sm:$0xff]   ;;  %vm3585_vm4 = vcmask (!%p4293_p11), 1041409   ;;  %s6657_s14 = sld [smem:[#allocation54_spill]] (!%p4293_p11) }
 0x284   : > { %1852 = vmatpush1.bf16.msra.mxu1 %v4797_v2  ;;  %v4887_v2 = vld [vmem:[%s6023_s0 + $0x2b4] ss:$24 sps:$4 sm:$0xff]  }
 0x285   : > { %1853 = vmatprep.subr.bf16.mxu1 %v4801_v3  ;;  %1809 = vmatpush1.bf16.msra.mxu0 %v4800_v4  ;;  %v4885_v3 = vld [vmem:[%s6023_s0 + $0x2b0] ss:$24 sps:$4 sm:$0xff]   ;;  %v4890_v4 = vld [vmem:[%s6023_s0 + $0x2e4] ss:$24 sps:$4 sm:$0xff]  }
 0x286   : > { %1810 = vmatprep.subr.bf16.mxu0 %v4804_v5  ;;  %v4888_v5 = vld [vmem:[%s6023_s0 + $0x2e0] ss:$24 sps:$4 sm:$0xff]   ;;  %s6648_s0 = scalar_lea.vmem %s6647_s16, %s6049_s25 }
 0x288   : > { %1854 = vmatpush1.bf16.msra.mxu1 %v4803_v6  ;;  %v5513_v6 = vmov 0.0  }
 0x289   : > { %1855 = vmatprep.subr.bf16.mxu1 %v4807_v7  ;;  %1811 = vmatpush1.bf16.msra.mxu0 %v4806_v8  ;;  %v1282_v7 = vlaneseq }
 0x28a   : > { %1812 = vmatprep.subr.bf16.mxu0 %v4810_v9 }
 0x28b   : > { %v1283_v8 = vshrl.u32 %v1282_v7, 7 }
 0x28c   : > { %1856 = vmatpush1.bf16.msra.mxu1 %v4809_v10  ;;  %v1280_v10 = vld [vmem:[%s6062_s27] sm:$0x3f] }
 0x28d   : > { %1857 = vmatprep.subr.bf16.mxu1 %v4813_v11  ;;  %1813 = vmatpush1.bf16.msra.mxu0 %v4812_v12  ;;  %v1292_v9 = vsub.s32 2, %v1283_v8  ;;  %v1296_v11 = vsub.s32 3, %v1283_v8  ;;  %v6206_v12 = vsub.s32 0, %v1283_v8 }
 0x28e   : > { %1814 = vmatprep.subr.bf16.mxu0 %v4816_v13  ;;  %v6208_v13 = vsub.s32 1, %v1283_v8 }
 0x290   : > { %1858 = vmatpush1.bf16.msra.mxu1 %v4815_v16  ;;  %v1293_v16 = vrot.slane %v1280_v10, %v1292_v9 }
 0x291   : > { %1859 = vmatprep.subr.bf16.mxu1 %v4819_v18  ;;  %1815 = vmatpush1.bf16.msra.mxu0 %v4818_v19  ;;  %v1285_v18 = vrot.slane %v1280_v10, %v6206_v12 }
 0x292   : > { %1816 = vmatprep.subr.bf16.mxu0 %v4822_v20  ;;  %v1289_v20 = vrot.slane %v1280_v10, %v6208_v13 }
 0x294   : > { %1860 = vmatpush1.bf16.msra.mxu1 %v4821_v21 }
 0x295   : > { %1861 = vmatprep.subr.bf16.mxu1 %v4825_v22  ;;  %1817 = vmatpush1.bf16.msra.mxu0 %v4824_v23 }
 0x296   : > { %1818 = vmatprep.subr.bf16.mxu0 %v4828_v24 }
 0x298   : > { %1862 = vmatpush1.bf16.msra.mxu1 %v4827_v25 }
 0x299   : > { %1863 = vmatprep.subr.bf16.mxu1 %v4831_v26  ;;  %1819 = vmatpush1.bf16.msra.mxu0 %v4830_v27 }
 0x29a   : > { %1820 = vmatprep.subr.bf16.mxu0 %v4834_v28 }
 0x29c   : > { %1864 = vmatpush1.bf16.msra.mxu1 %v4833_v29 }
 0x29d   : > { %1865 = vmatprep.subr.bf16.mxu1 %v4837_v30  ;;  %1821 = vmatpush1.bf16.msra.mxu0 %v4836_v31 }
 0x29e   : > { %1822 = vmatprep.subr.bf16.mxu0 %v4840_v33 }
 0x2a0   : > { %1866 = vmatpush1.bf16.msra.mxu1 %v4839_v32 }
 0x2a1   : > { %1823 = vmatpush1.bf16.msra.mxu0 %v4842_v36  ;;  %4414 = vmatprep.subr.mxu1 %v5513_v6 }
 0x2a2   : > { %1878 = vmatprep.subr.bf16.mxu0 %v4845_v38  ;;  %v1300_v38 = vsub.s32 4, %v1283_v8 }
 0x2a3   : > { %1868 = vmatmul.mubr.bf16.vlgmr.msra.gmra.mrb[0].mxu1 %v6162_v37 }
 0x2a4   : > { %1825 = vmatmul.mubr.bf16.vlgmr.msra.gmra.mrb[0].mxu0 %v6162_v37  ;;  %4416 = vmatprep.mubr.msk.f32.mxu1 %vm5514_vm1, %v5513_v6 }
 0x2a5   : > { %1879 = vmatpush1.bf16.msra.mxu0 %v4843_v39  ;;  %1910 = vmatprep.mubr.bf16.mxu0 %v1183_v17  ;;  %v1297_v17 = vrot.slane %v1280_v10, %v1296_v11  ;;  %v1304_v39 = vsub.s32 5, %v1283_v8 }
 0x2a6   : > { %1880 = vmatprep.subr.bf16.mxu0 %v4848_v40  ;;  %v1301_v40 = vrot.slane %v1280_v10, %v1300_v38 }
 0x2a9   : > { %1881 = vmatpush1.bf16.msra.mxu0 %v4846_v41  ;;  %v1305_v41 = vrot.slane %v1280_v10, %v1304_v39 }
 0x2aa   : > { %1882 = vmatprep.subr.bf16.mxu0 %v4851_v42 }
 0x2ad   : > { %1883 = vmatpush1.bf16.msra.mxu0 %v4849_v43 }
 0x2ae   : > { %1884 = vmatprep.subr.bf16.mxu0 %v4854_v44 }
 0x2b1   : > { %1885 = vmatpush1.bf16.msra.mxu0 %v4852_v45 }
 0x2b2   : > { %1886 = vmatprep.subr.bf16.mxu0 %v4857_v46 }
 0x2b5   : > { %1887 = vmatpush1.bf16.msra.mxu0 %v4855_v47 }
 0x2b6   : > { %1888 = vmatprep.subr.bf16.mxu0 %v4860_v48 }
 0x2b9   : > { %1889 = vmatpush1.bf16.msra.mxu0 %v4858_v49 }
 0x2ba   : > { %1890 = vmatprep.subr.bf16.mxu0 %v4863_v50 }
 0x2bd   : > { %1891 = vmatpush1.bf16.msra.mxu0 %v4861_v51 }
 0x2be   : > { %1892 = vmatprep.subr.bf16.mxu0 %v4866_v52 }
 0x2c1   : > { %1893 = vmatpush1.bf16.msra.mxu0 %v4864_v53 }
 0x2c2   : > { %1894 = vmatprep.subr.bf16.mxu0 %v4869_v54 }
 0x2c5   : > { %1895 = vmatpush1.bf16.msra.mxu0 %v4867_v55 }
 0x2c6   : > { %1896 = vmatprep.subr.bf16.mxu0 %v4872_v56 }
 0x2c9   : > { %1897 = vmatpush1.bf16.msra.mxu0 %v4870_v57 }
 0x2ca   : > { %1898 = vmatprep.subr.bf16.mxu0 %v4875_v58 }
 0x2cd   : > { %1899 = vmatpush1.bf16.msra.mxu0 %v4873_v59 }
 0x2ce   : > { %1900 = vmatprep.subr.bf16.mxu0 %v4878_v60 }
 0x2d1   : > { %1901 = vmatpush1.bf16.msra.mxu0 %v4876_v61 }
 0x2d2   : > { %1902 = vmatprep.subr.bf16.mxu0 %v4881_v62 }
 0x2d5   : > { %1903 = vmatpush1.bf16.msra.mxu0 %v4879_v63 }
 0x2d6   : > { %1904 = vmatprep.subr.bf16.mxu0 %v4884_v0 }
 0x2d9   : > { %1905 = vmatpush1.bf16.msra.mxu0 %v4882_v1 }
 0x2da   : > { %1906 = vmatprep.subr.bf16.mxu0 %v4887_v2 }
 0x2dd   : > { %1907 = vmatpush1.bf16.msra.mxu0 %v4885_v3 }
 0x2de   : > { %1908 = vmatprep.subr.bf16.mxu0 %v4890_v4 }
 0x2e1   : > { %1909 = vmatpush1.bf16.msra.mxu0 %v4888_v5 }
 0x2e2   : > { %4394 = vmatprep.subr.mxu0 %v5513_v6 }
 0x2e4   : > { %1911 = vmatmul.mubr.bf16.vlgmr.msra.gmra.mrb[4].mxu0 %v6162_v37 }
 0x2e5   : > { %4396 = vmatprep.mubr.msk.f32.mxu0 %vm5514_vm1, %v5513_v6 }
 0x376   : > { %v1869_v19 = vpop.f32.mrb[0].mxu1 }
 0x377   : > { %v1870_v21 = vadd.f32 %v1869_v19, %v1293_v16  ;;  %v1871_v22 = vpop.f32.mrb[1].mxu1  ;;  %v1826_v25 = vpop.f32.mrb[0].mxu0 }
 0x378   : > { %v1872_v23 = vadd.f32 %v1871_v22, %v1297_v17  ;;  %v1873_v24 = vpop.f32.mrb[2].mxu1  ;;  %v1827_v26 = vadd.f32 %v1826_v25, %v1285_v18  ;;  %v1828_v28 = vpop.f32.mrb[1].mxu0 }
 0x379   : > { %v1875_v27 = vpop.f32.mrb[3].mxu1  ;;  %4395 = vmatpush3.xpose.msra.mxu0 %v1870_v21  ;;  %v1829_v29 = vadd.f32 %v1828_v28, %v1289_v20  ;;  %v1830_v30 = vpop.f32.mrb[2].mxu0  ;;  %v1874_v31 = vadd.f32 %v1873_v24, %v1293_v16 }
 0x37a   : > { %4415 = vmatpush3.xpose.msra.mxu1 %v1872_v23  ;;  %4399 = vmatprep.subr.mxu0 %v5513_v6  ;;  %v1832_v32 = vpop.f32.mrb[3].mxu0  ;;  %v1876_v33 = vadd.f32 %v1875_v27, %v1297_v17  ;;  %v1831_v36 = vadd.f32 %v1830_v30, %v1285_v18 }
 0x37b   : > { %4419 = vmatprep.subr.mxu1 %v5513_v6  ;;  %v1833_v37 = vadd.f32 %v1832_v32, %v1289_v20 }
 0x37c   : > { %4397 = vmatmul.mubr.f32.vlgmr.msra.gmra.mrb[8].mxu0 %v1827_v26 }
 0x37d   : > { %4400 = vmatpush3.xpose.msra.mxu0 %v1874_v31  ;;  %4417 = vmatmul.mubr.f32.vlgmr.msra.gmra.mrb[4].mxu1 %v1829_v29 }
 0x37e   : > { %4420 = vmatpush3.xpose.msra.mxu1 %v1876_v33  ;;  %4401 = vmatprep.mubr.msk.f32.mxu0 %vm5514_vm1, %v5513_v6  ;;  %v4893_v33 = vld [vmem:[%s6029_s8 + $0x4] ss:$8 sps:$4 sm:$0xff]  }
 0x37f   : > { %4421 = vmatprep.mubr.msk.f32.mxu1 %vm5514_vm1, %v5513_v6  ;;  %4404 = vmatprep.subr.mxu0 %v5513_v6 }
 0x380   : > { %4402 = vmatmul.mubr.f32.vlgmr.msra.gmra.mrb[10].mxu0 %v1831_v36  ;;  %4424 = vmatprep.subr.mxu1 %v5513_v6 }
 0x381   : > { %4422 = vmatmul.mubr.f32.vlgmr.msra.gmra.mrb[6].mxu1 %v1833_v37  ;;  %4406 = vmatprep.mubr.msk.f32.mxu0 %vm5514_vm1, %v5513_v6  ;;  %v4891_v37 = vld [vmem:[%s6029_s8] ss:$8 sps:$4 sm:$0xff]  }
 0x382   : > { %4426 = vmatprep.mubr.msk.f32.mxu1 %vm5514_vm1, %v5513_v6 }
 0x3b7   : > { %v1912_v42 = vpop.f32.mrb[4].mxu0 }
 0x3b8   : > { %v1913_v43 = vadd.f32 %v1912_v42, %v1301_v40  ;;  %v1914_v44 = vpop.f32.mrb[5].mxu0  ;;  %v4894_v42 = vld [vmem:[%s6029_s8 + $0x10] ss:$8 sps:$4 sm:$0xff]  }
 0x3b9   : > { %v1915_v45 = vadd.f32 %v1914_v44, %v1305_v41  ;;  %v1916_v46 = vpop.f32.mrb[6].mxu0  ;;  %v4899_v44 = vld [vmem:[%s6029_s8 + $0x24] ss:$8 sps:$4 sm:$0xff]  }
 0x3ba   : > { %v6224_v47 = vadd.f32 %v1916_v46, %v1301_v40  ;;  %v1918_v48 = vpop.f32.mrb[7].mxu0  ;;  %4405 = vmatpush3.msra.mxu0 %v1913_v43  ;;  %v4897_v46 = vld [vmem:[%s6029_s8 + $0x20] ss:$8 sps:$4 sm:$0xff]  }
 0x3bb   : > { %v6226_v49 = vadd.f32 %v1918_v48, %v1305_v41  ;;  %4425 = vmatpush3.msra.mxu1 %v1915_v45  ;;  %4409 = vmatprep.subr.mxu0 %v5513_v6  ;;  %v4896_v41 = vld [vmem:[%s6029_s8 + $0x14] ss:$8 sps:$4 sm:$0xff]  }
 0x3bc   : > { %4429 = vmatprep.subr.mxu1 %v5513_v6  ;;  %v4902_v48 = vld [vmem:[%s6029_s8 + $0x34] ss:$8 sps:$4 sm:$0xff]  }
 0x44f   : > { %v1987_v50 = vpop.f32.mrb[8].mxu0 }
 0x450   : > { %v2298_v51 = vpop.f32.mrb[4].mxu1  ;;  %v4398_v52 = vpop.f32.mrb[9].mxu0  ;;  %v2061_v55 = vmul.f32 0.088388346, %v1987_v50  ;;  %v4908_v50 = vld [vmem:[%s6029_s8 + $0x54] ss:$8 sps:$4 sm:$0xff]  }
 0x451   : > { %v2372_v53 = vmul.f32 0.088388346, %v2298_v51  ;;  %v4418_v54 = vpop.f32.mrb[5].mxu1  ;;  %v4906_v51 = vld [vmem:[%s6029_s8 + $0x50] ss:$8 sps:$4 sm:$0xff]  }
 0x452   : > { %v2064_v0 = vsel %vm2063_vm2, %v2061_v55, -inf  ;;  %v4911_v52 = vld [vmem:[%s6029_s8 + $0x64] ss:$8 sps:$4 sm:$0xff]   ;;  %v4914_v54 = vld [vmem:[%s6029_s8 + $0x74] ss:$8 sps:$4 sm:$0xff]  }
 0x453   : > { %v2057_v56 = vpop.f32.mrb[10].mxu0  ;;  %v2374_v57 = vsel %vm2063_vm2, %v2372_v53, -inf }
 0x454   : > { %2375 = vmax.xlane.f32.xlu0 %v2374_v57  ;;  %v4403_v58 = vpop.f32.mrb[11].mxu0  ;;  %v2368_v59 = vpop.f32.mrb[6].mxu1  ;;  %v2062_v62 = vmul.f32 0.088388346, %v2057_v56  ;;  %v4917_v56 = vld [vmem:[%s6029_s8 + $0x84] ss:$8 sps:$4 sm:$0xff]  }
 0x455   : > { %v2373_v60 = vmul.f32 0.088388346, %v2368_v59  ;;  %v4423_v61 = vpop.f32.mrb[7].mxu1  ;;  %v4915_v57 = vld [vmem:[%s6029_s8 + $0x80] ss:$8 sps:$4 sm:$0xff]  }
 0x456   : > { %v2067_v1 = vsel %vm2063_vm2, %v2062_v62, -inf  ;;  %v4920_v58 = vld [vmem:[%s6029_s8 + $0x94] ss:$8 sps:$4 sm:$0xff]   ;;  %v4918_v59 = vld [vmem:[%s6029_s8 + $0x90] ss:$8 sps:$4 sm:$0xff]  }
 0x457   : > { %v2377_v63 = vsel %vm2063_vm2, %v2373_v60, -inf  ;;  %v4921_v61 = vld [vmem:[%s6029_s8 + $0xa0] ss:$8 sps:$4 sm:$0xff]  }
 0x458   : > { %2378 = vmax.xlane.f32.xlu1 %v2377_v63  ;;  %2065 = vmax.xlane.f32.xlu0 %v2064_v0  ;;  %v4924_v63 = vld [vmem:[%s6029_s8 + $0xb0] ss:$8 sps:$4 sm:$0xff]   ;;  %v4929_v0 = vld [vmem:[%s6029_s8 + $0xc4] ss:$8 sps:$4 sm:$0xff]  }
 0x45c   : > { %2068 = vmax.xlane.f32.xlu1 %v2067_v1  ;;  %v4927_v1 = vld [vmem:[%s6029_s8 + $0xc0] ss:$8 sps:$4 sm:$0xff]  }
 0x4e1   : > { %v2376_v2 = vpop.xlane.xlu0 %2375 }
 0x4e2   : > { %v2380_v3 = vsub.f32 %v2372_v53, %v2376_v2  ;;  %v4909_v53 = vld [vmem:[%s6029_s8 + $0x60] ss:$8 sps:$4 sm:$0xff]   ;;  %v4932_v2 = vld [vmem:[%s6029_s8 + $0xd4] ss:$8 sps:$4 sm:$0xff]  }
 0x4e4   : > { %v2382_v4 = vmul.f32 1.442695, %v2380_v3  ;;  %v4930_v3 = vld [vmem:[%s6029_s8 + $0xd0] ss:$8 sps:$4 sm:$0xff]  }
 0x4e5   : > { %v2379_v5 = vpop.xlane.xlu1 %2378  ;;  %v2066_v7 = vpop.xlane.xlu0 %2065 }
 0x4e6   : > { %5035 = vpow2.f32 %v2382_v4  ;;  %v2381_v8 = vsub.f32 %v2373_v60, %v2379_v5  ;;  %v2070_v9 = vsub.f32 %v2061_v55, %v2066_v7  ;;  %v4912_v55 = vld [vmem:[%s6029_s8 + $0x70] ss:$8 sps:$4 sm:$0xff]   ;;  %v4923_v60 = vld [vmem:[%s6029_s8 + $0xa4] ss:$8 sps:$4 sm:$0xff]   ;;  %v4933_v4 = vld [vmem:[%s6029_s8 + $0xe0] ss:$8 sps:$4 sm:$0xff]  }
 0x4e7   : > { %v4935_v5 = vld [vmem:[%s6029_s8 + $0xe4] ss:$8 sps:$4 sm:$0xff]   ;;  %v4936_v7 = vld [vmem:[%s6029_s8 + $0xf0] ss:$8 sps:$4 sm:$0xff]  }
 0x4e8   : > { %v2384_v10 = vmul.f32 1.442695, %v2381_v8  ;;  %v2072_v11 = vmul.f32 1.442695, %v2070_v9  ;;  %v4938_v8 = vld [vmem:[%s6029_s8 + $0xf4] ss:$8 sps:$4 sm:$0xff]  }
 0x4e9   : > { %v2069_v16 = vpop.xlane.xlu1 %2068 }
 0x4ea   : > { %5037 = vpow2.f32 %v2384_v10  ;;  %v2071_v17 = vsub.f32 %v2062_v62, %v2069_v16  ;;  %v4926_v62 = vld [vmem:[%s6029_s8 + $0xb4] ss:$8 sps:$4 sm:$0xff]  }
 0x4eb   : > { %5039 = vpow2.f32 %v2072_v11 }
 0x4ec   : > { %v2074_v18 = vmul.f32 1.442695, %v2071_v17 }
 0x4ee   : > { %5041 = vpow2.f32 %v2074_v18 }
 0x4f0   : > { %v5036_v19 = vpop.eup %5035 }
 0x4f1   : > { %v2386_v20 = vsel %vm2063_vm2, %v5036_v19, 0.0 }
 0x4f2   : > { %2387 = vadd.xlane.f32.xlu0 %v2386_v20 }
 0x4f4   : > { %v5038_v21 = vpop.eup %5037 }
 0x4f5   : > { %v5040_v22 = vpop.eup %5039  ;;  %v2389_v23 = vsel %vm2063_vm2, %v5038_v21, 0.0 }
 0x4f6   : > { %2390 = vadd.xlane.f32.xlu0 %v2389_v23  ;;  %v2076_v24 = vsel %vm2063_vm2, %v5040_v22, 0.0  ;;  %v2576_v23 = vld [vmem:[%s6648_s0] sm:$0x3] }
 0x4f7   : > { %2077 = vadd.xlane.f32.xlu1 %v2076_v24  ;;  %v2581_v24 = vrot.slane %v2576_v23, %v6206_v12 }
 0x4f8   : > { %v5042_v25 = vpop.eup %5041 }
 0x4f9   : > { %v2079_v26 = vsel %vm2063_vm2, %v5042_v25, 0.0 }
 0x4fb   : > { %2080 = vadd.xlane.f32.xlu1 %v2079_v26 }
 0x57f   : > { %v2388_v27 = vpop.xlane.xlu0 %2387 }
 0x580   : > { %5043 = vrcp.f32 %v2388_v27 }
 0x583   : > { %v2391_v28 = vpop.xlane.xlu0 %2390 }
 0x584   : > { %5045 = vrcp.f32 %v2391_v28  ;;  %v2078_v29 = vpop.xlane.xlu1 %2077 }
 0x585   : > { %5047 = vrcp.f32 %v2078_v29 }
 0x588   : > { %v2081_v30 = vpop.xlane.xlu1 %2080 }
 0x589   : > { %5049 = vrcp.f32 %v2081_v30 }
 0x58a   : > { %v5044_v31 = vpop.eup %5043 }
 0x58b   : > { %v2393_v32 = vmul.f32 %v5044_v31, %v5036_v19 }
 0x58d   : > { %4427 = vmatmul.mubr.msk.f32.vlgmr.msra.gmra.mrb[8].mxu1 %vm2063_vm2, %v2393_v32 }
 0x58e   : > { %v5046_v36 = vpop.eup %5045  ;;  %4430 = vmatpush3.msra.mxu1 %v6226_v49  ;;  %4431 = vmatprep.mubr.msk.f32.mxu1 %vm5514_vm1, %v5513_v6  ;;  %v4900_v49 = vld [vmem:[%s6029_s8 + $0x30] ss:$8 sps:$4 sm:$0xff]  }
 0x58f   : > { %v5048_v38 = vpop.eup %5047  ;;  %v2395_v39 = vmul.f32 %v5046_v36, %v5038_v21  ;;  %2748 = vmatprep.subr.bf16.mxu1 %v4893_v33 }
 0x590   : > { %v2083_v40 = vmul.f32 %v5048_v38, %v5040_v22 }
 0x591   : > { %4432 = vmatmul.mubr.msk.f32.vlgmr.msra.gmra.mrb[10].mxu1 %vm2063_vm2, %v2395_v39 }
 0x592   : > { %4407 = vmatmul.mubr.msk.f32.vlgmr.msra.gmra.mrb[12].mxu0 %vm2063_vm2, %v2083_v40  ;;  %2749 = vmatpush1.bf16.msra.mxu1 %v4891_v37 }
 0x593   : > { %v5050_v43 = vpop.eup %5049  ;;  %4410 = vmatpush3.msra.mxu0 %v6224_v47  ;;  %4411 = vmatprep.mubr.msk.f32.mxu0 %vm5514_vm1, %v5513_v6  ;;  %v4905_v47 = vld [vmem:[%s6029_s8 + $0x44] ss:$8 sps:$4 sm:$0xff]   ;;  %v4903_v6 = vld [vmem:[%s6029_s8 + $0x40] ss:$8 sps:$4 sm:$0xff]   ;;  %s6658_s8 = sld [smem:[#allocation55_spill]] (!%p4293_p11) }
 0x594   : > { %v2085_v45 = vmul.f32 %v5050_v43, %v5042_v25  ;;  %2750 = vmatprep.subr.bf16.mxu1 %v4896_v41  ;;  %v2585_v25 = vrot.slane %v2576_v23, %v6208_v13  ;;  %v4944_v43 = vld [vmem:[%s6031_s19 + $0x14] ss:$8 sps:$4 sm:$0xff]   ;;  %v4984_v23 = vld [vmem:[%s6031_s19 + $0xf0] ss:$8 sps:$4 sm:$0xff]  }
 0x596   : > { %4412 = vmatmul.mubr.msk.f32.vlgmr.msra.gmra.mrb[14].mxu0 %vm2063_vm2, %v2085_v45  ;;  %2751 = vmatpush1.bf16.msra.mxu1 %v4894_v42  ;;  %v4941_v42 = vld [vmem:[%s6031_s19 + $0x4] ss:$8 sps:$4 sm:$0xff]   ;;  %v4948_v45 = vld [vmem:[%s6031_s19 + $0x30] ss:$8 sps:$4 sm:$0xff]  }
 0x597   : > { %2752 = vmatprep.subr.bf16.mxu1 %v4899_v44  ;;  %3066 = vmatprep.subr.bf16.mxu0 %v4941_v42  ;;  %v4950_v44 = vld [vmem:[%s6031_s19 + $0x34] ss:$8 sps:$4 sm:$0xff]   ;;  %v5011_v42 = vld [vmem:[%s6033_s11 + $0x80] ss:$8 sps:$4 sm:$0xff]  }
 0x59a   : > { %2753 = vmatpush1.bf16.msra.mxu1 %v4897_v46  ;;  %v4953_v46 = vld [vmem:[%s6031_s19 + $0x44] ss:$8 sps:$4 sm:$0xff]  }
 0x59b   : > { %2754 = vmatprep.subr.bf16.mxu1 %v4902_v48  ;;  %v4951_v48 = vld [vmem:[%s6031_s19 + $0x40] ss:$8 sps:$4 sm:$0xff]  }
 0x59e   : > { %2755 = vmatpush1.bf16.msra.mxu1 %v4900_v49  ;;  %v4956_v49 = vld [vmem:[%s6031_s19 + $0x54] ss:$8 sps:$4 sm:$0xff]  }
 0x59f   : > { %2756 = vmatprep.subr.bf16.mxu1 %v4905_v47  ;;  %v4954_v47 = vld [vmem:[%s6031_s19 + $0x50] ss:$8 sps:$4 sm:$0xff]  }
 0x5a2   : > { %2757 = vmatpush1.bf16.msra.mxu1 %v4903_v6  ;;  %v4959_v6 = vld [vmem:[%s6031_s19 + $0x64] ss:$8 sps:$4 sm:$0xff]  }
 0x5a3   : > { %2758 = vmatprep.subr.bf16.mxu1 %v4908_v50  ;;  %v4957_v50 = vld [vmem:[%s6031_s19 + $0x60] ss:$8 sps:$4 sm:$0xff]  }
 0x5a6   : > { %2759 = vmatpush1.bf16.msra.mxu1 %v4906_v51  ;;  %v4962_v51 = vld [vmem:[%s6031_s19 + $0x74] ss:$8 sps:$4 sm:$0xff]  }
 0x5a7   : > { %2760 = vmatprep.subr.bf16.mxu1 %v4911_v52  ;;  %v4960_v52 = vld [vmem:[%s6031_s19 + $0x70] ss:$8 sps:$4 sm:$0xff]  }
 0x5aa   : > { %2761 = vmatpush1.bf16.msra.mxu1 %v4909_v53  ;;  %v4965_v53 = vld [vmem:[%s6031_s19 + $0x84] ss:$8 sps:$4 sm:$0xff]  }
 0x5ab   : > { %2762 = vmatprep.subr.bf16.mxu1 %v4914_v54  ;;  %v4963_v54 = vld [vmem:[%s6031_s19 + $0x80] ss:$8 sps:$4 sm:$0xff]  }
 0x5ae   : > { %2763 = vmatpush1.bf16.msra.mxu1 %v4912_v55  ;;  %v4968_v55 = vld [vmem:[%s6031_s19 + $0x94] ss:$8 sps:$4 sm:$0xff]  }
 0x5af   : > { %2764 = vmatprep.subr.bf16.mxu1 %v4917_v56  ;;  %v4966_v56 = vld [vmem:[%s6031_s19 + $0x90] ss:$8 sps:$4 sm:$0xff]  }
 0x5b2   : > { %2765 = vmatpush1.bf16.msra.mxu1 %v4915_v57 }
 0x5b3   : > { %2766 = vmatprep.subr.bf16.mxu1 %v4920_v58 }
 0x5b6   : > { %2767 = vmatpush1.bf16.msra.mxu1 %v4918_v59 }
 0x5b7   : > { %2768 = vmatprep.subr.bf16.mxu1 %v4923_v60 }
 0x5ba   : > { %2769 = vmatpush1.bf16.msra.mxu1 %v4921_v61 }
 0x5bb   : > { %2770 = vmatprep.subr.bf16.mxu1 %v4926_v62 }
 0x5be   : > { %2771 = vmatpush1.bf16.msra.mxu1 %v4924_v63 }
 0x5bf   : > { %2772 = vmatprep.subr.bf16.mxu1 %v4929_v0 }
 0x5c2   : > { %2773 = vmatpush1.bf16.msra.mxu1 %v4927_v1 }
 0x5c3   : > { %2774 = vmatprep.subr.bf16.mxu1 %v4932_v2 }
 0x5c6   : > { %2775 = vmatpush1.bf16.msra.mxu1 %v4930_v3 }
 0x5c7   : > { %2776 = vmatprep.subr.bf16.mxu1 %v4935_v5 }
 0x5ca   : > { %2777 = vmatpush1.bf16.msra.mxu1 %v4933_v4 }
 0x5cb   : > { %2778 = vmatprep.subr.bf16.mxu1 %v4938_v8  ;;  %v4971_v8 = vld [vmem:[%s6031_s19 + $0xa4] ss:$8 sps:$4 sm:$0xff]  }
 0x5ce   : > { %2779 = vmatpush1.bf16.msra.mxu1 %v4936_v7 }
 0x660   : > { %v2465_v9 = vpop.f32.mrb[8].mxu1 }
 0x661   : > { %v4428_v10 = vpop.f32.mrb[9].mxu1 }
 0x662   : > { %v4974_v10 = vld [vmem:[%s6031_s19 + $0xb4] ss:$8 sps:$4 sm:$0xff]  }
 0x664   : > { %v2538_v11 = vpop.f32.mrb[10].mxu1 }
 0x665   : > { %v2155_v16 = vpop.f32.mrb[12].mxu0  ;;  %v2543_v17 = vpack.c.bf16 %v2538_v11, %v2465_v9  ;;  %v4433_v18 = vpop.f32.mrb[11].mxu1  ;;  %v4969_v9 = vld [vmem:[%s6031_s19 + $0xa0] ss:$8 sps:$4 sm:$0xff]   ;;  %v4972_v11 = vld [vmem:[%s6031_s19 + $0xb0] ss:$8 sps:$4 sm:$0xff]  }
 0x666   : > { %v4408_v19 = vpop.f32.mrb[13].mxu0  ;;  %v4980_v18 = vld [vmem:[%s6031_s19 + $0xd4] ss:$8 sps:$4 sm:$0xff]  }
 0x667   : > { %2780 = vmatprep.mubr.bf16.mxu1 %v2543_v17  ;;  %v4975_v17 = vld [vmem:[%s6031_s19 + $0xc0] ss:$8 sps:$4 sm:$0xff]   ;;  %v4978_v19 = vld [vmem:[%s6031_s19 + $0xd0] ss:$8 sps:$4 sm:$0xff]  }
 0x669   : > { %v2228_v20 = vpop.f32.mrb[14].mxu0 }
 0x66a   : > { %v2542_v21 = vpack.c.bf16 %v2228_v20, %v2155_v16  ;;  %v4413_v22 = vpop.f32.mrb[15].mxu0  ;;  %v4977_v16 = vld [vmem:[%s6031_s19 + $0xc4] ss:$8 sps:$4 sm:$0xff]   ;;  %v4981_v20 = vld [vmem:[%s6031_s19 + $0xe0] ss:$8 sps:$4 sm:$0xff]  }
 0x66b   : > { %v4986_v22 = vld [vmem:[%s6031_s19 + $0xf4] ss:$8 sps:$4 sm:$0xff]  }
 0x66c   : > { %2781 = vmatmul.mubr.bf16.vlgmr.msra.gmra.mrb[12].mxu1 %v2542_v21  ;;  %v4983_v21 = vld [vmem:[%s6031_s19 + $0xe4] ss:$8 sps:$4 sm:$0xff]  }
 0x73f   : > { %v2782_v26 = vpop.f32.mrb[12].mxu1 }
 0x740   : > { %v2783_v27 = vadd.f32 %v2782_v26, %v2581_v24  ;;  %v2784_v28 = vpop.f32.mrb[13].mxu1  ;;  %v4992_v26 = vld [vmem:[%s6033_s11 + $0x14] ss:$8 sps:$4 sm:$0xff]  }
 0x741   : > { %v2785_v29 = vadd.f32 %v2784_v28, %v2585_v25  ;;  %v2786_v30 = vpop.f32.mrb[14].mxu1  ;;  %v4995_v28 = vld [vmem:[%s6033_s11 + $0x24] ss:$8 sps:$4 sm:$0xff]  }
 0x742   : > { %v2791_v31 = vadd.f32 %v2783_v27, %v6155_v34  ;;  %v2787_v32 = vadd.f32 %v2786_v30, %v2581_v24  ;;  %v2788_v33 = vpop.f32.mrb[15].mxu1  ;;  %v4939_v34 = vld [vmem:[%s6031_s19] ss:$8 sps:$4 sm:$0xff]   ;;  %v4990_v27 = vld [vmem:[%s6033_s11 + $0x10] ss:$8 sps:$4 sm:$0xff]  }
 0x743   : > { %v2792_v36 = vadd.f32 %v2785_v29, %v6132_v14  ;;  %v2789_v37 = vadd.f32 %v2788_v33, %v2585_v25  ;;  %3067 = vmatpush1.bf16.msra.mxu0 %v4939_v34  ;;  %v4942_v14 = vld [vmem:[%s6031_s19 + $0x10] ss:$8 sps:$4 sm:$0xff]   ;;  %v4987_v24 = vld [vmem:[%s6033_s11] ss:$8 sps:$4 sm:$0xff]   ;;  %v4989_v25 = vld [vmem:[%s6033_s11 + $0x4] ss:$8 sps:$4 sm:$0xff]  }
 0x744   : > { %v2793_v38 = vadd.f32 %v2787_v32, %v6157_v35  ;;  %3068 = vmatprep.subr.bf16.mxu0 %v4944_v43  ;;  %v4947_v35 = vld [vmem:[%s6031_s19 + $0x24] ss:$8 sps:$4 sm:$0xff]   ;;  %3319 = vmatprep.subr.bf16.mxu1 %v4989_v25  ;;  %v4993_v29 = vld [vmem:[%s6033_s11 + $0x20] ss:$8 sps:$4 sm:$0xff]   ;;  %v4998_v30 = vld [vmem:[%s6033_s11 + $0x34] ss:$8 sps:$4 sm:$0xff]  }
 0x745   : > { %v2794_v39 = vadd.f32 %v2789_v37, %v6134_v15  ;;  %v2797_v40 = vadd.f32 %v2792_v36, %v2791_v31  ;;  %v4945_v15 = vld [vmem:[%s6031_s19 + $0x20] ss:$8 sps:$4 sm:$0xff]   ;;  %3320 = vmatpush1.bf16.msra.mxu1 %v4987_v24  ;;  %v5001_v32 = vld [vmem:[%s6033_s11 + $0x44] ss:$8 sps:$4 sm:$0xff]   ;;  %v5002_v37 = vld [vmem:[%s6033_s11 + $0x50] ss:$8 sps:$4 sm:$0xff]  }
 0x746   : > { %3321 = vmatprep.subr.bf16.mxu1 %v4992_v26  ;;  %v4999_v33 = vld [vmem:[%s6033_s11 + $0x40] ss:$8 sps:$4 sm:$0xff]   ;;  %v5013_v34 = vld [vmem:[%s6033_s11 + $0x84] ss:$8 sps:$4 sm:$0xff]   ;;  %v5016_v43 = vld [vmem:[%s6033_s11 + $0x94] ss:$8 sps:$4 sm:$0xff]  }
 0x747   : > { %2798 = vadd.xlane.f32.xlu0 %v2797_v40  ;;  %v2800_v41 = vadd.f32 %v2794_v39, %v2793_v38  ;;  %3069 = vmatpush1.bf16.msra.mxu0 %v4942_v14  ;;  %v5010_v40 = vld [vmem:[%s6033_s11 + $0x74] ss:$8 sps:$4 sm:$0xff]   ;;  %v5014_v14 = vld [vmem:[%s6033_s11 + $0x90] ss:$8 sps:$4 sm:$0xff]  }
 0x748   : > { %3070 = vmatprep.subr.bf16.mxu0 %v4947_v35  ;;  %v5019_v35 = vld [vmem:[%s6033_s11 + $0xa4] ss:$8 sps:$4 sm:$0xff]  }
 0x749   : > { %2801 = vadd.xlane.f32.xlu1 %v2800_v41  ;;  %3322 = vmatpush1.bf16.msra.mxu1 %v4990_v27  ;;  %v5008_v41 = vld [vmem:[%s6033_s11 + $0x70] ss:$8 sps:$4 sm:$0xff]  }
 0x74a   : > { %3323 = vmatprep.subr.bf16.mxu1 %v4995_v28 }
 0x74b   : > { %3071 = vmatpush1.bf16.msra.mxu0 %v4945_v15  ;;  %v5017_v15 = vld [vmem:[%s6033_s11 + $0xa0] ss:$8 sps:$4 sm:$0xff]  }
 0x74c   : > { %3072 = vmatprep.subr.bf16.mxu0 %v4950_v44  ;;  %v5022_v44 = vld [vmem:[%s6033_s11 + $0xb4] ss:$8 sps:$4 sm:$0xff]  }
 0x74d   : > { %3324 = vmatpush1.bf16.msra.mxu1 %v4993_v29 }
 0x74e   : > { %3325 = vmatprep.subr.bf16.mxu1 %v4998_v30 }
 0x74f   : > { %3073 = vmatpush1.bf16.msra.mxu0 %v4948_v45  ;;  %v5020_v45 = vld [vmem:[%s6033_s11 + $0xb0] ss:$8 sps:$4 sm:$0xff]  }
 0x750   : > { %3074 = vmatprep.subr.bf16.mxu0 %v4953_v46  ;;  %v5025_v46 = vld [vmem:[%s6033_s11 + $0xc4] ss:$8 sps:$4 sm:$0xff]  }
 0x753   : > { %3075 = vmatpush1.bf16.msra.mxu0 %v4951_v48  ;;  %v5023_v48 = vld [vmem:[%s6033_s11 + $0xc0] ss:$8 sps:$4 sm:$0xff]  }
 0x754   : > { %3076 = vmatprep.subr.bf16.mxu0 %v4956_v49  ;;  %v5028_v49 = vld [vmem:[%s6033_s11 + $0xd4] ss:$8 sps:$4 sm:$0xff]  }
 0x757   : > { %3077 = vmatpush1.bf16.msra.mxu0 %v4954_v47  ;;  %v5026_v47 = vld [vmem:[%s6033_s11 + $0xd0] ss:$8 sps:$4 sm:$0xff]  }
 0x758   : > { %3078 = vmatprep.subr.bf16.mxu0 %v4959_v6 }
 0x75b   : > { %3079 = vmatpush1.bf16.msra.mxu0 %v4957_v50 }
 0x75c   : > { %3080 = vmatprep.subr.bf16.mxu0 %v4962_v51 }
 0x75f   : > { %3081 = vmatpush1.bf16.msra.mxu0 %v4960_v52 }
 0x760   : > { %3082 = vmatprep.subr.bf16.mxu0 %v4965_v53 }
 0x763   : > { %3083 = vmatpush1.bf16.msra.mxu0 %v4963_v54 }
 0x764   : > { %3084 = vmatprep.subr.bf16.mxu0 %v4968_v55  ;;  %v2795_v55 = vld [vmem:[%s6650_s2] sm:$0x3] }
 0x767   : > { %3085 = vmatpush1.bf16.msra.mxu0 %v4966_v56  ;;  %v2796_v56 = vld [vmem:[%s1043_s3] sm:$0x3] }
 0x768   : > { %3086 = vmatprep.subr.bf16.mxu0 %v4971_v8 }
 0x76b   : > { %3087 = vmatpush1.bf16.msra.mxu0 %v4969_v9 }
 0x76c   : > { %3088 = vmatprep.subr.bf16.mxu0 %v4974_v10 }
 0x76f   : > { %3089 = vmatpush1.bf16.msra.mxu0 %v4972_v11 }
 0x770   : > { %3090 = vmatprep.subr.bf16.mxu0 %v4977_v16 }
 0x773   : > { %3091 = vmatpush1.bf16.msra.mxu0 %v4975_v17 }
 0x774   : > { %3092 = vmatprep.subr.bf16.mxu0 %v4980_v18 }
 0x777   : > { %3093 = vmatpush1.bf16.msra.mxu0 %v4978_v19 }
 0x778   : > { %3094 = vmatprep.subr.bf16.mxu0 %v4983_v21  ;;  %v5029_v21 = vld [vmem:[%s6033_s11 + $0xe0] ss:$8 sps:$4 sm:$0xff]  }
 0x77b   : > { %3095 = vmatpush1.bf16.msra.mxu0 %v4981_v20  ;;  %v5031_v20 = vld [vmem:[%s6033_s11 + $0xe4] ss:$8 sps:$4 sm:$0xff]  }
 0x77c   : > { %3096 = vmatprep.subr.bf16.mxu0 %v4986_v22  ;;  %v2894_v22 = vld [vmem:[%s1055_s17] sm:$0x3] }
 0x77d   : > { %v2903_v24 = vrot.slane %v2894_v22, %v6208_v13 }
 0x77f   : > { %3097 = vmatpush1.bf16.msra.mxu0 %v4984_v23  ;;  %v2899_v23 = vrot.slane %v2894_v22, %v6206_v12 }
 0x7d4   : > { %v2799_v57 = vpop.xlane.xlu0 %2798 }
 0x7d5   : > { %v2804_v58 = vmul.f32 0.00390625, %v2799_v57  ;;  %v2834_v57 = vrot.slane %v2795_v55, %v6206_v12 }
 0x7d6   : > { %v2802_v59 = vpop.xlane.xlu1 %2801 }
 0x7d7   : > { %v6311_v60 = vsub.f32 %v2791_v31, %v2804_v58  ;;  %v6313_v61 = vsub.f32 %v2792_v36, %v2804_v58  ;;  %v2805_v62 = vmul.f32 0.00390625, %v2802_v59  ;;  %v4996_v31 = vld [vmem:[%s6033_s11 + $0x30] ss:$8 sps:$4 sm:$0xff]   ;;  %v5004_v36 = vld [vmem:[%s6033_s11 + $0x54] ss:$8 sps:$4 sm:$0xff]   ;;  %v2838_v58 = vrot.slane %v2795_v55, %v6208_v13 }
 0x7d8   : > { %3326 = vmatpush1.bf16.msra.mxu1 %v4996_v31 }
 0x7d9   : > { %v6315_v63 = vsub.f32 %v2793_v38, %v2805_v62  ;;  %v6317_v0 = vsub.f32 %v2794_v39, %v2805_v62  ;;  %v2810_v1 = vmul.f32 %v6311_v60, %v6311_v60  ;;  %v2811_v2 = vmul.f32 %v6313_v61, %v6313_v61  ;;  %3327 = vmatprep.subr.bf16.mxu1 %v5001_v32  ;;  %v5007_v38 = vld [vmem:[%s6033_s11 + $0x64] ss:$8 sps:$4 sm:$0xff]   ;;  %v5005_v39 = vld [vmem:[%s6033_s11 + $0x60] ss:$8 sps:$4 sm:$0xff]  }
 0x7db   : > { %v2814_v3 = vadd.f32 %v2811_v2, %v2810_v1  ;;  %v2812_v4 = vmul.f32 %v6315_v63, %v6315_v63  ;;  %v2813_v5 = vmul.f32 %v6317_v0, %v6317_v0 }
 0x7dc   : > { %3328 = vmatpush1.bf16.msra.mxu1 %v4999_v33 }
 0x7dd   : > { %2815 = vadd.xlane.f32.xlu0 %v2814_v3  ;;  %v2817_v7 = vadd.f32 %v2813_v5, %v2812_v4  ;;  %3329 = vmatprep.subr.bf16.mxu1 %v5004_v36  ;;  %v2849_v3 = vrot.slane %v2796_v56, %v6206_v12  ;;  %v2853_v4 = vrot.slane %v2796_v56, %v6208_v13 }
 0x7df   : > { %2818 = vadd.xlane.f32.xlu1 %v2817_v7 }
 0x7e0   : > { %3330 = vmatpush1.bf16.msra.mxu1 %v5002_v37 }
 0x7e1   : > { %3331 = vmatprep.subr.bf16.mxu1 %v5007_v38 }
 0x7e4   : > { %3332 = vmatpush1.bf16.msra.mxu1 %v5005_v39 }
 0x7e5   : > { %3333 = vmatprep.subr.bf16.mxu1 %v5010_v40 }
 0x7e8   : > { %3334 = vmatpush1.bf16.msra.mxu1 %v5008_v41  ;;  %v3147_v41 = vld [vmem:[%s1059_s15] sm:$0x3] }
 0x7e9   : > { %3335 = vmatprep.subr.bf16.mxu1 %v5013_v34  ;;  %v3152_v34 = vrot.slane %v3147_v41, %v6206_v12 }
 0x7ec   : > { %3336 = vmatpush1.bf16.msra.mxu1 %v5011_v42  ;;  %v3156_v42 = vrot.slane %v3147_v41, %v6208_v13  ;;  %v5515_v41 = vmov (!%p4293_p11), 0.0|0.0  }
 0x7ed   : > { %3337 = vmatprep.subr.bf16.mxu1 %v5016_v43 }
 0x7f0   : > { %3338 = vmatpush1.bf16.msra.mxu1 %v5014_v14 }
 0x7f1   : > { %3339 = vmatprep.subr.bf16.mxu1 %v5019_v35 }
 0x7f4   : > { %3340 = vmatpush1.bf16.msra.mxu1 %v5017_v15 }
 0x7f5   : > { %3341 = vmatprep.subr.bf16.mxu1 %v5022_v44 }
 0x7f8   : > { %3342 = vmatpush1.bf16.msra.mxu1 %v5020_v45 }
 0x7f9   : > { %3343 = vmatprep.subr.bf16.mxu1 %v5025_v46 }
 0x7fc   : > { %3344 = vmatpush1.bf16.msra.mxu1 %v5023_v48 }
 0x7fd   : > { %3345 = vmatprep.subr.bf16.mxu1 %v5028_v49 }
 0x800   : > { %3346 = vmatpush1.bf16.msra.mxu1 %v5026_v47 }
 0x801   : > { %3347 = vmatprep.subr.bf16.mxu1 %v5031_v20 }
 0x804   : > { %3348 = vmatpush1.bf16.msra.mxu1 %v5029_v21 }
 0x86a   : > { %v2816_v6 = vpop.xlane.xlu0 %2815 }
 0x86b   : > { %v2820_v50 = vmul.f32 0.00390625, %v2816_v6 }
 0x86c   : > { %v2819_v51 = vpop.xlane.xlu1 %2818 }
 0x86d   : > { %v2822_v52 = vadd.f32 1e-05, %v2820_v50  ;;  %v2821_v53 = vmul.f32 0.00390625, %v2819_v51 }
 0x86f   : > { %5051 = vrsqrt.f32 %v2822_v52  ;;  %v2823_v54 = vadd.f32 1e-05, %v2821_v53 }
 0x871   : > { %5053 = vrsqrt.f32 %v2823_v54 }
 0x879   : > { %v5052_v59 = vpop.eup %5051 }
 0x87a   : > { %v2826_v62 = vmul.f32 %v5052_v59, %v6311_v60  ;;  %v2827_v1 = vmul.f32 %v5052_v59, %v6313_v61 }
 0x87b   : > { %v5054_v2 = vpop.eup %5053 }
 0x87c   : > { %v2828_v5 = vmul.f32 %v5054_v2, %v6315_v63  ;;  %v2829_v7 = vmul.f32 %v5054_v2, %v6317_v0  ;;  %v2842_v8 = vmul.f32 %v2838_v58, %v2827_v1  ;;  %v2841_v9 = vmul.f32 %v2834_v57, %v2826_v62  ;;  %v5034_v63 = vld [vmem:[%s6033_s11 + $0xf4] ss:$8 sps:$4 sm:$0xff]   ;;  %v5032_v0 = vld [vmem:[%s6033_s11 + $0xf0] ss:$8 sps:$4 sm:$0xff]  }
 0x87d   : > { %3349 = vmatprep.subr.bf16.mxu1 %v5034_v63 }
 0x87e   : > { %v2844_v10 = vmul.f32 %v2838_v58, %v2829_v7  ;;  %v2843_v11 = vmul.f32 %v2834_v57, %v2828_v5  ;;  %v2857_v60 = vadd.f32 %v2853_v4, %v2842_v8  ;;  %v2856_v16 = vadd.f32 %v2849_v3, %v2841_v9  ;;  %3350 = vmatpush1.bf16.msra.mxu1 %v5032_v0 }
 0x87f   : > { %4540 = vmatprep.subr.bf16.mxu1 (!%p4293_p11), %v5515_v41 }
 0x880   : > { %v2859_v61 = vadd.f32 %v2853_v4, %v2844_v10  ;;  %v2858_v17 = vadd.f32 %v2849_v3, %v2843_v11 }
 0x882   : > { %v2861_v18 = vpack.c.bf16 %v2859_v61, %v2857_v60  ;;  %v2860_v19 = vpack.c.bf16 %v2858_v17, %v2856_v16 }
 0x884   : > { %3098 = vmatprep.mubr.bf16.mxu0 %v2861_v18 }
 0x885   : > { %3099 = vmatmul.mubr.bf16.vlgmr.msra.gmra.mrb[16].mxu0 %v2860_v19 }
 0x958   : > { %v3100_v25 = vpop.f32.mrb[16].mxu0 }
 0x959   : > { %v3101_v26 = vadd.f32 %v3100_v25, %v2899_v23  ;;  %v3102_v27 = vpop.f32.mrb[17].mxu0 }
 0x95a   : > { %v3103_v28 = vadd.f32 %v3102_v27, %v2903_v24  ;;  %v3104_v29 = vpop.f32.mrb[18].mxu0 }
 0x95b   : > { %v3105_v30 = vadd.f32 %v3104_v29, %v2899_v23  ;;  %v3106_v31 = vpop.f32.mrb[19].mxu0  ;;  %v3109_v33 = vmax.f32 %v3101_v26, 0.0 }
 0x95c   : > { %v3107_v32 = vadd.f32 %v3106_v31, %v2903_v24  ;;  %v3110_v37 = vmax.f32 %v3103_v28, 0.0 }
 0x95d   : > { %v3111_v36 = vmax.f32 %v3105_v30, 0.0 }
 0x95e   : > { %v3112_v38 = vmax.f32 %v3107_v32, 0.0 }
 0x95f   : > { %v3113_v39 = vpack.c.bf16 %v3111_v36, %v3109_v33  ;;  %v3442_v36 = vld [vmem:[#allocation15] sm:$0xff] (!%p4293_p11) }
 0x960   : > { %v3114_v40 = vpack.c.bf16 %v3112_v38, %v3110_v37  ;;  %v3443_v38 = vld [vmem:[#allocation15 + $0x8] sm:$0xff] (!%p4293_p11) }
 0x962   : > { %3351 = vmatprep.mubr.bf16.mxu1 %v3114_v40  ;;  %v3461_v40 = vld [vmem:[#allocation15 + $0x98] sm:$0xff] (!%p4293_p11) }
 0x963   : > { %3352 = vmatmul.mubr.bf16.vlgmr.msra.gmra.mrb[16].mxu1 %v3113_v39  ;;  %v3460_v39 = vld [vmem:[#allocation15 + $0x90] sm:$0xff] (!%p4293_p11) }
 0xa36   : > { %v3353_v43 = vpop.f32.mrb[16].mxu1 }
 0xa37   : > { %v3354_v14 = vadd.f32 %v3353_v43, %v3152_v34  ;;  %v3355_v35 = vpop.f32.mrb[17].mxu1  ;;  %v3444_v43 = vld [vmem:[#allocation15 + $0x10] sm:$0xff] (!%p4293_p11) }
 0xa38   : > { %v3356_v15 = vadd.f32 %v3355_v35, %v3156_v42  ;;  %v3357_v44 = vpop.f32.mrb[18].mxu1  ;;  %v3462_v35 = vld [vmem:[#allocation15 + $0xa0] sm:$0xff] (!%p4293_p11) }
 0xa39   : > { %v3362_v45 = vadd.f32 %v3354_v14, %v2856_v16  ;;  %v3358_v46 = vadd.f32 %v3357_v44, %v3152_v34  ;;  %v3359_v48 = vpop.f32.mrb[19].mxu1  ;;  %v3366_v16 = vld [vmem:[%s1047_s9] sm:$0x3]  ;;  %v4510_v34 = vpack.c.bf16 (!%p4293_p11), %v3443_v38, %v3442_v36  ;;  %v3445_v14 = vld [vmem:[#allocation15 + $0x18] sm:$0xff] (!%p4293_p11)  ;;  %v3568_v38 = vld [vmem:[#allocation16 + $0x50] sm:$0xff] (!%p4293_p11) }
 0xa3a   : > { %v3363_v49 = vadd.f32 %v3356_v15, %v2857_v60  ;;  %v3360_v47 = vadd.f32 %v3359_v48, %v3156_v42  ;;  %v3404_v18 = vrot.slane %v3366_v16, %v6206_v12  ;;  %v3408_v19 = vrot.slane %v3366_v16, %v6208_v13  ;;  %v3463_v15 = vld [vmem:[#allocation15 + $0xa8] sm:$0xff] (!%p4293_p11)  ;;  %v3453_v16 = vld [vmem:[#allocation15 + $0x58] sm:$0xff] (!%p4293_p11) }
 0xa3b   : > { %v3364_v6 = vadd.f32 %v3358_v46, %v2858_v17  ;;  %v3367_v17 = vld [vmem:[%s1051_s21] sm:$0x3]  ;;  %v4512_v42 = vpack.c.bf16 (!%p4293_p11), %v3461_v40, %v3460_v39  ;;  %v4514_v44 = vpack.c.bf16 (!%p4293_p11), %v3445_v14, %v3444_v43  ;;  %v3446_v46 = vld [vmem:[#allocation15 + $0x20] sm:$0xff] (!%p4293_p11)  ;;  %v3569_v39 = vld [vmem:[#allocation16 + $0x58] sm:$0xff] (!%p4293_p11)  ;;  %s6656_s21 = sld [smem:[#allocation53_spill]] (!%p4293_p11) }
 0xa3c   : > { %v3365_v50 = vadd.f32 %v3360_v47, %v2859_v61  ;;  %v3368_v51 = vadd.f32 %v3363_v49, %v3362_v45  ;;  %v3419_v21 = vrot.slane %v3367_v17, %v6206_v12  ;;  %v3423_v63 = vrot.slane %v3367_v17, %v6208_v13  ;;  %v3458_v12 = vld [vmem:[#allocation15 + $0x80] sm:$0xff] (!%p4293_p11)  ;;  %v3459_v13 = vld [vmem:[#allocation15 + $0x88] sm:$0xff] (!%p4293_p11)  ;;  %v3465_v47 = vld [vmem:[#allocation15 + $0xb8] sm:$0xff] (!%p4293_p11) }
 0xa3d   : > { %v4508_v37 = vpack.c.bf16 (!%p4293_p11), %v3459_v13, %v3458_v12  ;;  %v3447_v48 = vld [vmem:[#allocation15 + $0x28] sm:$0xff] (!%p4293_p11)  ;;  %v3470_v17 = vld [vmem:[#allocation15 + $0xe0] sm:$0xff] (!%p4293_p11)  ;;  %v4556_v40 = vpack.c.bf16 (!%p4293_p11), %v3569_v39, %v3568_v38  ;;  %v3572_v14 = vld [vmem:[#allocation16 + $0x70] sm:$0xff] (!%p4293_p11) }
 0xa3e   : > { %3369 = vadd.xlane.f32.xlu0 %v3368_v51  ;;  %v3371_v52 = vadd.f32 %v3365_v50, %v3364_v6  ;;  %v3448_v51 = vld [vmem:[#allocation15 + $0x30] sm:$0xff] (!%p4293_p11) }
 0xa3f   : > { %4509 = vmatprep.subr.bf16.mxu0 (!%p4293_p11), %v4508_v37 }
 0xa40   : > { %3372 = vadd.xlane.f32.xlu1 %v3371_v52  ;;  %4511 = vmatpush3.bf16.msra.mxu0 (!%p4293_p11), %v4510_v34  ;;  %v3449_v52 = vld [vmem:[#allocation15 + $0x38] sm:$0xff] (!%p4293_p11)  ;;  %v3570_v34 = vld [vmem:[#allocation16 + $0x60] sm:$0xff] (!%p4293_p11) }
 0xa41   : > { %4513 = vmatprep.subr.bf16.mxu0 (!%p4293_p11), %v4512_v42  ;;  %v3571_v42 = vld [vmem:[#allocation16 + $0x68] sm:$0xff] (!%p4293_p11) }
 0xa42   : > { %v4559_v43 = vpack.c.bf16 (!%p4293_p11), %v3571_v42, %v3570_v34 }
 0xa44   : > { %4515 = vmatpush3.bf16.msra.mxu0 (!%p4293_p11), %v4514_v44  ;;  %v5517_v44 = vmov (!%p4293_p11), 0.0  }
 0xa45   : > { %4466 = vmatprep.mubr.msk.f32.mxu1 (!%p4293_p11), %vm5516_vm3, %v5517_v44 }
 0xacb   : > { %v3370_v53 = vpop.xlane.xlu0 %3369 }
 0xacc   : > { %v3374_v54 = vmul.f32 0.00390625, %v3370_v53  ;;  %v3466_v53 = vld [vmem:[#allocation15 + $0xc0] sm:$0xff] (!%p4293_p11) }
 0xacd   : > { %v3373_v55 = vpop.xlane.xlu1 %3372 }
 0xace   : > { %v3376_v56 = vsub.f32 %v3362_v45, %v3374_v54  ;;  %v3377_v57 = vsub.f32 %v3363_v49, %v3374_v54  ;;  %v3375_v58 = vmul.f32 0.00390625, %v3373_v55  ;;  %v4516_v45 = vpack.c.bf16 (!%p4293_p11), %v3463_v15, %v3462_v35  ;;  %v3464_v49 = vld [vmem:[#allocation15 + $0xb0] sm:$0xff] (!%p4293_p11)  ;;  %v3467_v54 = vld [vmem:[#allocation15 + $0xc8] sm:$0xff] (!%p4293_p11)  ;;  %v3573_v35 = vld [vmem:[#allocation16 + $0x78] sm:$0xff] (!%p4293_p11) }
 0xacf   : > { %v4562_v15 = vpack.c.bf16 (!%p4293_p11), %v3573_v35, %v3572_v14 }
 0xad0   : > { %v3378_v59 = vsub.f32 %v3364_v6, %v3375_v58  ;;  %v3379_v62 = vsub.f32 %v3365_v50, %v3375_v58  ;;  %v3380_v1 = vmul.f32 %v3376_v56, %v3376_v56  ;;  %v3381_v2 = vmul.f32 %v3377_v57, %v3377_v57  ;;  %4517 = vmatprep.subr.bf16.mxu0 (!%p4293_p11), %v4516_v45  ;;  %v3559_v58 = vld [vmem:[#allocation16 + $0x8] sm:$0xff] (!%p4293_p11)  ;;  %v3659_v45 = vld [vmem:[#allocation17] sm:$0xff] (!%p4293_p11) }
 0xad1   : > { %v4518_v6 = vpack.c.bf16 (!%p4293_p11), %v3447_v48, %v3446_v46  ;;  %v4520_v50 = vpack.c.bf16 (!%p4293_p11), %v3465_v47, %v3464_v49  ;;  %v3660_v46 = vld [vmem:[#allocation17 + $0x8] sm:$0xff] (!%p4293_p11)  ;;  %v3661_v48 = vld [vmem:[#allocation17 + $0x10] sm:$0xff] (!%p4293_p11)  ;;  %v3662_v47 = vld [vmem:[#allocation17 + $0x18] sm:$0xff] (!%p4293_p11) }
 0xad2   : > { %v3384_v3 = vadd.f32 %v3381_v2, %v3380_v1  ;;  %v3382_v4 = vmul.f32 %v3378_v59, %v3378_v59  ;;  %v3383_v5 = vmul.f32 %v3379_v62, %v3379_v62  ;;  %v3450_v1 = vld [vmem:[#allocation15 + $0x40] sm:$0xff] (!%p4293_p11)  ;;  %v3451_v2 = vld [vmem:[#allocation15 + $0x48] sm:$0xff] (!%p4293_p11)  ;;  %v4565_v49 = vpack.c.bf16 (!%p4293_p11), %v3660_v46, %v3659_v45 }
 0xad3   : > { %4519 = vmatpush3.bf16.msra.mxu0 (!%p4293_p11), %v4518_v6  ;;  %v4568_v6 = vpack.c.bf16 (!%p4293_p11), %v3662_v47, %v3661_v48 }
 0xad4   : > { %3385 = vadd.xlane.f32.xlu0 %v3384_v3  ;;  %v3387_v7 = vadd.f32 %v3383_v5, %v3382_v4  ;;  %4521 = vmatprep.subr.bf16.mxu0 (!%p4293_p11), %v4520_v50  ;;  %v3561_v4 = vld [vmem:[#allocation16 + $0x18] sm:$0xff] (!%p4293_p11)  ;;  %v3468_v5 = vld [vmem:[#allocation15 + $0xd0] sm:$0xff] (!%p4293_p11)  ;;  %v3663_v50 = vld [vmem:[#allocation17 + $0x20] sm:$0xff] (!%p4293_p11) }
 0xad6   : > { %3388 = vadd.xlane.f32.xlu1 %v3387_v7  ;;  %v3469_v7 = vld [vmem:[#allocation15 + $0xd8] sm:$0xff] (!%p4293_p11) }
 0xb61   : > { %v3386_v8 = vpop.xlane.xlu0 %3385 }
 0xb62   : > { %v3390_v9 = vmul.f32 0.00390625, %v3386_v8 }
 0xb63   : > { %v3389_v10 = vpop.xlane.xlu1 %3388 }
 0xb64   : > { %v3392_v11 = vadd.f32 1e-05, %v3390_v9  ;;  %v3391_v60 = vmul.f32 0.00390625, %v3389_v10  ;;  %v4526_v9 = vpack.c.bf16 (!%p4293_p11), %v3451_v2, %v3450_v1  ;;  %v3562_v10 = vld [vmem:[#allocation16 + $0x20] sm:$0xff] (!%p4293_p11) }
 0xb65   : > { %v3671_v2 = vld [vmem:[#allocation17 + $0x60] sm:$0xff] (!%p4293_p11) }
 0xb66   : > { %5055 = vrsqrt.f32 %v3392_v11  ;;  %v3393_v61 = vadd.f32 1e-05, %v3391_v60  ;;  %v3563_v11 = vld [vmem:[#allocation16 + $0x28] sm:$0xff] (!%p4293_p11)  ;;  %v4528_v60 = vpack.c.bf16 (!%p4293_p11), %v3469_v7, %v3468_v5 }
 0xb67   : > { %v4294_v7 = vld [vmem:[%s6656_s21] ss:$0 sm:$0xff] (!%p4293_p11) }
 0xb68   : > { %5057 = vrsqrt.f32 %v3393_v61  ;;  %v3452_v61 = vld [vmem:[#allocation15 + $0x50] sm:$0xff] (!%p4293_p11) }
 0xb70   : > { %v5056_v20 = vpop.eup %5055 }
 0xb71   : > { %v3396_v0 = vmul.f32 %v5056_v20, %v3376_v56  ;;  %v3397_v22 = vmul.f32 %v5056_v20, %v3377_v57  ;;  %v4522_v56 = vpack.c.bf16 (!%p4293_p11), %v3449_v52, %v3448_v51  ;;  %v3558_v57 = vld [vmem:[#allocation16] sm:$0xff] (!%p4293_p11)  ;;  %v4530_v20 = vpack.c.bf16 (!%p4293_p11), %v3453_v16, %v3452_v61  ;;  %v3664_v51 = vld [vmem:[#allocation17 + $0x28] sm:$0xff] (!%p4293_p11) }
 0xb72   : > { %v5058_v23 = vpop.eup %5057  ;;  %v4541_v3 = vpack.c.bf16 (!%p4293_p11), %v3559_v58, %v3558_v57  ;;  %v4571_v52 = vpack.c.bf16 (!%p4293_p11), %v3664_v51, %v3663_v50  ;;  %v3668_v57 = vld [vmem:[#allocation17 + $0x48] sm:$0xff] (!%p4293_p11) }
 0xb73   : > { %v3411_v24 = vmul.f32 %v3404_v18, %v3396_v0  ;;  %v3412_v25 = vmul.f32 %v3408_v19, %v3397_v22  ;;  %v3398_v26 = vmul.f32 %v5058_v23, %v3378_v59  ;;  %v3399_v27 = vmul.f32 %v5058_v23, %v3379_v62  ;;  %3437 = sbr.rel (%p4293_p11) target bundleno = 3605 (0xe15), region = 160  ;;  %v3560_v59 = vld [vmem:[#allocation16 + $0x10] sm:$0xff] (!%p4293_p11)  ;;  %4523 = vmatpush3.bf16.msra.mxu0 (!%p4293_p11), %v4522_v56  ;;  %v3454_v22 = vld [vmem:[#allocation15 + $0x60] sm:$0xff] (!%p4293_p11)  ;;  %v3455_v23 = vld [vmem:[#allocation15 + $0x68] sm:$0xff] (!%p4293_p11) }
 0xb74   : > { %v4524_v62 = vpack.c.bf16 (!%p4293_p11), %v3467_v54, %v3466_v53  ;;  %4542 = vmatpush3.bf16.msra.mxu1 (!%p4293_p11), %v4541_v3  ;;  %v4544_v8 = vpack.c.bf16 (!%p4293_p11), %v3561_v4, %v3560_v59  ;;  %v3665_v53 = vld [vmem:[#allocation17 + $0x30] sm:$0xff] (!%p4293_p11)  ;;  %v3666_v54 = vld [vmem:[#allocation17 + $0x38] sm:$0xff] (!%p4293_p11)  ;;  %v3667_v56 = vld [vmem:[#allocation17 + $0x40] sm:$0xff] (!%p4293_p11) }
 0xb75   : > { %v3426_v28 = vadd.f32 %v3419_v21, %v3411_v24  ;;  %v3427_v29 = vadd.f32 %v3423_v63, %v3412_v25  ;;  %v3413_v30 = vmul.f32 %v3404_v18, %v3398_v26  ;;  %v3414_v31 = vmul.f32 %v3408_v19, %v3399_v27  ;;  %4543 = vmatprep.subr.bf16.mxu1 (!%p4293_p11), %v5515_v41  ;;  %v3471_v18 = vld [vmem:[#allocation15 + $0xe8] sm:$0xff] (!%p4293_p11)  ;;  %v3472_v24 = vld [vmem:[#allocation15 + $0xf0] sm:$0xff] (!%p4293_p11)  ;;  %v3473_v25 = vld [vmem:[#allocation15 + $0xf8] sm:$0xff] (!%p4293_p11) }
 0xb76   : > { %4525 = vmatprep.subr.bf16.mxu0 (!%p4293_p11), %v4524_v62  ;;  %v4547_v19 = vpack.c.bf16 (!%p4293_p11), %v3563_v11, %v3562_v10  ;;  %v4532_v0 = vpack.c.bf16 (!%p4293_p11), %v3471_v18, %v3470_v17  ;;  %v4534_v27 = vpack.c.bf16 (!%p4293_p11), %v3455_v23, %v3454_v22  ;;  %v4577_v58 = vpack.c.bf16 (!%p4293_p11), %v3668_v57, %v3667_v56  ;;  %v3669_v59 = vld [vmem:[#allocation17 + $0x50] sm:$0xff] (!%p4293_p11)  ;;  %v3670_v62 = vld [vmem:[#allocation17 + $0x58] sm:$0xff] (!%p4293_p11)  ;;  %v3672_v3 = vld [vmem:[#allocation17 + $0x68] sm:$0xff] (!%p4293_p11) }
 0xb77   : > { %3430 = vst [vmem:[#allocation2] sm:$0xff] %v3426_v28  ;;  %3431 = vst [vmem:[#allocation2 + $0x8] sm:$0xff] %v3427_v29  ;;  %v3428_v32 = vadd.f32 %v3419_v21, %v3413_v30  ;;  %v3429_v33 = vadd.f32 %v3423_v63, %v3414_v31  ;;  %4527 = vmatpush3.bf16.msra.mxu0 (!%p4293_p11), %v4526_v9  ;;  %v3564_v21 = vld [vmem:[#allocation16 + $0x30] sm:$0xff] (!%p4293_p11)  ;;  %v3565_v63 = vld [vmem:[#allocation16 + $0x38] sm:$0xff] (!%p4293_p11)  ;;  %v4536_v30 = vpack.c.bf16 (!%p4293_p11), %v3473_v25, %v3472_v24 }
 0xb78   : > { %4545 = vmatpush3.bf16.msra.mxu1 (!%p4293_p11), %v4544_v8  ;;  %4529 = vmatprep.subr.bf16.mxu0 (!%p4293_p11), %v4528_v60  ;;  %v4550_v26 = vpack.c.bf16 (!%p4293_p11), %v3565_v63, %v3564_v21  ;;  %v3566_v28 = vld [vmem:[#allocation16 + $0x40] sm:$0xff] (!%p4293_p11)  ;;  %v3567_v29 = vld [vmem:[#allocation16 + $0x48] sm:$0xff] (!%p4293_p11)  ;;  %v3456_v31 = vld [vmem:[#allocation15 + $0x70] sm:$0xff] (!%p4293_p11)  ;;  %v4580_v1 = vpack.c.bf16 (!%p4293_p11), %v3670_v62, %v3669_v59  ;;  %v4583_v4 = vpack.c.bf16 (!%p4293_p11), %v3672_v3, %v3671_v2 }
 0xb79   : > { %3432 = vst [vmem:[#allocation2 + $0x10] sm:$0xff] %v3428_v32  ;;  %3433 = vst [vmem:[#allocation2 + $0x18] sm:$0xff] %v3429_v33  ;;  %4546 = vmatprep.subr.bf16.mxu1 (!%p4293_p11), %v5515_v41  ;;  %v3457_v32 = vld [vmem:[#allocation15 + $0x78] sm:$0xff] (!%p4293_p11)  ;;  %v4553_v33 = vpack.c.bf16 (!%p4293_p11), %v3567_v29, %v3566_v28  ;;  %v4295_v63 = vld [vmem:[%s6657_s14] ss:$0 sm:$0xff] (!%p4293_p11) }
 0xb7a   : > { %v4538_v12 = vpack.c.bf16 %v3457_v32, %v3456_v31  ;;  %v4296_v25 = vld [vmem:[%s6658_s8] ss:$0 sm:$0xff] }
 0xb7b   : > { %4531 = vmatpush3.bf16.msra.mxu0 %v4530_v20  ;;  %v3674_v20 = vld [vmem:[#allocation17 + $0x78] sm:$0xff] }
 0xb7c   : > { %4548 = vmatpush3.bf16.msra.mxu1 %v4547_v19  ;;  %4533 = vmatprep.subr.bf16.mxu0 %v4532_v0 }
 0xb7d   : > { %4549 = vmatprep.subr.bf16.mxu1 %v5515_v41 }
 0xb7e   : > { %v3439_v55 = vld [vmem:[#allocation2 + $0x8] sm:$0xff]  ;;  %v3438_v13 = vld [vmem:[#allocation2] sm:$0xff] }
 0xb7f   : > { %3545 = vmatprep.mubr.f32.mxu0 %v3439_v55  ;;  %4535 = vmatpush3.bf16.msra.mxu0 %v4534_v27  ;;  %v4574_v55 = vpack.c.bf16 %v3666_v54, %v3665_v53 }
 0xb80   : > { %4551 = vmatpush3.bf16.msra.mxu1 %v4550_v26  ;;  %4537 = vmatprep.subr.bf16.mxu0 %v4536_v30  ;;  %v3441_v36 = vld [vmem:[#allocation2 + $0x18] sm:$0xff]  ;;  %v3440_v37 = vld [vmem:[#allocation2 + $0x10] sm:$0xff] }
 0xb81   : > { %4552 = vmatprep.subr.bf16.mxu1 %v5515_v41 }
 0xb83   : > { %4539 = vmatpush3.bf16.msra.mxu0 %v4538_v12 }
 0xb84   : > { %4554 = vmatpush3.bf16.msra.mxu1 %v4553_v33  ;;  %4564 = vmatprep.subr.bf16.mxu0 %v5515_v41 }
 0xb85   : > { %4555 = vmatprep.subr.bf16.mxu1 %v5515_v41 }
 0xb86   : > { %3546 = vmatmul.mubr.f32.vlgmr.msra.gmra.mrb[0].mxu0 %v3438_v13 }
 0xb87   : > { %3550 = vmatprep.mubr.f32.mxu0 %v3441_v36  ;;  %4566 = vmatpush3.bf16.msra.mxu0 %v4565_v49 }
 0xb88   : > { %4557 = vmatpush3.bf16.msra.mxu1 %v4556_v40  ;;  %4567 = vmatprep.subr.bf16.mxu0 %v5515_v41 }
 0xb89   : > { %4558 = vmatprep.subr.bf16.mxu1 %v5515_v41 }
 0xb8a   : > { %3551 = vmatmul.mubr.f32.gmra.mrb[2].mxu0 %v3440_v37 }
 0xb8b   : > { %4501 = vmatprep.mubr.msk.f32.mxu0 %vm5516_vm3, %v5517_v44  ;;  %4569 = vmatpush3.bf16.msra.mxu0 %v4568_v6 }
 0xb8c   : > { %4560 = vmatpush3.bf16.msra.mxu1 %v4559_v43  ;;  %4570 = vmatprep.subr.bf16.mxu0 %v5515_v41 }
 0xb8d   : > { %4561 = vmatprep.subr.bf16.mxu1 %v5515_v41 }
 0xb8f   : > { %4572 = vmatpush3.bf16.msra.mxu0 %v4571_v52 }
 0xb90   : > { %4563 = vmatpush3.bf16.msra.mxu1 %v4562_v15  ;;  %4573 = vmatprep.subr.bf16.mxu0 %v5515_v41 }
 0xb93   : > { %4575 = vmatpush3.bf16.msra.mxu0 %v4574_v55 }
 0xb94   : > { %4576 = vmatprep.subr.bf16.mxu0 %v5515_v41 }
 0xb97   : > { %4578 = vmatpush3.bf16.msra.mxu0 %v4577_v58 }
 0xb98   : > { %4579 = vmatprep.subr.bf16.mxu0 %v5515_v41 }
 0xb9b   : > { %4581 = vmatpush3.bf16.msra.mxu0 %v4580_v1 }
 0xb9c   : > { %4582 = vmatprep.subr.bf16.mxu0 %v5515_v41 }
 0xb9f   : > { %4584 = vmatpush3.bf16.msra.mxu0 %v4583_v4 }
 0xba0   : > { %4585 = vmatprep.subr.bf16.mxu0 %v5515_v41  ;;  %v3673_v41 = vld [vmem:[#allocation17 + $0x70] sm:$0xff] }
 0xba1   : > { %v4586_v21 = vpack.c.bf16 %v3674_v20, %v3673_v41 }
 0xba3   : > { %4587 = vmatpush3.bf16.msra.mxu0 %v4586_v21 }
 0xc59   : > { %v4354_v5 = vpop.f32.mrb[0].mxu0 }
 0xc5a   : > { %v4355_v8 = vpop.f32.mrb[1].mxu0 }
 0xc5b   : > { %v4356_v9 = vadd.f32 %v4355_v8, %v4354_v5 }
 0xc5d   : > { %v3548_v10 = vadd.f32 %v4356_v9, %v4294_v7  ;;  %v4357_v11 = vpop.f32.mrb[2].mxu0 }
 0xc5e   : > { %v4358_v60 = vpop.f32.mrb[3].mxu0 }
 0xc5f   : > { %3556 = vst [vmem:[#allocation19] sm:$0xff] %v3548_v10  ;;  %v4359_v61 = vadd.f32 %v4358_v60, %v4357_v11  ;;  %v3583_v17 = vrot.slane %v3548_v10, 7 }
 0xc61   : > { %v3553_v16 = vadd.f32 %v4359_v61, %v4294_v7 }
 0xc63   : > { %3557 = vst [vmem:[#allocation19 + $0x8] sm:$0xff] %v3553_v16  ;;  %v3584_v18 = vrot.slane %v3553_v16, 6 }
 0xc65   : > { %v3586_v19 = vsel %vm3585_vm4, %v3584_v18, %v3583_v17 }
 0xc66   : > { %4467 = vmatmul.mubr.f32.vlgmr.msra.gmra.mrb[0].mxu1 %v3586_v19 }
 0xd39   : > { %v3654_v0 = vpop.f32.mrb[0].mxu1 }
 0xd3a   : > { %v3655_v22 = vadd.f32 %v4295_v63, %v3654_v0  ;;  %v4468_v23 = vpop.f32.mrb[1].mxu1 }
 0xd3c   : > { %v3658_v24 = vmax.f32 %v3655_v22, 0.0 }
 0xd3e   : > { %4502 = vmatmul.mubr.f32.vlgmr.msra.gmra.mrb[4].mxu0 %v3658_v24 }
 0xe11   : > { %v3748_v26 = vpop.f32.mrb[4].mxu0 }
 0xe12   : > { %v3749_v27 = vadd.f32 %v4296_v25, %v3748_v26  ;;  %v4503_v28 = vpop.f32.mrb[5].mxu0 }
 0xe14   : > { %3752 = vst [vmem:[#allocation20] sm:$0x3] %v3749_v27 }
 0xe15 PF: > { %p4688_p6 = scmp.eq.s32.totalorder %s5663_s26, 1  ;;  %s5518_s19 = smov [#allocation19]  }
 0xe16   : > { %s3759_s24 = sshll.u32 %s5518_s19, 4  ;;  %s3760_s24 = int_to_ptr.vmem [resolvable:$true] %s3759_s24 }
 0xe17   : > { %s5375_s2 = scalar_lea.vmem %s3760_s24, 256  ;;  %p5382_p1 = scmp.lt.s32.totalorder %s3760_s24, %s3760_s24 }
 0xe18   : > { %p5376_p7 = scmp.ne.s32.totalorder %s3760_s24, %s5375_s2  ;;  %p5383_p0 = scmp.lt.s32.totalorder %s5375_s2, %s5375_s2 }
 0xe1a   : > { %p5377_p9 = pnand %p5376_p7, %p4688_p6  ;;  %p5384_p5 = por %p5383_p0, %p5382_p1 }
 0xe1c   : > { %p5378_p2 = pneg %p5377_p9 }
 0xe1e   : > { %p5385_p8 = pnand %p5384_p5, %p5378_p2 }
 0xe20   : > { %5388 = shalt.err (!%p5385_p8)
}
 0xe21   : > { %s6659_s4 = sld [smem:[#allocation56_spill]] }
 0xe27   : > { %s6660_s5 = smov %s6659_s4  ;;  %s5389_s3 = scalar_lea.hbm %s6659_s4, 256 }
 0xe28   : > { %p5390_p3 = scmp.ne.s32.totalorder %s6660_s5, %s5389_s3  ;;  %p5395_p10 = scmp.lt.u32.totalorder %s5389_s3, %s6660_s5 }
 0xe2a   : > { %p5391_p4 = pnand %p5390_p3, %p4688_p6 }
 0xe2c   : > { %p5392_p12 = pneg %p5391_p4 }
 0xe2e   : > { %p5397_p13 = pnand %p5395_p10, %p5392_p12 }
 0xe30   : > { %5400 = shalt.err (!%p5397_p13)
}
 0xe31   : > { %s5519_s10 = smov 128   ;;  %s5520_s22 = smov 8  }
 0xe32   : > { %4631 = dma.vmem_to_hbm [thread:$0]  (%p4688_p6), %s3760_s24, 256, %s6660_s5, [#allocation5], %s5519_s10, %s5519_s10, %s5520_s22  }
 0xe33   : > { %s5521_s7 = smov [#allocation20]  }
 0xe34   : > { %s3773_s28 = sshll.u32 %s5521_s7, 4  ;;  %s3774_s28 = int_to_ptr.vmem [resolvable:$true] %s3773_s28 }
 0xe35   : > { %s5401_s9 = scalar_lea.vmem %s3774_s28, 32  ;;  %p5408_p2 = scmp.lt.s32.totalorder %s3774_s28, %s3774_s28 }
 0xe36   : > { %p5402_p11 = scmp.ne.s32.totalorder %s3774_s28, %s5401_s9  ;;  %p5409_p1 = scmp.lt.s32.totalorder %s5401_s9, %s5401_s9 }
 0xe38   : > { %p5403_p7 = pnand %p5402_p11, %p4688_p6  ;;  %p5410_p0 = por %p5409_p1, %p5408_p2 }
 0xe3a   : > { %p5404_p9 = pneg %p5403_p7 }
 0xe3c   : > { %p5411_p5 = pnand %p5410_p0, %p5404_p9 }
 0xe3e   : > { %5414 = shalt.err (!%p5411_p5)
}
 0xe3f   : > { %s6661_s15 = sld [smem:[#allocation57_spill]] }
 0xe45   : > { %s5415_s12 = scalar_lea.hbm %s6661_s15, 32 }
 0xe46   : > { %p5416_p8 = scmp.ne.s32.totalorder %s6661_s15, %s5415_s12  ;;  %p5421_p12 = scmp.lt.u32.totalorder %s5415_s12, %s6661_s15 }
 0xe48   : > { %p5417_p3 = pnand %p5416_p8, %p4688_p6 }
 0xe4a   : > { %p5418_p4 = pneg %p5417_p3 }
 0xe4c   : > { %p5423_p10 = pnand %p5421_p12, %p5418_p4 }
 0xe4e   : > { %5426 = shalt.err (!%p5423_p10)
}
 0xe4f   : > { %4633 = dma.vmem_to_hbm [thread:$0]  (%p4688_p6), %s3774_s28, 32, %s6661_s15, [#allocation21]  }
 0xe50   : > { %5472 = dma.done.wait (%p4688_p6), [#allocation5], 256  }
 0xe51   : > { %5474 = vsyncadd (%p4688_p6), [#allocation5], 4294967040 }
 0xe52   : > { %5476 = dma.done.wait (%p4688_p6), [#allocation21], 32  }
 0xe53   : > { %5478 = vsyncadd (%p4688_p6), [#allocation21], 4294967264 }
 0xe54 PF: > { %s6662_s25 = sld [smem:[#allocation33_spill]]  ;;  %s6663_s4 = sld [smem:[#allocation31_spill]] }
 0xe55   : > { %s6664_s30 = sld [smem:[#allocation32_spill]]  ;;  %s6665_s24 = sld [smem:[#allocation34_spill]] }
 0xe5a   : > { %p37_p13 = scmp.ge.s32.totalorder %s6662_s25, 4  }
 0xe5c   :  { %39 = sbr.rel (!%p37_p13) target bundleno = 30 (0x1e), region = 245 }
 0xe63   :  { %3790 = vsyncpa [#allocation4], 1 }
 0xe64   :  { %3792 = vsyncpa [#allocation4 + $0x1], 1 }
 0xe65   :  { %3793 = vsyncpa [#allocation7], 1 }
 0xe66   :  { %3794 = vsyncpa [#allocation10], 1 }
 0xe67   :  { %3795 = vsyncpa [#allocation18], 1 }
 0xe68   :  { %3796 = vsyncpa [#allocation5], 1 }
 0xe69   :  { %3798 = vsyncpa [#allocation5 + $0x1], 1 }
 0xe6a   :  { %3799 = vsyncpa [#allocation21], 1 }

// kernel: tpu_custom_call.1
= control target key start
LH: loop header
LB: loop body
LE: loop exit
PB: predicated region body
PF: predicated region fallthrough
CT: control target
= control target key end

     0   :  { %s6501_s0 = inlined_call_operand.hbm [shape: f32[16,16], index: 0, kind: input, shape index: {}]   ;;  %s6502_s1 = inlined_call_operand.hbm [shape: f32[16,256], index: 1, kind: input, shape index: {}]   ;;  %s6503_s2 = inlined_call_operand.hbm [shape: f32[16,256], index: 2, kind: input, shape index: {}]   ;;  %s6504_s3 = inlined_call_operand.hbm [shape: f32[1,256], index: 3, kind: input, shape index: {}]   ;;  %s6505_s4 = inlined_call_operand.hbm [shape: bf16[2,256,768], index: 4, kind: input, shape index: {}]   ;;  %s6506_s5 = inlined_call_operand.vmem [shape: f32[2,1,768], index: 5, kind: input, shape index: {}]   ;;  %s6507_s6 = inlined_call_operand.hbm [shape: bf16[2,256,256], index: 6, kind: input, shape index: {}]   ;;  %s6508_s7 = inlined_call_operand.vmem [shape: f32[2,1,256], index: 7, kind: input, shape index: {}]   ;;  %s6509_s8 = inlined_call_operand.vmem [shape: f32[2,1,256], index: 8, kind: input, shape index: {}]   ;;  %s6510_s9 = inlined_call_operand.vmem [shape: f32[2,1,256], index: 9, kind: input, shape index: {}]   ;;  %s6511_s10 = inlined_call_operand.vmem [shape: f32[2,1,256], index: 10, kind: input, shape index: {}]   ;;  %s6512_s11 = inlined_call_operand.vmem [shape: f32[2,1,256], index: 11, kind: input, shape index: {}]   ;;  %s6513_s12 = inlined_call_operand.hbm [shape: bf16[2,256,256], index: 12, kind: input, shape index: {}]   ;;  %s6514_s13 = inlined_call_operand.vmem [shape: f32[2,1,256], index: 13, kind: input, shape index: {}]   ;;  %s6515_s14 = inlined_call_operand.hbm [shape: bf16[2,256,256], index: 14, kind: input, shape index: {}]   ;;  %s6516_s15 = inlined_call_operand.vmem [shape: f32[2,1,256], index: 15, kind: input, shape index: {}]   ;;  %s6517_s16 = inlined_call_operand.hbm [shape: f32[256,128], index: 16, kind: input, shape index: {}]   ;;  %s6518_s17 = inlined_call_operand.vmem [shape: f32[1,128], index: 17, kind: input, shape index: {}]   ;;  %s6519_s18 = inlined_call_operand.hbm [shape: f32[128,128], index: 18, kind: input, shape index: {}]   ;;  %s6520_s19 = inlined_call_operand.vmem [shape: f32[1,128], index: 19, kind: input, shape index: {}]   ;;  %s6521_s20 = inlined_call_operand.hbm [shape: f32[128,128], index: 20, kind: input, shape index: {}]   ;;  %s6522_s21 = inlined_call_operand.vmem [shape: f32[1,128], index: 21, kind: input, shape index: {}]   ;;  %s6523_s22 = inlined_call_operand.hbm [shape: f32[16,128], index: 22, kind: output, shape index: {0}]   ;;  %s6524_s23 = inlined_call_operand.hbm [shape: f32[2,128], index: 23, kind: output, shape index: {1}]  }
   0x1   :  { %6564 = sst [smem:[#allocation36_spill]] %s6501_s0 }
   0x2   :  { %6565 = sst [smem:[#allocation37_spill]] %s6502_s1 }
   0x3   :  { %6566 = sst [smem:[#allocation38_spill]] %s6503_s2 }
   0x4   :  { %6567 = sst [smem:[#allocation39_spill]] %s6504_s3 }
   0x5   :  { %6568 = sst [smem:[#allocation40_spill]] %s6505_s4 }
   0x6   :  { %6569 = sst [smem:[#allocation41_spill]] %s6506_s5 }
   0x7   :  { %6570 = sst [smem:[#allocation42_spill]] %s6507_s6 }
   0x8   :  { %6571 = sst [smem:[#allocation43_spill]] %s6508_s7 }
   0x9   :  { %6572 = sst [smem:[#allocation44_spill]] %s6509_s8 }
   0xa   :  { %6573 = sst [smem:[#allocation45_spill]] %s6510_s9 }
   0xb   :  { %6574 = sst [smem:[#allocation46_spill]] %s6511_s10 }
   0xc   :  { %6575 = sst [smem:[#allocation47_spill]] %s6512_s11 }
   0xd   :  { %6576 = sst [smem:[#allocation48_spill]] %s6513_s12 }
   0xe   :  { %6577 = sst [smem:[#allocation49_spill]] %s6514_s13 }
   0xf   :  { %6578 = sst [smem:[#allocation50_spill]] %s6515_s14 }
  0x10   :  { %6579 = sst [smem:[#allocation51_spill]] %s6516_s15 }
  0x11   :  { %6580 = sst [smem:[#allocation52_spill]] %s6517_s16 }
  0x12   :  { %6581 = sst [smem:[#allocation53_spill]] %s6518_s17 }
  0x13   :  { %6582 = sst [smem:[#allocation54_spill]] %s6520_s19 }
  0x14   :  { %6583 = sst [smem:[#allocation55_spill]] %s6522_s21 }
  0x15   :  { %6584 = sst [smem:[#allocation56_spill]] %s6523_s22 }
  0x16   :  { %6585 = sst [smem:[#allocation57_spill]] %s6524_s23 }
  0x17   :  { %29 = vsyncpa [#allocation4], 0 }
  0x18   :  { %30 = vsyncpa [#allocation7], 0 }
  0x19   :  { %31 = vsyncpa [#allocation10], 0 }
  0x1a   :  { %32 = vsyncpa [#allocation18], 0 }
  0x1b   :  { %33 = vsyncpa [#allocation5], 0 }
  0x1c   :  { %34 = vsyncpa [#allocation21], 0  ;;  %s5642_s4 = smov 0   ;;  %s5644_s30 = smov 0  }
  0x1d   :  { %s5646_s24 = smov 0   ;;  %s5648_s25 = smov 0  }
  0x1e LB: > { %6586 = sst [smem:[#allocation31_spill]] %s5485_s30  ;;  %s5495_s5 = smov [#allocation3]   ;;  %s5493_s25 = sphi %s5648_s25, %s6662_s25   ;;  %s5489_s24 = sphi %s5646_s24, %s6665_s24   ;;  %s5485_s30 = sphi %s5644_s30, %s6664_s30   ;;  %s5481_s4 = sphi %s5642_s4, %s6663_s4  }
  0x1f   : > { %6587 = sst [smem:[#allocation32_spill]] %s5489_s24  ;;  %s621_s1 = sshll.u32 %s5495_s5, 4  ;;  %s622_s1 = int_to_ptr.vmem [resolvable:$true] %s621_s1 }
  0x20   : > { %s5663_s26 = sadd.s32 4294967295, %s5493_s25   ;;  %p4057_p0 = scmp.ge.s32.totalorder %s5493_s25, 1 }
  0x21   : > { %p6533_p1 = scmp.eq.s32.totalorder %s5663_s26, 0  ;;  %p609_p2 = scmp.lt.s32.totalorder %s5493_s25, 3 }
  0x22   : > { %s5682_s27 = sadd.s32 1, %s5493_s25   ;;  %s6591_s29 = sld [smem:[#allocation36_spill]] }
  0x23   : > { %p5669_p4 = pnand %p4057_p0, %p609_p2  ;;  %6590 = sst [smem:[#allocation33_spill]] %s5682_s27 }
  0x25   : > { %s6588_s2 = scalar_select %p5669_p4, 1, 0 }
  0x26   : > { %p4638_p5 = pneg %p5669_p4 }
  0x28   : > { %p5677_p6 = pnand %p4638_p5, %p6533_p1  ;;  %s5059_s3 = scalar_lea.hbm %s6591_s29, 256 }
  0x29   : > { %p5060_p7 = scmp.ne.s32.totalorder %s6591_s29, %s5059_s3  ;;  %p5066_p11 = scmp.lt.u32.totalorder %s5059_s3, %s6591_s29 }
  0x2a   : > { %s6589_s6 = scalar_select %p5677_p6, 1, 0 }
  0x2b   : > { %p5692_p8 = pneg %p5677_p6 }
  0x2d   : > { %s6592_s23 = scalar_select %p5692_p8, 1, 0 }
  0x2e   : > { %p5062_p9 = pnand %p5692_p8, %p5060_p7 }
  0x30   : > { %p5063_p10 = pneg %p5062_p9 }
  0x32   : > { %p5068_p12 = pnand %p5066_p11, %p5063_p10 }
  0x34   : > { %5071 = shalt.err (!%p5068_p12)
}
  0x35   : > { %s5072_s7 = scalar_lea.vmem %s622_s1, 256  ;;  %p5080_p5 = scmp.lt.s32.totalorder %s622_s1, %s622_s1 }
  0x36   : > { %p5073_p13 = scmp.ne.s32.totalorder %s622_s1, %s5072_s7  ;;  %p5081_p3 = scmp.lt.s32.totalorder %s5072_s7, %s5072_s7 }
  0x38   : > { %p5075_p0 = pnand %p5073_p13, %p5692_p8  ;;  %p5082_p1 = por %p5081_p3, %p5080_p5 }
  0x3a   : > { %p5076_p2 = pneg %p5075_p0 }
  0x3c   : > { %p5083_p4 = pnand %p5082_p1, %p5076_p2 }
  0x3e   : > { %5086 = shalt.err (!%p5083_p4)
}
  0x3f   : > { %s6535_s28 = smov 128   ;;  %s6537_s21 = smov 8  }
  0x40   : > { %4641 = dma.hbm_to_vmem [thread:$0]  (!%p5677_p6), %s6591_s29, 256, %s622_s1, [#allocation4], %s6535_s28, %s6535_s28, %s6537_s21  }
  0x41   : > { %s128_s0 = ssub.s32 %s5493_s25, %s5682_s27  ;;  %s131_s5 = sadd.s32 1, %s5489_s24 }
  0x42   : > { %p129_p1 = scmp.eq.s32.totalorder %s128_s0, 0  ;;  %p138_p3 = scmp.ne.s32.totalorder %s5489_s24, %s5485_s30 }
  0x43   : > { %p139_p4 = scmp.eq.s32.totalorder %s5493_s25, 0  ;;  %p144_p7 = scmp.ne.s32.totalorder %s5485_s30, %s5481_s4 }
  0x44   : > { %s5720_s7 = scalar_select %p129_p1, %s5489_s24, %s131_s5  }
  0x45   : > { %p140_p9 = por %p139_p4, %p138_p3  ;;  %p6594_p10 = scmp.eq.s32.totalorder %s5663_s26, 0 }
  0x46   : > { %6593 = sst [smem:[#allocation34_spill]] %s5720_s7  ;;  %p4680_p12 = scmp.lt.s32.totalorder %s5493_s25, 2 }
  0x47   : > { %p5724_p11 = por %p6594_p10, %p144_p7  ;;  %s720_s17 = sand.u32 1, %s5493_s25  }
  0x48   : > { %s6540_s15 = sand.u32 1, %s5489_s24   ;;  %p5733_p13 = pnand %p4680_p12, %p140_p9 }
  0x49   : > { %s6595_s19 = scalar_select %p5724_p11, 1, 0 }
  0x4a   : > { %s4590_s22 = smul.u32 768, %s6540_s15  ;;  %s6598_s5 = sld [smem:[#allocation40_spill]] }
  0x4b   : > { %6596 = sst [smem:[#allocation35_spill]] %s6595_s19  ;;  %s4591_s3 = smul.u32 12288, %s5493_s25 }
  0x4c   : > { %s6597_s1 = scalar_select %p5733_p13, 1, 0 }
  0x4d   : > { %s724_s21 = scalar_lea.vmem [#allocation11], %s4590_s22  ;;  %s5745_s15 = scalar_lea.sflag [#allocation4], %s720_s17 }
  0x4e   : > { %s731_s29 = sshll.u32 %s724_s21, 4  ;;  %p5751_p2 = pneg %p5733_p13  ;;  %s5743_s29 = int_to_ptr.vmem [resolvable:$true] %s731_s29 }
  0x50   : > { %s5741_s28 = scalar_lea.hbm %s6598_s5, %s4591_s3  ;;  %s5092_s22 = scalar_lea.hbm %s6598_s5, 24576 }
  0x51   : > { %s5087_s7 = scalar_lea.hbm %s5741_s28, 12288  ;;  %p5093_p3 = scmp.lt.u32.totalorder %s5741_s28, %s6598_s5 }
  0x52   : > { %p5088_p0 = scmp.ne.s32.totalorder %s5741_s28, %s5087_s7  ;;  %p5094_p4 = scmp.lt.u32.totalorder %s5092_s22, %s5087_s7 }
  0x53   : > { %s6599_s27 = scalar_select %p5751_p2, 1, 0 }
  0x54   : > { %p5090_p5 = pnand %p5751_p2, %p5088_p0  ;;  %p5095_p7 = por %p5094_p4, %p5093_p3 }
  0x55   : > { %p5096_p9 = scmp.lt.u32.totalorder %s5087_s7, %s5741_s28 }
  0x56   : > { %p5091_p1 = pneg %p5090_p5 }
  0x57   : > { %p5097_p10 = por %p5096_p9, %p5095_p7 }
  0x59   : > { %p5098_p12 = pnand %p5097_p10, %p5091_p1 }
  0x5b   : > { %5101 = shalt.err (!%p5098_p12)
}
  0x5c   : > { %s5102_s17 = scalar_lea.vmem %s5743_s29, 12288  ;;  %s5498_s3 = smov [#allocation11]  }
  0x5d   : > { %p5103_p0 = scmp.ne.s32.totalorder %s5743_s29, %s5102_s17  ;;  %s5107_s4 = sshll.u32 %s5498_s3, 4  ;;  %s5108_s4 = int_to_ptr.vmem [resolvable:$false] %s5107_s4 }
  0x5e   : > { %s5109_s21 = scalar_lea.vmem %s5108_s4, 24576  ;;  %p5110_p6 = scmp.lt.s32.totalorder %s5743_s29, %s5108_s4 }
  0x5f   : > { %p5105_p5 = pnand %p5103_p0, %p5751_p2  ;;  %p5111_p8 = scmp.lt.s32.totalorder %s5109_s21, %s5102_s17 }
  0x61   : > { %p5106_p11 = pneg %p5105_p5  ;;  %p5112_p3 = por %p5111_p8, %p5110_p6 }
  0x63   : > { %p5113_p4 = pnand %p5112_p3, %p5106_p11 }
  0x65   : > { %5116 = shalt.err (!%p5113_p4)
}
  0x66   : > { %s5499_s7 = smov 384   ;;  %s5500_s22 = smov 24  }
  0x67   : > { %4663 = dma.hbm_to_vmem [thread:$0]  (!%p5733_p13), %s5741_s28, 12288, %s5743_s29, %s5745_s15, %s5499_s7, %s5499_s7, %s5500_s22  }
  0x68   : > { %s5501_s0 = smov [#allocation6]   ;;  %s6600_s3 = sand.u32 1, %s5489_s24  }
  0x69   : > { %s634_s5 = sshll.u32 %s5501_s0, 4  ;;  %s5777_s13 = sshll.u32 %s6600_s3, 8  ;;  %s635_s5 = int_to_ptr.vmem [resolvable:$true] %s634_s5 }
  0x6a   : > { %s6601_s21 = sld [smem:[#allocation37_spill]]  ;;  %p6602_p8 = scmp.ne.s32.totalorder %s6592_s23, 0 }
  0x70   : > { %s5117_s11 = scalar_lea.hbm %s6601_s21, 512 }
  0x71   : > { %p5118_p6 = scmp.ne.s32.totalorder %s6601_s21, %s5117_s11  ;;  %p5124_p7 = scmp.lt.u32.totalorder %s5117_s11, %s6601_s21 }
  0x73   : > { %p5120_p11 = pnand %p5118_p6, %p6602_p8 }
  0x75   : > { %p5121_p1 = pneg %p5120_p11 }
  0x77   : > { %p5126_p9 = pnand %p5124_p7, %p5121_p1 }
  0x79   : > { %5129 = shalt.err (!%p5126_p9)
}
  0x7a   : > { %s5130_s29 = scalar_lea.vmem %s635_s5, 512  ;;  %p5138_p5 = scmp.lt.s32.totalorder %s635_s5, %s635_s5 }
  0x7b   : > { %p5131_p10 = scmp.ne.s32.totalorder %s635_s5, %s5130_s29  ;;  %p5139_p3 = scmp.lt.s32.totalorder %s5130_s29, %s5130_s29 }
  0x7d   : > { %p5133_p12 = pnand %p5131_p10, %p6602_p8  ;;  %p5140_p4 = por %p5139_p3, %p5138_p5 }
  0x7f   : > { %p5134_p0 = pneg %p5133_p12 }
  0x81   : > { %p5141_p13 = pnand %p5140_p4, %p5134_p0 }
  0x83   : > { %5144 = shalt.err (!%p5141_p13)
}
  0x84   : > { %s6553_s9 = smov 256   ;;  %s6554_s8 = smov 16  }
  0x85   : > { %p6603_p6 = scmp.ne.s32.totalorder %s6589_s6, 0  ;;  %s5801_s19 = sshll.u32 %s5493_s25, 12 }
  0x86   : > { %s6604_s22 = sld [smem:[#allocation42_spill]]  ;;  %s752_s3 = scalar_lea.vmem [#allocation12], %s5777_s13 }
  0x87   : > { %4644 = dma.hbm_to_vmem [thread:$0]  (!%p6603_p6), %s6601_s21, 512, %s635_s5, [#allocation7], %s6553_s9, %s6553_s9, %s6554_s8  }
  0x88   : > { %s759_s17 = sshll.u32 %s752_s3, 4  ;;  %s5810_s17 = int_to_ptr.vmem [resolvable:$true] %s759_s17 }
  0x8c   : > { %s5807_s0 = scalar_lea.hbm %s6604_s22, %s5801_s19  ;;  %s5150_s29 = scalar_lea.hbm %s6604_s22, 8192 }
  0x8d   : > { %s5145_s4 = scalar_lea.hbm %s5807_s0, 4096  ;;  %p5151_p7 = scmp.lt.u32.totalorder %s5807_s0, %s6604_s22 }
  0x8e   : > { %p5146_p13 = scmp.ne.s32.totalorder %s5807_s0, %s5145_s4  ;;  %p5152_p9 = scmp.lt.u32.totalorder %s5150_s29, %s5145_s4 }
  0x8f   : > { %p5154_p12 = scmp.lt.u32.totalorder %s5145_s4, %s5807_s0 }
  0x90   : > { %p5148_p11 = pnand %p5146_p13, %p5751_p2  ;;  %p5153_p10 = por %p5152_p9, %p5151_p7 }
  0x92   : > { %p5149_p1 = pneg %p5148_p11  ;;  %p5155_p0 = por %p5154_p12, %p5153_p10 }
  0x94   : > { %p5156_p5 = pnand %p5155_p0, %p5149_p1 }
  0x96   : > { %5159 = shalt.err (!%p5156_p5)
}
  0x97   : > { %s5160_s28 = scalar_lea.vmem %s5810_s17, 4096  ;;  %s5504_s7 = smov [#allocation12]  }
  0x98   : > { %p5161_p3 = scmp.ne.s32.totalorder %s5810_s17, %s5160_s28  ;;  %s5165_s3 = sshll.u32 %s5504_s7, 4  ;;  %s5166_s3 = int_to_ptr.vmem [resolvable:$false] %s5165_s3 }
  0x99   : > { %s5167_s25 = scalar_lea.vmem %s5166_s3, 8192  ;;  %p5168_p11 = scmp.lt.s32.totalorder %s5810_s17, %s5166_s3 }
  0x9a   : > { %p5163_p4 = pnand %p5161_p3, %p5751_p2  ;;  %p5169_p6 = scmp.lt.s32.totalorder %s5167_s25, %s5160_s28 }
  0x9c   : > { %p5164_p13 = pneg %p5163_p4  ;;  %p5170_p7 = por %p5169_p6, %p5168_p11 }
  0x9e   : > { %p5171_p9 = pnand %p5170_p7, %p5164_p13 }
  0xa0   : > { %5174 = shalt.err (!%p5171_p9)
}
  0xa1   : > { %p6605_p1 = scmp.ne.s32.totalorder %s6597_s1, 0  ;;  %s6606_s4 = smov 8  }
  0xa2   : > { %s6607_s5 = smov 128   ;;  %s5505_s29 = smov [#allocation8]  }
  0xa3   : > { %4666 = dma.hbm_to_vmem [thread:$0]  (!%p6605_p1), %s5807_s0, 4096, %s5810_s17, %s5745_s15, %s6607_s5, %s6607_s5, %s6606_s4  }
  0xa4   : > { %s647_s10 = sshll.u32 %s5505_s29, 4  ;;  %s5506_s11 = smov [#allocation9]   ;;  %s648_s10 = int_to_ptr.vmem [resolvable:$true] %s647_s10 }
  0xa5   : > { %s661_s7 = sshll.u32 %s5506_s11, 4  ;;  %s6608_s25 = sld [smem:[#allocation38_spill]]  ;;  %s662_s7 = int_to_ptr.vmem [resolvable:$true] %s661_s7 }
  0xab   : > { %s6609_s9 = smov %s6608_s25  ;;  %s5175_s8 = scalar_lea.hbm %s6608_s25, 512 }
  0xac   : > { %p5176_p6 = scmp.ne.s32.totalorder %s6609_s9, %s5175_s8  ;;  %p5182_p0 = scmp.lt.u32.totalorder %s5175_s8, %s6609_s9 }
  0xae   : > { %p5178_p10 = pnand %p5176_p6, %p6602_p8 }
  0xb0   : > { %p5179_p12 = pneg %p5178_p10 }
  0xb2   : > { %p5184_p5 = pnand %p5182_p0, %p5179_p12 }
  0xb4   : > { %5187 = shalt.err (!%p5184_p5)
}
  0xb5   : > { %s5188_s0 = scalar_lea.vmem %s648_s10, 512  ;;  %p5196_p11 = scmp.lt.s32.totalorder %s648_s10, %s648_s10 }
  0xb6   : > { %p5189_p3 = scmp.ne.s32.totalorder %s648_s10, %s5188_s0  ;;  %p5197_p7 = scmp.lt.s32.totalorder %s5188_s0, %s5188_s0 }
  0xb8   : > { %p5191_p4 = pnand %p5189_p3, %p6602_p8  ;;  %p5198_p9 = por %p5197_p7, %p5196_p11 }
  0xba   : > { %p5192_p13 = pneg %p5191_p4 }
  0xbc   : > { %p5199_p1 = pnand %p5198_p9, %p5192_p13 }
  0xbe   : > { %5202 = shalt.err (!%p5199_p1)
}
  0xbf   : > { %p6610_p6 = scmp.ne.s32.totalorder %s6589_s6, 0  ;;  %s6611_s21 = smov 16  }
  0xc0   : > { %s6612_s22 = smov 256   ;;  %s6613_s29 = sld [smem:[#allocation39_spill]] }
  0xc1   : > { %4647 = dma.hbm_to_vmem [thread:$0]  (!%p6610_p6), %s6609_s9, 512, %s648_s10, [#allocation7], %s6612_s22, %s6612_s22, %s6611_s21  }
  0xc6   : > { %s5203_s11 = scalar_lea.hbm %s6613_s29, 32 }
  0xc7   : > { %p5204_p10 = scmp.ne.s32.totalorder %s6613_s29, %s5203_s11  ;;  %p5210_p0 = scmp.lt.u32.totalorder %s5203_s11, %s6613_s29 }
  0xc9   : > { %p5206_p1 = pnand %p5204_p10, %p6602_p8 }
  0xcb   : > { %p5207_p12 = pneg %p5206_p1 }
  0xcd   : > { %p5212_p5 = pnand %p5210_p0, %p5207_p12 }
  0xcf   : > { %5215 = shalt.err (!%p5212_p5)
}
  0xd0   : > { %s5216_s30 = scalar_lea.vmem %s662_s7, 32  ;;  %p5224_p11 = scmp.lt.s32.totalorder %s662_s7, %s662_s7 }
  0xd1   : > { %p5217_p3 = scmp.ne.s32.totalorder %s662_s7, %s5216_s30  ;;  %p5225_p7 = scmp.lt.s32.totalorder %s5216_s30, %s5216_s30 }
  0xd3   : > { %p5219_p4 = pnand %p5217_p3, %p6602_p8  ;;  %p5226_p9 = por %p5225_p7, %p5224_p11 }
  0xd5   : > { %p5220_p13 = pneg %p5219_p4 }
  0xd7   : > { %p5227_p2 = pnand %p5226_p9, %p5220_p13 }
  0xd9   : > { %5230 = shalt.err (!%p5227_p2)
}
  0xda   : > { %4650 = dma.hbm_to_vmem [thread:$0]  (!%p6610_p6), %s6613_s29, 32, %s662_s7, [#allocation10]  }
  0xdb   : > { %s6614_s12 = sld [smem:[#allocation48_spill]]  ;;  %s808_s17 = scalar_lea.vmem [#allocation13], %s5777_s13 }
  0xdc   : > { %s815_s11 = sshll.u32 %s808_s17, 4  ;;  %p6615_p10 = scmp.ne.s32.totalorder %s6599_s27, 0  ;;  %s5883_s11 = int_to_ptr.vmem [resolvable:$true] %s815_s11 }
  0xe1   : > { %s5880_s8 = scalar_lea.hbm %s6614_s12, %s5801_s19  ;;  %s5236_s25 = scalar_lea.hbm %s6614_s12, 8192 }
  0xe2   : > { %s5231_s3 = scalar_lea.hbm %s5880_s8, 4096  ;;  %p5237_p0 = scmp.lt.u32.totalorder %s5880_s8, %s6614_s12 }
  0xe3   : > { %p5232_p2 = scmp.ne.s32.totalorder %s5880_s8, %s5231_s3  ;;  %p5238_p5 = scmp.lt.u32.totalorder %s5236_s25, %s5231_s3 }
  0xe4   : > { %p5240_p4 = scmp.lt.u32.totalorder %s5231_s3, %s5880_s8 }
  0xe5   : > { %p5234_p1 = pnand %p5232_p2, %p6615_p10  ;;  %p5239_p3 = por %p5238_p5, %p5237_p0 }
  0xe7   : > { %p5235_p12 = pneg %p5234_p1  ;;  %p5241_p13 = por %p5240_p4, %p5239_p3 }
  0xe9   : > { %p5242_p11 = pnand %p5241_p13, %p5235_p12 }
  0xeb   : > { %5245 = shalt.err (!%p5242_p11)
}
  0xec   : > { %s5246_s10 = scalar_lea.vmem %s5883_s11, 4096  ;;  %s5507_s21 = smov [#allocation13]  }
  0xed   : > { %p5247_p7 = scmp.ne.s32.totalorder %s5883_s11, %s5246_s10  ;;  %s5251_s22 = sshll.u32 %s5507_s21, 4  ;;  %s5252_s22 = int_to_ptr.vmem [resolvable:$false] %s5251_s22 }
  0xee   : > { %s5253_s24 = scalar_lea.vmem %s5252_s22, 8192  ;;  %p5254_p1 = scmp.lt.s32.totalorder %s5883_s11, %s5252_s22 }
  0xef   : > { %p5249_p9 = pnand %p5247_p7, %p6615_p10  ;;  %p5255_p6 = scmp.lt.s32.totalorder %s5253_s24, %s5246_s10 }
  0xf1   : > { %p5250_p2 = pneg %p5249_p9  ;;  %p5256_p0 = por %p5255_p6, %p5254_p1 }
  0xf3   : > { %p5257_p5 = pnand %p5256_p0, %p5250_p2 }
  0xf5   : > { %5260 = shalt.err (!%p5257_p5)
}
  0xf6   : > { %p6616_p12 = scmp.ne.s32.totalorder %s6597_s1, 0  ;;  %s5508_s17 = smov [#allocation15]  }
  0xf7   : > { %s671_s3 = sshll.u32 %s5508_s17, 4  ;;  %s5509_s28 = smov [#allocation16]   ;;  %s672_s3 = int_to_ptr.vmem [resolvable:$true] %s671_s3 }
  0xf8   : > { %4669 = dma.hbm_to_vmem [thread:$0]  (!%p6616_p12), %s5880_s8, 4096, %s5883_s11, %s5745_s15, %s6607_s5, %s6607_s5, %s6606_s4  }
  0xf9   : > { %s687_s7 = sshll.u32 %s5509_s28, 4  ;;  %s6617_s16 = sld [smem:[#allocation52_spill]]  ;;  %s688_s7 = int_to_ptr.vmem [resolvable:$true] %s687_s7 }
  0xff   : > { %s5261_s30 = scalar_lea.hbm %s6617_s16, 4096 }
 0x100   : > { %p5262_p6 = scmp.ne.s32.totalorder %s6617_s16, %s5261_s30  ;;  %p5268_p13 = scmp.lt.u32.totalorder %s5261_s30, %s6617_s16 }
 0x102   : > { %p5264_p3 = pnand %p5262_p6, %p6602_p8 }
 0x104   : > { %p5265_p4 = pneg %p5264_p3 }
 0x106   : > { %p5270_p11 = pnand %p5268_p13, %p5265_p4 }
 0x108   : > { %5273 = shalt.err (!%p5270_p11)
}
 0x109   : > { %s5274_s8 = scalar_lea.vmem %s672_s3, 4096  ;;  %p5282_p1 = scmp.lt.s32.totalorder %s672_s3, %s672_s3 }
 0x10a   : > { %p5275_p7 = scmp.ne.s32.totalorder %s672_s3, %s5274_s8  ;;  %p5283_p0 = scmp.lt.s32.totalorder %s5274_s8, %s5274_s8 }
 0x10c   : > { %p5277_p9 = pnand %p5275_p7, %p6602_p8  ;;  %p5284_p5 = por %p5283_p0, %p5282_p1 }
 0x10e   : > { %p5278_p2 = pneg %p5277_p9 }
 0x110   : > { %p5285_p12 = pnand %p5284_p5, %p5278_p2 }
 0x112   : > { %5288 = shalt.err (!%p5285_p12)
}
 0x113   : > { %p6618_p6 = scmp.ne.s32.totalorder %s6589_s6, 0  ;;  %s5289_s0 = scalar_lea.hbm %s6519_s18, 2048 }
 0x114   : > { %p5290_p3 = scmp.ne.s32.totalorder %s6519_s18, %s5289_s0  ;;  %p5296_p13 = scmp.lt.u32.totalorder %s5289_s0, %s6519_s18 }
 0x115   : > { %4653 = dma.hbm_to_vmem [thread:$0]  (!%p6618_p6), %s6617_s16, 4096, %s672_s3, [#allocation7], %s6607_s5, %s6607_s5, %s6606_s4  }
 0x116   : > { %p5292_p12 = pnand %p5290_p3, %p6602_p8 }
 0x118   : > { %p5293_p4 = pneg %p5292_p12 }
 0x11a   : > { %p5298_p11 = pnand %p5296_p13, %p5293_p4 }
 0x11c   : > { %5301 = shalt.err (!%p5298_p11)
}
 0x11d   : > { %s5302_s24 = scalar_lea.vmem %s688_s7, 2048  ;;  %p5310_p1 = scmp.lt.s32.totalorder %s688_s7, %s688_s7 }
 0x11e   : > { %p5303_p7 = scmp.ne.s32.totalorder %s688_s7, %s5302_s24  ;;  %p5311_p0 = scmp.lt.s32.totalorder %s5302_s24, %s5302_s24 }
 0x120   : > { %p5305_p9 = pnand %p5303_p7, %p6602_p8  ;;  %p5312_p5 = por %p5311_p0, %p5310_p1 }
 0x122   : > { %p5306_p2 = pneg %p5305_p9 }
 0x124   : > { %p5313_p10 = pnand %p5312_p5, %p5306_p2 }
 0x126   : > { %5316 = shalt.err (!%p5313_p10)
}
 0x127   : > { %4656 = dma.hbm_to_vmem [thread:$0]  (!%p6618_p6), %s6519_s18, 2048, %s688_s7, [#allocation10], %s6607_s5, %s6607_s5, %s6606_s4  }
 0x128   : > { %s5510_s11 = smov [#allocation17]   ;;  %s6619_s14 = sld [smem:[#allocation50_spill]] }
 0x129   : > { %s703_s17 = sshll.u32 %s5510_s11, 4  ;;  %s5317_s21 = scalar_lea.hbm %s6521_s20, 2048  ;;  %s704_s17 = int_to_ptr.vmem [resolvable:$true] %s703_s17 }
 0x12a   : > { %p5318_p10 = scmp.ne.s32.totalorder %s6521_s20, %s5317_s21  ;;  %p5324_p4 = scmp.lt.u32.totalorder %s5317_s21, %s6521_s20 }
 0x12c   : > { %p5320_p3 = pnand %p5318_p10, %p6602_p8 }
 0x12e   : > { %s5956_s0 = scalar_lea.hbm %s6619_s14, %s5801_s19  ;;  %p5321_p12 = pneg %p5320_p3 }
 0x130   : > { %p5326_p13 = pnand %p5324_p4, %p5321_p12 }
 0x132   : > { %5329 = shalt.err (!%p5326_p13)
}
 0x133   : > { %s5330_s8 = scalar_lea.vmem %s704_s17, 2048  ;;  %p5338_p2 = scmp.lt.s32.totalorder %s704_s17, %s704_s17 }
 0x134   : > { %p5331_p11 = scmp.ne.s32.totalorder %s704_s17, %s5330_s8  ;;  %p5339_p1 = scmp.lt.s32.totalorder %s5330_s8, %s5330_s8 }
 0x136   : > { %p5333_p7 = pnand %p5331_p11, %p6602_p8  ;;  %p5340_p0 = por %p5339_p1, %p5338_p2 }
 0x138   : > { %p5334_p9 = pneg %p5333_p7 }
 0x13a   : > { %p5341_p5 = pnand %p5340_p0, %p5334_p9 }
 0x13c   : > { %5344 = shalt.err (!%p5341_p5)
}
 0x13d   : > { %4659 = dma.hbm_to_vmem [thread:$0]  (!%p6618_p6), %s6521_s20, 2048, %s704_s17, [#allocation18], %s6607_s5, %s6607_s5, %s6606_s4  }
 0x13e   : > { %s836_s23 = scalar_lea.vmem [#allocation14], %s5777_s13  ;;  %s5345_s25 = scalar_lea.hbm %s5956_s0, 4096 }
 0x13f   : > { %s843_s28 = sshll.u32 %s836_s23, 4  ;;  %p5346_p8 = scmp.ne.s32.totalorder %s5956_s0, %s5345_s25  ;;  %s5980_s28 = int_to_ptr.vmem [resolvable:$true] %s843_s28 }
 0x140   : > { %p6620_p10 = scmp.ne.s32.totalorder %s6599_s27, 0  ;;  %s5350_s10 = scalar_lea.hbm %s6619_s14, 8192 }
 0x141   : > { %p5351_p4 = scmp.lt.u32.totalorder %s5956_s0, %s6619_s14  ;;  %p5352_p13 = scmp.lt.u32.totalorder %s5350_s10, %s5345_s25 }
 0x142   : > { %p5348_p3 = pnand %p5346_p8, %p6620_p10  ;;  %p5354_p6 = scmp.lt.u32.totalorder %s5345_s25, %s5956_s0 }
 0x143   : > { %p5353_p11 = por %p5352_p13, %p5351_p4 }
 0x144   : > { %p5349_p12 = pneg %p5348_p3 }
 0x145   : > { %p5355_p7 = por %p5354_p6, %p5353_p11 }
 0x147   : > { %p5356_p9 = pnand %p5355_p7, %p5349_p12 }
 0x149   : > { %5359 = shalt.err (!%p5356_p9)
}
 0x14a   : > { %s5360_s13 = scalar_lea.vmem %s5980_s28, 4096  ;;  %s5511_s17 = smov [#allocation14]  }
 0x14b   : > { %p5361_p2 = scmp.ne.s32.totalorder %s5980_s28, %s5360_s13  ;;  %s5365_s24 = sshll.u32 %s5511_s17, 4  ;;  %s5366_s24 = int_to_ptr.vmem [resolvable:$false] %s5365_s24 }
 0x14c   : > { %s5367_s7 = scalar_lea.vmem %s5366_s24, 8192  ;;  %p5368_p5 = scmp.lt.s32.totalorder %s5980_s28, %s5366_s24 }
 0x14d   : > { %p5363_p1 = pnand %p5361_p2, %p6620_p10  ;;  %p5369_p8 = scmp.lt.s32.totalorder %s5367_s7, %s5360_s13 }
 0x14f   : > { %p5364_p0 = pneg %p5363_p1  ;;  %p5370_p3 = por %p5369_p8, %p5368_p5 }
 0x151   : > { %p5371_p4 = pnand %p5370_p3, %p5364_p0 }
 0x153   : > { %5374 = shalt.err (!%p5371_p4)
}
 0x154   : > { %p6621_p12 = scmp.ne.s32.totalorder %s6597_s1, 0  ;;  %p6622_p10 = scmp.ne.s32.totalorder %s6588_s2, 0 }
 0x155   : > { %p6623_p13 = scmp.eq.s32.totalorder (!%p6622_p10), %s5663_s26, 0 }
 0x156   : > { %4672 = dma.hbm_to_vmem [thread:$0]  (!%p6621_p12), %s5956_s0, 4096, %s5980_s28, %s5745_s15, %s6607_s5, %s6607_s5, %s6606_s4  }
 0x157   : > { %862 = sbr.rel (%p6622_p10) target bundleno = 3668 (0xe54), region = 108 }
 0x15e   : > { %5444 = dma.done.wait (%p6623_p13), [#allocation4], 256   ;;  %p6624_p11 = pmov %p6623_p13 }
 0x160   : > { %5446 = vsyncadd (%p6624_p11), [#allocation4], 4294967040  ;;  %p6625_p6 = pmov %p6624_p11 }
 0x162   : > { %5448 = dma.done.wait (%p6625_p6), [#allocation7], 1024   ;;  %p6626_p7 = pmov %p6625_p6 }
 0x163   : > { %p6627_p9 = pmov %p6625_p6 }
 0x164   : > { %5450 = vsyncadd (%p6626_p7), [#allocation7], 4294966272 }
 0x165   : > { %5452 = dma.done.wait (%p6627_p9), [#allocation10], 32   ;;  %p6628_p2 = pmov %p6625_p6 }
 0x166   : > { %s6629_s15 = sld [smem:[#allocation31_spill]]  ;;  %s6630_s2 = sld [smem:[#allocation35_spill]] }
 0x167   : > { %5454 = vsyncadd (%p6628_p2), [#allocation10], 4294967264  ;;  %s880_s27 = sand.u32 1, %s5663_s26  }
 0x168   : > { %s881_s5 = scalar_lea.sflag [#allocation4], %s880_s27 }
 0x16c   : > { %s882_s1 = sand.u32 1, %s6629_s15   ;;  %p6631_p1 = scmp.ne.s32.totalorder %s6630_s2, 0 }
 0x16d   : > { %s4592_s4 = smul.u32 768, %s882_s1 }
 0x16f   : > { %s6023_s0 = scalar_lea.vmem [#allocation11], %s4592_s4 }
 0x170   : > { %5456 = dma.done.wait (%p6631_p1), %s881_s5, 24576  }
 0x171   : > { %5458 = vsyncadd (%p6631_p1), %s881_s5, 4294942720  ;;  %s4081_s3 = sshll.u32 %s882_s1, 8  ;;  %p6632_p0 = pmov %p6628_p2 }
 0x172   : > { %s6029_s8 = scalar_lea.vmem [#allocation12], %s4081_s3  ;;  %s6031_s19 = scalar_lea.vmem [#allocation13], %s4081_s3 }
 0x173   : > { %s6033_s11 = scalar_lea.vmem [#allocation14], %s4081_s3 }
 0x174   : > { %5460 = dma.done.wait (%p6632_p0), [#allocation7], 4096   ;;  %p6633_p5 = pmov %p6632_p0 }
 0x175   : > { %p6634_p8 = pmov %p6632_p0 }
 0x176   : > { %5462 = vsyncadd (%p6633_p5), [#allocation7], 4294963200 }
 0x177   : > { %5464 = dma.done.wait (%p6634_p8), [#allocation10], 2048   ;;  %p6635_p3 = pmov %p6632_p0 }
 0x178   : > { %p6636_p4 = pmov %p6632_p0 }
 0x179   : > { %5466 = vsyncadd (%p6635_p3), [#allocation10], 4294965248 }
 0x17a   : > { %5468 = dma.done.wait (%p6636_p4), [#allocation18], 2048   ;;  %p6637_p12 = pmov %p6632_p0 }
 0x17b   : > { %p1028_p10 = scmp.lt.s32.totalorder %s5663_s26, 1  ;;  %s6640_s2 = sld [smem:[#allocation41_spill]] }
 0x17c   : > { %5470 = vsyncadd (%p6637_p12), [#allocation18], 4294965248  ;;  %s6641_s5 = sld [smem:[#allocation45_spill]]  ;;  %s6642_s30 = sld [smem:[#allocation46_spill]] }
 0x17d   : > { %s1029_s23 = scalar_select %p1028_p10, %s5663_s26, 1 }
 0x17e   : > { %s6643_s10 = sld [smem:[#allocation47_spill]]  ;;  %s6644_s13 = sld [smem:[#allocation49_spill]] }
 0x17f   : > { %s4593_s28 = smul.u32 6, %s1029_s23  ;;  %s6049_s25 = sshll.u32 %s1029_s23, 1 }
 0x180   : > { %p6646_p13 = scmp.ne.s32.totalorder %s5663_s26, 0 }
 0x181   : > { %s6062_s27 = scalar_lea.vmem %s6640_s2, %s4593_s28  ;;  %s6645_s28 = sld [smem:[#allocation51_spill]]  ;;  %v1067_v0 = vld [vmem:[#allocation8 + $0x8] sm:$0xff] (!%p6646_p13)  ;;  %v1069_v1 = vld [vmem:[#allocation8 + $0x18] sm:$0xff] (!%p6646_p13)  ;;  %v1066_v2 = vld [vmem:[#allocation8] sm:$0xff] (!%p6646_p13)  ;;  %v5512_v5 = vmov (!%p6646_p13), 0.0   ;;  %vm1082_vm0 = vcmask (!%p6646_p13), 130048   ;;  %v1072_v9 = vlaneseq (!%p6646_p13) }
 0x182   : > { %s1043_s3 = scalar_lea.vmem %s6641_s5, %s6049_s25  ;;  %s1047_s9 = scalar_lea.vmem %s6642_s30, %s6049_s25  ;;  %v4504_v3 = vpack.c.bf16 (!%p6646_p13), %v1069_v1, %v1067_v0  ;;  %v1068_v4 = vld [vmem:[#allocation8 + $0x10] sm:$0xff] (!%p6646_p13)  ;;  %1153 = vmatprep.mubr.f32.mxu0 (!%p6646_p13), %v5512_v5  ;;  %1159 = vmatprep.mubr.f32.mxu1 (!%p6646_p13), %v5512_v5  ;;  %v1065_v8 = vld [vmem:[#allocation3 + $0x8] sm:$0xff] (!%p6646_p13)  ;;  %v1070_v12 = vld [vmem:[#allocation9] sm:$0x3] (!%p6646_p13) }
 0x183   : > { %1063 = sbr.rel (%p6646_p13) target bundleno = 610 (0x262), region = 156  ;;  %v4506_v6 = vpack.c.bf16 (!%p6646_p13), %v1068_v4, %v1066_v2  ;;  %v1064_v7 = vld [vmem:[#allocation3] sm:$0xff] (!%p6646_p13)  ;;  %v1073_v10 = vshrl.u32 (!%p6646_p13), %v1072_v9, 7  ;;  %v1166_v17 = vld [vmem:[#allocation6] sm:$0xff] (!%p6646_p13)  ;;  %v1167_v23 = vld [vmem:[#allocation6 + $0x8] sm:$0xff] (!%p6646_p13) }
 0x184   : > { %s1051_s21 = scalar_lea.vmem %s6643_s10, %s6049_s25  ;;  %s1055_s17 = scalar_lea.vmem %s6644_s13, %s6049_s25  ;;  %4505 = vmatprep.subr.bf16.mxu0 (!%p6646_p13), %v4504_v3  ;;  %4588 = vmatprep.subr.bf16.mxu1 (!%p6646_p13), %v4504_v3  ;;  %v1168_v19 = vld [vmem:[#allocation6 + $0x10] sm:$0xff] (!%p6646_p13)  ;;  %v1169_v25 = vld [vmem:[#allocation6 + $0x18] sm:$0xff] (!%p6646_p13) }
 0x185   : > { %4507 = vmatpush1.bf16.msra.mxu0 (!%p6646_p13), %v4506_v6  ;;  %4589 = vmatpush1.bf16.msra.mxu1 (!%p6646_p13), %v4506_v6  ;;  %v1074_v11 = vsub.s32 (!%p6646_p13), 0, %v1073_v10  ;;  %v1078_v13 = vsub.s32 (!%p6646_p13), 1, %v1073_v10 }
 0x187   : > { %s1059_s15 = scalar_lea.vmem %s6645_s28, %s6049_s25  ;;  %v1075_v14 = vrot.slane (!%p6646_p13), %v1070_v12, %v1074_v11  ;;  %v1079_v15 = vrot.slane (!%p6646_p13), %v1070_v12, %v1078_v13 }
 0x188   : > { %4095 = vmatmul.mubr.msk.f32.vlgmr.msra.gmra.mrb[0].mxu0 (!%p6646_p13), %vm1082_vm0, %v1064_v7  ;;  %4096 = vmatmul.mubr.msk.f32.vlgmr.msra.gmra.mrb[0].mxu1 (!%p6646_p13), %vm1082_vm0, %v1065_v8 }
 0x25b   : > { %v1155_v16 = vpop.f32.mrb[0].mxu0  ;;  %v1161_v18 = vpop.f32.mrb[0].mxu1 }
 0x25c   : > { %v1156_v20 = vadd.f32 %v1155_v16, %v1075_v14  ;;  %v1162_v21 = vadd.f32 %v1161_v18, %v1075_v14  ;;  %v1157_v22 = vpop.f32.mrb[1].mxu0  ;;  %v1163_v24 = vpop.f32.mrb[1].mxu1 }
 0x25d   : > { %v1158_v26 = vadd.f32 %v1157_v22, %v1079_v15  ;;  %v1164_v27 = vadd.f32 %v1163_v24, %v1079_v15 }
 0x25e   : > { %v1170_v28 = vadd.f32 %v1166_v17, %v1156_v20  ;;  %v1172_v29 = vadd.f32 %v1168_v19, %v1162_v21 }
 0x25f   : > { %v1171_v30 = vadd.f32 %v1167_v23, %v1158_v26  ;;  %v1173_v31 = vadd.f32 %v1169_v25, %v1164_v27 }
 0x260   : > { %1174 = vst [vmem:[#allocation2] sm:$0xff] %v1170_v28  ;;  %1176 = vst [vmem:[#allocation2 + $0x10] sm:$0xff] %v1172_v29 }
 0x261   : > { %1175 = vst [vmem:[#allocation2 + $0x8] sm:$0xff] %v1171_v30  ;;  %1177 = vst [vmem:[#allocation2 + $0x18] sm:$0xff] %v1173_v31 }
 0x262 PF: > { %v4747_v32 = vld [vmem:[%s6023_s0 + $0xc] ss:$24 sps:$4 sm:$0xff]   ;;  %v4749_v33 = vld [vmem:[%s6023_s0 + $0x8] ss:$24 sps:$4 sm:$0xff]   ;;  %v4753_v36 = vld [vmem:[%s6023_s0 + $0x3c] ss:$24 sps:$4 sm:$0xff]  }
 0x263   : > { %1835 = vmatprep.subr.bf16.mxu1 %v4747_v32  ;;  %v4750_v34 = vld [vmem:[%s6023_s0 + $0x4] ss:$24 sps:$4 sm:$0xff]   ;;  %v4752_v35 = vld [vmem:[%s6023_s0] ss:$24 sps:$4 sm:$0xff]   ;;  %v4756_v38 = vld [vmem:[%s6023_s0 + $0x34] ss:$24 sps:$4 sm:$0xff]  }
 0x264   : > { %1836 = vmatpush1.bf16.msra.mxu1 %v4749_v33  ;;  %v4755_v37 = vld [vmem:[%s6023_s0 + $0x38] ss:$24 sps:$4 sm:$0xff]   ;;  %1792 = vmatprep.subr.bf16.mxu0 %v4750_v34  ;;  %v4759_v40 = vld [vmem:[%s6023_s0 + $0x6c] ss:$24 sps:$4 sm:$0xff]   ;;  %v4761_v41 = vld [vmem:[%s6023_s0 + $0x68] ss:$24 sps:$4 sm:$0xff]  }
 0x265   : > { %1793 = vmatpush1.bf16.msra.mxu0 %v4752_v35  ;;  %1837 = vmatprep.subr.bf16.mxu1 %v4753_v36  ;;  %v4758_v39 = vld [vmem:[%s6023_s0 + $0x30] ss:$24 sps:$4 sm:$0xff]   ;;  %v4762_v42 = vld [vmem:[%s6023_s0 + $0x64] ss:$24 sps:$4 sm:$0xff]   ;;  %v4764_v44 = vld [vmem:[%s6023_s0 + $0x60] ss:$24 sps:$4 sm:$0xff]  }
 0x266   : > { %1794 = vmatprep.subr.bf16.mxu0 %v4756_v38  ;;  %v4765_v43 = vld [vmem:[%s6023_s0 + $0x9c] ss:$24 sps:$4 sm:$0xff]   ;;  %v4767_v46 = vld [vmem:[%s6023_s0 + $0x98] ss:$24 sps:$4 sm:$0xff]   ;;  %v4771_v47 = vld [vmem:[%s6023_s0 + $0xcc] ss:$24 sps:$4 sm:$0xff]  }
 0x267   : > { %v4768_v45 = vld [vmem:[%s6023_s0 + $0x94] ss:$24 sps:$4 sm:$0xff]   ;;  %v4770_v48 = vld [vmem:[%s6023_s0 + $0x90] ss:$24 sps:$4 sm:$0xff]   ;;  %v4774_v49 = vld [vmem:[%s6023_s0 + $0xc4] ss:$24 sps:$4 sm:$0xff]  }
 0x268   : > { %1838 = vmatpush1.bf16.msra.mxu1 %v4755_v37  ;;  %v4773_v50 = vld [vmem:[%s6023_s0 + $0xc8] ss:$24 sps:$4 sm:$0xff]   ;;  %v4777_v51 = vld [vmem:[%s6023_s0 + $0xfc] ss:$24 sps:$4 sm:$0xff]   ;;  %v4779_v54 = vld [vmem:[%s6023_s0 + $0xf8] ss:$24 sps:$4 sm:$0xff]  }
 0x269   : > { %1839 = vmatprep.subr.bf16.mxu1 %v4759_v40  ;;  %1795 = vmatpush1.bf16.msra.mxu0 %v4758_v39  ;;  %v4776_v52 = vld [vmem:[%s6023_s0 + $0xc0] ss:$24 sps:$4 sm:$0xff]   ;;  %v4780_v53 = vld [vmem:[%s6023_s0 + $0xf4] ss:$24 sps:$4 sm:$0xff]   ;;  %v4782_v56 = vld [vmem:[%s6023_s0 + $0xf0] ss:$24 sps:$4 sm:$0xff]  }
 0x26a   : > { %1796 = vmatprep.subr.bf16.mxu0 %v4762_v42  ;;  %v4783_v55 = vld [vmem:[%s6023_s0 + $0x12c] ss:$24 sps:$4 sm:$0xff]   ;;  %v4785_v58 = vld [vmem:[%s6023_s0 + $0x128] ss:$24 sps:$4 sm:$0xff]   ;;  %v4789_v59 = vld [vmem:[%s6023_s0 + $0x15c] ss:$24 sps:$4 sm:$0xff]  }
 0x26b   : > { %v4786_v57 = vld [vmem:[%s6023_s0 + $0x124] ss:$24 sps:$4 sm:$0xff]   ;;  %v4788_v60 = vld [vmem:[%s6023_s0 + $0x120] ss:$24 sps:$4 sm:$0xff]   ;;  %v4792_v61 = vld [vmem:[%s6023_s0 + $0x154] ss:$24 sps:$4 sm:$0xff]  }
 0x26c   : > { %1840 = vmatpush1.bf16.msra.mxu1 %v4761_v41  ;;  %v4791_v62 = vld [vmem:[%s6023_s0 + $0x158] ss:$24 sps:$4 sm:$0xff]   ;;  %v4795_v63 = vld [vmem:[%s6023_s0 + $0x18c] ss:$24 sps:$4 sm:$0xff]   ;;  %v4797_v2 = vld [vmem:[%s6023_s0 + $0x188] ss:$24 sps:$4 sm:$0xff]  }
 0x26d   : > { %1841 = vmatprep.subr.bf16.mxu1 %v4765_v43  ;;  %1797 = vmatpush1.bf16.msra.mxu0 %v4764_v44  ;;  %v4794_v0 = vld [vmem:[%s6023_s0 + $0x150] ss:$24 sps:$4 sm:$0xff]   ;;  %v4798_v1 = vld [vmem:[%s6023_s0 + $0x184] ss:$24 sps:$4 sm:$0xff]   ;;  %v4800_v4 = vld [vmem:[%s6023_s0 + $0x180] ss:$24 sps:$4 sm:$0xff]  }
 0x26e   : > { %1798 = vmatprep.subr.bf16.mxu0 %v4768_v45  ;;  %v4801_v3 = vld [vmem:[%s6023_s0 + $0x1bc] ss:$24 sps:$4 sm:$0xff]   ;;  %v4803_v6 = vld [vmem:[%s6023_s0 + $0x1b8] ss:$24 sps:$4 sm:$0xff]   ;;  %v4807_v7 = vld [vmem:[%s6023_s0 + $0x1ec] ss:$24 sps:$4 sm:$0xff]  }
 0x26f   : > { %v4804_v5 = vld [vmem:[%s6023_s0 + $0x1b4] ss:$24 sps:$4 sm:$0xff]   ;;  %v4806_v8 = vld [vmem:[%s6023_s0 + $0x1b0] ss:$24 sps:$4 sm:$0xff]   ;;  %v4810_v9 = vld [vmem:[%s6023_s0 + $0x1e4] ss:$24 sps:$4 sm:$0xff]  }
 0x270   : > { %1842 = vmatpush1.bf16.msra.mxu1 %v4767_v46  ;;  %v4809_v10 = vld [vmem:[%s6023_s0 + $0x1e8] ss:$24 sps:$4 sm:$0xff]   ;;  %v4813_v11 = vld [vmem:[%s6023_s0 + $0x21c] ss:$24 sps:$4 sm:$0xff]   ;;  %v4815_v16 = vld [vmem:[%s6023_s0 + $0x218] ss:$24 sps:$4 sm:$0xff]  }
 0x271   : > { %1843 = vmatprep.subr.bf16.mxu1 %v4771_v47  ;;  %1799 = vmatpush1.bf16.msra.mxu0 %v4770_v48  ;;  %v4812_v12 = vld [vmem:[%s6023_s0 + $0x1e0] ss:$24 sps:$4 sm:$0xff]   ;;  %v4816_v13 = vld [vmem:[%s6023_s0 + $0x214] ss:$24 sps:$4 sm:$0xff]   ;;  %v4818_v19 = vld [vmem:[%s6023_s0 + $0x210] ss:$24 sps:$4 sm:$0xff]  }
 0x272   : > { %1800 = vmatprep.subr.bf16.mxu0 %v4774_v49  ;;  %v6132_v14 = vld [vmem:[#allocation2 + $0x8] sm:$0xff]  ;;  %v6134_v15 = vld [vmem:[#allocation2 + $0x18] sm:$0xff]  ;;  %v6155_v34 = vld [vmem:[#allocation2] sm:$0xff]  ;;  %vm5514_vm1 = vmmov 0   ;;  %vm2063_vm2 = vcmask 64512   ;;  %s6647_s16 = sld [smem:[#allocation43_spill]] }
 0x273   : > { %v1183_v17 = vpack.c.bf16 %v6134_v15, %v6132_v14  ;;  %v4819_v18 = vld [vmem:[%s6023_s0 + $0x24c] ss:$24 sps:$4 sm:$0xff]   ;;  %v4821_v21 = vld [vmem:[%s6023_s0 + $0x248] ss:$24 sps:$4 sm:$0xff]   ;;  %v4825_v22 = vld [vmem:[%s6023_s0 + $0x27c] ss:$24 sps:$4 sm:$0xff]  }
 0x274   : > { %1844 = vmatpush1.bf16.msra.mxu1 %v4773_v50  ;;  %v4822_v20 = vld [vmem:[%s6023_s0 + $0x244] ss:$24 sps:$4 sm:$0xff]   ;;  %v4824_v23 = vld [vmem:[%s6023_s0 + $0x240] ss:$24 sps:$4 sm:$0xff]   ;;  %v4828_v24 = vld [vmem:[%s6023_s0 + $0x274] ss:$24 sps:$4 sm:$0xff]  }
 0x275   : > { %1845 = vmatprep.subr.bf16.mxu1 %v4777_v51  ;;  %1801 = vmatpush1.bf16.msra.mxu0 %v4776_v52  ;;  %v4827_v25 = vld [vmem:[%s6023_s0 + $0x278] ss:$24 sps:$4 sm:$0xff]   ;;  %v4831_v26 = vld [vmem:[%s6023_s0 + $0x2ac] ss:$24 sps:$4 sm:$0xff]   ;;  %v4833_v29 = vld [vmem:[%s6023_s0 + $0x2a8] ss:$24 sps:$4 sm:$0xff]  }
 0x276   : > { %1802 = vmatprep.subr.bf16.mxu0 %v4780_v53  ;;  %1867 = vmatprep.mubr.bf16.mxu1 %v1183_v17  ;;  %v4830_v27 = vld [vmem:[%s6023_s0 + $0x270] ss:$24 sps:$4 sm:$0xff]   ;;  %v4834_v28 = vld [vmem:[%s6023_s0 + $0x2a4] ss:$24 sps:$4 sm:$0xff]   ;;  %v4836_v31 = vld [vmem:[%s6023_s0 + $0x2a0] ss:$24 sps:$4 sm:$0xff]  }
 0x277   : > { %1824 = vmatprep.mubr.bf16.mxu0 %v1183_v17  ;;  %v4837_v30 = vld [vmem:[%s6023_s0 + $0x2dc] ss:$24 sps:$4 sm:$0xff]   ;;  %v4839_v32 = vld [vmem:[%s6023_s0 + $0x2d8] ss:$24 sps:$4 sm:$0xff]   ;;  %s6649_s24 = sld [smem:[#allocation44_spill]]  ;;  %p4293_p11 = scmp.ne.s32.totalorder %s5663_s26, 1 }
 0x278   : > { %1846 = vmatpush1.bf16.msra.mxu1 %v4779_v54  ;;  %v4840_v33 = vld [vmem:[%s6023_s0 + $0x2d4] ss:$24 sps:$4 sm:$0xff]   ;;  %v6157_v35 = vld [vmem:[#allocation2 + $0x10] sm:$0xff]  ;;  %v4842_v36 = vld [vmem:[%s6023_s0 + $0x2d0] ss:$24 sps:$4 sm:$0xff]   ;;  %vm5516_vm3 = vmmov (!%p4293_p11), 0  }
 0x279   : > { %1847 = vmatprep.subr.bf16.mxu1 %v4783_v55  ;;  %1803 = vmatpush1.bf16.msra.mxu0 %v4782_v56  ;;  %v6162_v37 = vpack.c.bf16 %v6157_v35, %v6155_v34  ;;  %v4845_v38 = vld [vmem:[%s6023_s0 + $0x14] ss:$24 sps:$4 sm:$0xff]   ;;  %v4843_v39 = vld [vmem:[%s6023_s0 + $0x10] ss:$24 sps:$4 sm:$0xff]   ;;  %v4848_v40 = vld [vmem:[%s6023_s0 + $0x44] ss:$24 sps:$4 sm:$0xff]  }
 0x27a   : > { %1804 = vmatprep.subr.bf16.mxu0 %v4786_v57  ;;  %v4846_v41 = vld [vmem:[%s6023_s0 + $0x40] ss:$24 sps:$4 sm:$0xff]   ;;  %v4851_v42 = vld [vmem:[%s6023_s0 + $0x74] ss:$24 sps:$4 sm:$0xff]   ;;  %v4849_v43 = vld [vmem:[%s6023_s0 + $0x70] ss:$24 sps:$4 sm:$0xff]  }
 0x27b   : > { %v4854_v44 = vld [vmem:[%s6023_s0 + $0xa4] ss:$24 sps:$4 sm:$0xff]   ;;  %v4852_v45 = vld [vmem:[%s6023_s0 + $0xa0] ss:$24 sps:$4 sm:$0xff]   ;;  %v4857_v46 = vld [vmem:[%s6023_s0 + $0xd4] ss:$24 sps:$4 sm:$0xff]  }
 0x27c   : > { %1848 = vmatpush1.bf16.msra.mxu1 %v4785_v58  ;;  %v4855_v47 = vld [vmem:[%s6023_s0 + $0xd0] ss:$24 sps:$4 sm:$0xff]   ;;  %v4860_v48 = vld [vmem:[%s6023_s0 + $0x104] ss:$24 sps:$4 sm:$0xff]   ;;  %v4858_v49 = vld [vmem:[%s6023_s0 + $0x100] ss:$24 sps:$4 sm:$0xff]  }
 0x27d   : > { %1849 = vmatprep.subr.bf16.mxu1 %v4789_v59  ;;  %1805 = vmatpush1.bf16.msra.mxu0 %v4788_v60  ;;  %v4863_v50 = vld [vmem:[%s6023_s0 + $0x134] ss:$24 sps:$4 sm:$0xff]   ;;  %v4861_v51 = vld [vmem:[%s6023_s0 + $0x130] ss:$24 sps:$4 sm:$0xff]   ;;  %v4866_v52 = vld [vmem:[%s6023_s0 + $0x164] ss:$24 sps:$4 sm:$0xff]   ;;  %s6650_s2 = scalar_lea.vmem %s6649_s24, %s6049_s25 }
 0x27e   : > { %1806 = vmatprep.subr.bf16.mxu0 %v4792_v61  ;;  %v4864_v53 = vld [vmem:[%s6023_s0 + $0x160] ss:$24 sps:$4 sm:$0xff]   ;;  %v4869_v54 = vld [vmem:[%s6023_s0 + $0x194] ss:$24 sps:$4 sm:$0xff]   ;;  %v4867_v55 = vld [vmem:[%s6023_s0 + $0x190] ss:$24 sps:$4 sm:$0xff]  }
 0x27f   : > { %v4872_v56 = vld [vmem:[%s6023_s0 + $0x1c4] ss:$24 sps:$4 sm:$0xff]   ;;  %v4870_v57 = vld [vmem:[%s6023_s0 + $0x1c0] ss:$24 sps:$4 sm:$0xff]   ;;  %v4875_v58 = vld [vmem:[%s6023_s0 + $0x1f4] ss:$24 sps:$4 sm:$0xff]  }
 0x280   : > { %1850 = vmatpush1.bf16.msra.mxu1 %v4791_v62  ;;  %v4873_v59 = vld [vmem:[%s6023_s0 + $0x1f0] ss:$24 sps:$4 sm:$0xff]   ;;  %v4878_v60 = vld [vmem:[%s6023_s0 + $0x224] ss:$24 sps:$4 sm:$0xff]   ;;  %v4876_v61 = vld [vmem:[%s6023_s0 + $0x220] ss:$24 sps:$4 sm:$0xff]  }
 0x281   : > { %1851 = vmatprep.subr.bf16.mxu1 %v4795_v63  ;;  %1807 = vmatpush1.bf16.msra.mxu0 %v4794_v0  ;;  %v4881_v62 = vld [vmem:[%s6023_s0 + $0x254] ss:$24 sps:$4 sm:$0xff]   ;;  %v4879_v63 = vld [vmem:[%s6023_s0 + $0x250] ss:$24 sps:$4 sm:$0xff]   ;;  %v4884_v0 = vld [vmem:[%s6023_s0 + $0x284] ss:$24 sps:$4 sm:$0xff]  }
 0x282   : > { %1808 = vmatprep.subr.bf16.mxu0 %v4798_v1  ;;  %v4882_v1 = vld [vmem:[%s6023_s0 + $0x280] ss:$24 sps:$4 sm:$0xff]   ;;  %vm3585_vm4 = vcmask (!%p4293_p11), 1041409   ;;  %s6657_s14 = sld [smem:[#allocation54_spill]] (!%p4293_p11) }
 0x284   : > { %1852 = vmatpush1.bf16.msra.mxu1 %v4797_v2  ;;  %v4887_v2 = vld [vmem:[%s6023_s0 + $0x2b4] ss:$24 sps:$4 sm:$0xff]  }
 0x285   : > { %1853 = vmatprep.subr.bf16.mxu1 %v4801_v3  ;;  %1809 = vmatpush1.bf16.msra.mxu0 %v4800_v4  ;;  %v4885_v3 = vld [vmem:[%s6023_s0 + $0x2b0] ss:$24 sps:$4 sm:$0xff]   ;;  %v4890_v4 = vld [vmem:[%s6023_s0 + $0x2e4] ss:$24 sps:$4 sm:$0xff]  }
 0x286   : > { %1810 = vmatprep.subr.bf16.mxu0 %v4804_v5  ;;  %v4888_v5 = vld [vmem:[%s6023_s0 + $0x2e0] ss:$24 sps:$4 sm:$0xff]   ;;  %s6648_s0 = scalar_lea.vmem %s6647_s16, %s6049_s25 }
 0x288   : > { %1854 = vmatpush1.bf16.msra.mxu1 %v4803_v6  ;;  %v5513_v6 = vmov 0.0  }
 0x289   : > { %1855 = vmatprep.subr.bf16.mxu1 %v4807_v7  ;;  %1811 = vmatpush1.bf16.msra.mxu0 %v4806_v8  ;;  %v1282_v7 = vlaneseq }
 0x28a   : > { %1812 = vmatprep.subr.bf16.mxu0 %v4810_v9 }
 0x28b   : > { %v1283_v8 = vshrl.u32 %v1282_v7, 7 }
 0x28c   : > { %1856 = vmatpush1.bf16.msra.mxu1 %v4809_v10  ;;  %v1280_v10 = vld [vmem:[%s6062_s27] sm:$0x3f] }
 0x28d   : > { %1857 = vmatprep.subr.bf16.mxu1 %v4813_v11  ;;  %1813 = vmatpush1.bf16.msra.mxu0 %v4812_v12  ;;  %v1292_v9 = vsub.s32 2, %v1283_v8  ;;  %v1296_v11 = vsub.s32 3, %v1283_v8  ;;  %v6206_v12 = vsub.s32 0, %v1283_v8 }
 0x28e   : > { %1814 = vmatprep.subr.bf16.mxu0 %v4816_v13  ;;  %v6208_v13 = vsub.s32 1, %v1283_v8 }
 0x290   : > { %1858 = vmatpush1.bf16.msra.mxu1 %v4815_v16  ;;  %v1293_v16 = vrot.slane %v1280_v10, %v1292_v9 }
 0x291   : > { %1859 = vmatprep.subr.bf16.mxu1 %v4819_v18  ;;  %1815 = vmatpush1.bf16.msra.mxu0 %v4818_v19  ;;  %v1285_v18 = vrot.slane %v1280_v10, %v6206_v12 }
 0x292   : > { %1816 = vmatprep.subr.bf16.mxu0 %v4822_v20  ;;  %v1289_v20 = vrot.slane %v1280_v10, %v6208_v13 }
 0x294   : > { %1860 = vmatpush1.bf16.msra.mxu1 %v4821_v21 }
 0x295   : > { %1861 = vmatprep.subr.bf16.mxu1 %v4825_v22  ;;  %1817 = vmatpush1.bf16.msra.mxu0 %v4824_v23 }
 0x296   : > { %1818 = vmatprep.subr.bf16.mxu0 %v4828_v24 }
 0x298   : > { %1862 = vmatpush1.bf16.msra.mxu1 %v4827_v25 }
 0x299   : > { %1863 = vmatprep.subr.bf16.mxu1 %v4831_v26  ;;  %1819 = vmatpush1.bf16.msra.mxu0 %v4830_v27 }
 0x29a   : > { %1820 = vmatprep.subr.bf16.mxu0 %v4834_v28 }
 0x29c   : > { %1864 = vmatpush1.bf16.msra.mxu1 %v4833_v29 }
 0x29d   : > { %1865 = vmatprep.subr.bf16.mxu1 %v4837_v30  ;;  %1821 = vmatpush1.bf16.msra.mxu0 %v4836_v31 }
 0x29e   : > { %1822 = vmatprep.subr.bf16.mxu0 %v4840_v33 }
 0x2a0   : > { %1866 = vmatpush1.bf16.msra.mxu1 %v4839_v32 }
 0x2a1   : > { %1823 = vmatpush1.bf16.msra.mxu0 %v4842_v36  ;;  %4414 = vmatprep.subr.mxu1 %v5513_v6 }
 0x2a2   : > { %1878 = vmatprep.subr.bf16.mxu0 %v4845_v38  ;;  %v1300_v38 = vsub.s32 4, %v1283_v8 }
 0x2a3   : > { %1868 = vmatmul.mubr.bf16.vlgmr.msra.gmra.mrb[0].mxu1 %v6162_v37 }
 0x2a4   : > { %1825 = vmatmul.mubr.bf16.vlgmr.msra.gmra.mrb[0].mxu0 %v6162_v37  ;;  %4416 = vmatprep.mubr.msk.f32.mxu1 %vm5514_vm1, %v5513_v6 }
 0x2a5   : > { %1879 = vmatpush1.bf16.msra.mxu0 %v4843_v39  ;;  %1910 = vmatprep.mubr.bf16.mxu0 %v1183_v17  ;;  %v1297_v17 = vrot.slane %v1280_v10, %v1296_v11  ;;  %v1304_v39 = vsub.s32 5, %v1283_v8 }
 0x2a6   : > { %1880 = vmatprep.subr.bf16.mxu0 %v4848_v40  ;;  %v1301_v40 = vrot.slane %v1280_v10, %v1300_v38 }
 0x2a9   : > { %1881 = vmatpush1.bf16.msra.mxu0 %v4846_v41  ;;  %v1305_v41 = vrot.slane %v1280_v10, %v1304_v39 }
 0x2aa   : > { %1882 = vmatprep.subr.bf16.mxu0 %v4851_v42 }
 0x2ad   : > { %1883 = vmatpush1.bf16.msra.mxu0 %v4849_v43 }
 0x2ae   : > { %1884 = vmatprep.subr.bf16.mxu0 %v4854_v44 }
 0x2b1   : > { %1885 = vmatpush1.bf16.msra.mxu0 %v4852_v45 }
 0x2b2   : > { %1886 = vmatprep.subr.bf16.mxu0 %v4857_v46 }
 0x2b5   : > { %1887 = vmatpush1.bf16.msra.mxu0 %v4855_v47 }
 0x2b6   : > { %1888 = vmatprep.subr.bf16.mxu0 %v4860_v48 }
 0x2b9   : > { %1889 = vmatpush1.bf16.msra.mxu0 %v4858_v49 }
 0x2ba   : > { %1890 = vmatprep.subr.bf16.mxu0 %v4863_v50 }
 0x2bd   : > { %1891 = vmatpush1.bf16.msra.mxu0 %v4861_v51 }
 0x2be   : > { %1892 = vmatprep.subr.bf16.mxu0 %v4866_v52 }
 0x2c1   : > { %1893 = vmatpush1.bf16.msra.mxu0 %v4864_v53 }
 0x2c2   : > { %1894 = vmatprep.subr.bf16.mxu0 %v4869_v54 }
 0x2c5   : > { %1895 = vmatpush1.bf16.msra.mxu0 %v4867_v55 }
 0x2c6   : > { %1896 = vmatprep.subr.bf16.mxu0 %v4872_v56 }
 0x2c9   : > { %1897 = vmatpush1.bf16.msra.mxu0 %v4870_v57 }
 0x2ca   : > { %1898 = vmatprep.subr.bf16.mxu0 %v4875_v58 }
 0x2cd   : > { %1899 = vmatpush1.bf16.msra.mxu0 %v4873_v59 }
 0x2ce   : > { %1900 = vmatprep.subr.bf16.mxu0 %v4878_v60 }
 0x2d1   : > { %1901 = vmatpush1.bf16.msra.mxu0 %v4876_v61 }
 0x2d2   : > { %1902 = vmatprep.subr.bf16.mxu0 %v4881_v62 }
 0x2d5   : > { %1903 = vmatpush1.bf16.msra.mxu0 %v4879_v63 }
 0x2d6   : > { %1904 = vmatprep.subr.bf16.mxu0 %v4884_v0 }
 0x2d9   : > { %1905 = vmatpush1.bf16.msra.mxu0 %v4882_v1 }
 0x2da   : > { %1906 = vmatprep.subr.bf16.mxu0 %v4887_v2 }
 0x2dd   : > { %1907 = vmatpush1.bf16.msra.mxu0 %v4885_v3 }
 0x2de   : > { %1908 = vmatprep.subr.bf16.mxu0 %v4890_v4 }
 0x2e1   : > { %1909 = vmatpush1.bf16.msra.mxu0 %v4888_v5 }
 0x2e2   : > { %4394 = vmatprep.subr.mxu0 %v5513_v6 }
 0x2e4   : > { %1911 = vmatmul.mubr.bf16.vlgmr.msra.gmra.mrb[4].mxu0 %v6162_v37 }
 0x2e5   : > { %4396 = vmatprep.mubr.msk.f32.mxu0 %vm5514_vm1, %v5513_v6 }
 0x376   : > { %v1869_v19 = vpop.f32.mrb[0].mxu1 }
 0x377   : > { %v1870_v21 = vadd.f32 %v1869_v19, %v1293_v16  ;;  %v1871_v22 = vpop.f32.mrb[1].mxu1  ;;  %v1826_v25 = vpop.f32.mrb[0].mxu0 }
 0x378   : > { %v1872_v23 = vadd.f32 %v1871_v22, %v1297_v17  ;;  %v1873_v24 = vpop.f32.mrb[2].mxu1  ;;  %v1827_v26 = vadd.f32 %v1826_v25, %v1285_v18  ;;  %v1828_v28 = vpop.f32.mrb[1].mxu0 }
 0x379   : > { %v1875_v27 = vpop.f32.mrb[3].mxu1  ;;  %4395 = vmatpush3.xpose.msra.mxu0 %v1870_v21  ;;  %v1829_v29 = vadd.f32 %v1828_v28, %v1289_v20  ;;  %v1830_v30 = vpop.f32.mrb[2].mxu0  ;;  %v1874_v31 = vadd.f32 %v1873_v24, %v1293_v16 }
 0x37a   : > { %4415 = vmatpush3.xpose.msra.mxu1 %v1872_v23  ;;  %4399 = vmatprep.subr.mxu0 %v5513_v6  ;;  %v1832_v32 = vpop.f32.mrb[3].mxu0  ;;  %v1876_v33 = vadd.f32 %v1875_v27, %v1297_v17  ;;  %v1831_v36 = vadd.f32 %v1830_v30, %v1285_v18 }
 0x37b   : > { %4419 = vmatprep.subr.mxu1 %v5513_v6  ;;  %v1833_v37 = vadd.f32 %v1832_v32, %v1289_v20 }
 0x37c   : > { %4397 = vmatmul.mubr.f32.vlgmr.msra.gmra.mrb[8].mxu0 %v1827_v26 }
 0x37d   : > { %4400 = vmatpush3.xpose.msra.mxu0 %v1874_v31  ;;  %4417 = vmatmul.mubr.f32.vlgmr.msra.gmra.mrb[4].mxu1 %v1829_v29 }
 0x37e   : > { %4420 = vmatpush3.xpose.msra.mxu1 %v1876_v33  ;;  %4401 = vmatprep.mubr.msk.f32.mxu0 %vm5514_vm1, %v5513_v6  ;;  %v4893_v33 = vld [vmem:[%s6029_s8 + $0x4] ss:$8 sps:$4 sm:$0xff]  }
 0x37f   : > { %4421 = vmatprep.mubr.msk.f32.mxu1 %vm5514_vm1, %v5513_v6  ;;  %4404 = vmatprep.subr.mxu0 %v5513_v6 }
 0x380   : > { %4402 = vmatmul.mubr.f32.vlgmr.msra.gmra.mrb[10].mxu0 %v1831_v36  ;;  %4424 = vmatprep.subr.mxu1 %v5513_v6 }
 0x381   : > { %4422 = vmatmul.mubr.f32.vlgmr.msra.gmra.mrb[6].mxu1 %v1833_v37  ;;  %4406 = vmatprep.mubr.msk.f32.mxu0 %vm5514_vm1, %v5513_v6  ;;  %v4891_v37 = vld [vmem:[%s6029_s8] ss:$8 sps:$4 sm:$0xff]  }
 0x382   : > { %4426 = vmatprep.mubr.msk.f32.mxu1 %vm5514_vm1, %v5513_v6 }
 0x3b7   : > { %v1912_v42 = vpop.f32.mrb[4].mxu0 }
 0x3b8   : > { %v1913_v43 = vadd.f32 %v1912_v42, %v1301_v40  ;;  %v1914_v44 = vpop.f32.mrb[5].mxu0  ;;  %v4894_v42 = vld [vmem:[%s6029_s8 + $0x10] ss:$8 sps:$4 sm:$0xff]  }
 0x3b9   : > { %v1915_v45 = vadd.f32 %v1914_v44, %v1305_v41  ;;  %v1916_v46 = vpop.f32.mrb[6].mxu0  ;;  %v4899_v44 = vld [vmem:[%s6029_s8 + $0x24] ss:$8 sps:$4 sm:$0xff]  }
 0x3ba   : > { %v6224_v47 = vadd.f32 %v1916_v46, %v1301_v40  ;;  %v1918_v48 = vpop.f32.mrb[7].mxu0  ;;  %4405 = vmatpush3.msra.mxu0 %v1913_v43  ;;  %v4897_v46 = vld [vmem:[%s6029_s8 + $0x20] ss:$8 sps:$4 sm:$0xff]  }
 0x3bb   : > { %v6226_v49 = vadd.f32 %v1918_v48, %v1305_v41  ;;  %4425 = vmatpush3.msra.mxu1 %v1915_v45  ;;  %4409 = vmatprep.subr.mxu0 %v5513_v6  ;;  %v4896_v41 = vld [vmem:[%s6029_s8 + $0x14] ss:$8 sps:$4 sm:$0xff]  }
 0x3bc   : > { %4429 = vmatprep.subr.mxu1 %v5513_v6  ;;  %v4902_v48 = vld [vmem:[%s6029_s8 + $0x34] ss:$8 sps:$4 sm:$0xff]  }
 0x44f   : > { %v1987_v50 = vpop.f32.mrb[8].mxu0 }
 0x450   : > { %v2298_v51 = vpop.f32.mrb[4].mxu1  ;;  %v4398_v52 = vpop.f32.mrb[9].mxu0  ;;  %v2061_v55 = vmul.f32 0.088388346, %v1987_v50  ;;  %v4908_v50 = vld [vmem:[%s6029_s8 + $0x54] ss:$8 sps:$4 sm:$0xff]  }
 0x451   : > { %v2372_v53 = vmul.f32 0.088388346, %v2298_v51  ;;  %v4418_v54 = vpop.f32.mrb[5].mxu1  ;;  %v4906_v51 = vld [vmem:[%s6029_s8 + $0x50] ss:$8 sps:$4 sm:$0xff]  }
 0x452   : > { %v2064_v0 = vsel %vm2063_vm2, %v2061_v55, -inf  ;;  %v4911_v52 = vld [vmem:[%s6029_s8 + $0x64] ss:$8 sps:$4 sm:$0xff]   ;;  %v4914_v54 = vld [vmem:[%s6029_s8 + $0x74] ss:$8 sps:$4 sm:$0xff]  }
 0x453   : > { %v2057_v56 = vpop.f32.mrb[10].mxu0  ;;  %v2374_v57 = vsel %vm2063_vm2, %v2372_v53, -inf }
 0x454   : > { %2375 = vmax.xlane.f32.xlu0 %v2374_v57  ;;  %v4403_v58 = vpop.f32.mrb[11].mxu0  ;;  %v2368_v59 = vpop.f32.mrb[6].mxu1  ;;  %v2062_v62 = vmul.f32 0.088388346, %v2057_v56  ;;  %v4917_v56 = vld [vmem:[%s6029_s8 + $0x84] ss:$8 sps:$4 sm:$0xff]  }
 0x455   : > { %v2373_v60 = vmul.f32 0.088388346, %v2368_v59  ;;  %v4423_v61 = vpop.f32.mrb[7].mxu1  ;;  %v4915_v57 = vld [vmem:[%s6029_s8 + $0x80] ss:$8 sps:$4 sm:$0xff]  }
 0x456   : > { %v2067_v1 = vsel %vm2063_vm2, %v2062_v62, -inf  ;;  %v4920_v58 = vld [vmem:[%s6029_s8 + $0x94] ss:$8 sps:$4 sm:$0xff]   ;;  %v4918_v59 = vld [vmem:[%s6029_s8 + $0x90] ss:$8 sps:$4 sm:$0xff]  }
 0x457   : > { %v2377_v63 = vsel %vm2063_vm2, %v2373_v60, -inf  ;;  %v4921_v61 = vld [vmem:[%s6029_s8 + $0xa0] ss:$8 sps:$4 sm:$0xff]  }
 0x458   : > { %2378 = vmax.xlane.f32.xlu1 %v2377_v63  ;;  %2065 = vmax.xlane.f32.xlu0 %v2064_v0  ;;  %v4924_v63 = vld [vmem:[%s6029_s8 + $0xb0] ss:$8 sps:$4 sm:$0xff]   ;;  %v4929_v0 = vld [vmem:[%s6029_s8 + $0xc4] ss:$8 sps:$4 sm:$0xff]  }
 0x45c   : > { %2068 = vmax.xlane.f32.xlu1 %v2067_v1  ;;  %v4927_v1 = vld [vmem:[%s6029_s8 + $0xc0] ss:$8 sps:$4 sm:$0xff]  }
 0x4e1   : > { %v2376_v2 = vpop.xlane.xlu0 %2375 }
 0x4e2   : > { %v2380_v3 = vsub.f32 %v2372_v53, %v2376_v2  ;;  %v4909_v53 = vld [vmem:[%s6029_s8 + $0x60] ss:$8 sps:$4 sm:$0xff]   ;;  %v4932_v2 = vld [vmem:[%s6029_s8 + $0xd4] ss:$8 sps:$4 sm:$0xff]  }
 0x4e4   : > { %v2382_v4 = vmul.f32 1.442695, %v2380_v3  ;;  %v4930_v3 = vld [vmem:[%s6029_s8 + $0xd0] ss:$8 sps:$4 sm:$0xff]  }
 0x4e5   : > { %v2379_v5 = vpop.xlane.xlu1 %2378  ;;  %v2066_v7 = vpop.xlane.xlu0 %2065 }
 0x4e6   : > { %5035 = vpow2.f32 %v2382_v4  ;;  %v2381_v8 = vsub.f32 %v2373_v60, %v2379_v5  ;;  %v2070_v9 = vsub.f32 %v2061_v55, %v2066_v7  ;;  %v4912_v55 = vld [vmem:[%s6029_s8 + $0x70] ss:$8 sps:$4 sm:$0xff]   ;;  %v4923_v60 = vld [vmem:[%s6029_s8 + $0xa4] ss:$8 sps:$4 sm:$0xff]   ;;  %v4933_v4 = vld [vmem:[%s6029_s8 + $0xe0] ss:$8 sps:$4 sm:$0xff]  }
 0x4e7   : > { %v4935_v5 = vld [vmem:[%s6029_s8 + $0xe4] ss:$8 sps:$4 sm:$0xff]   ;;  %v4936_v7 = vld [vmem:[%s6029_s8 + $0xf0] ss:$8 sps:$4 sm:$0xff]  }
 0x4e8   : > { %v2384_v10 = vmul.f32 1.442695, %v2381_v8  ;;  %v2072_v11 = vmul.f32 1.442695, %v2070_v9  ;;  %v4938_v8 = vld [vmem:[%s6029_s8 + $0xf4] ss:$8 sps:$4 sm:$0xff]  }
 0x4e9   : > { %v2069_v16 = vpop.xlane.xlu1 %2068 }
 0x4ea   : > { %5037 = vpow2.f32 %v2384_v10  ;;  %v2071_v17 = vsub.f32 %v2062_v62, %v2069_v16  ;;  %v4926_v62 = vld [vmem:[%s6029_s8 + $0xb4] ss:$8 sps:$4 sm:$0xff]  }
 0x4eb   : > { %5039 = vpow2.f32 %v2072_v11 }
 0x4ec   : > { %v2074_v18 = vmul.f32 1.442695, %v2071_v17 }
 0x4ee   : > { %5041 = vpow2.f32 %v2074_v18 }
 0x4f0   : > { %v5036_v19 = vpop.eup %5035 }
 0x4f1   : > { %v2386_v20 = vsel %vm2063_vm2, %v5036_v19, 0.0 }
 0x4f2   : > { %2387 = vadd.xlane.f32.xlu0 %v2386_v20 }
 0x4f4   : > { %v5038_v21 = vpop.eup %5037 }
 0x4f5   : > { %v5040_v22 = vpop.eup %5039  ;;  %v2389_v23 = vsel %vm2063_vm2, %v5038_v21, 0.0 }
 0x4f6   : > { %2390 = vadd.xlane.f32.xlu0 %v2389_v23  ;;  %v2076_v24 = vsel %vm2063_vm2, %v5040_v22, 0.0  ;;  %v2576_v23 = vld [vmem:[%s6648_s0] sm:$0x3] }
 0x4f7   : > { %2077 = vadd.xlane.f32.xlu1 %v2076_v24  ;;  %v2581_v24 = vrot.slane %v2576_v23, %v6206_v12 }
 0x4f8   : > { %v5042_v25 = vpop.eup %5041 }
 0x4f9   : > { %v2079_v26 = vsel %vm2063_vm2, %v5042_v25, 0.0 }
 0x4fb   : > { %2080 = vadd.xlane.f32.xlu1 %v2079_v26 }
 0x57f   : > { %v2388_v27 = vpop.xlane.xlu0 %2387 }
 0x580   : > { %5043 = vrcp.f32 %v2388_v27 }
 0x583   : > { %v2391_v28 = vpop.xlane.xlu0 %2390 }
 0x584   : > { %5045 = vrcp.f32 %v2391_v28  ;;  %v2078_v29 = vpop.xlane.xlu1 %2077 }
 0x585   : > { %5047 = vrcp.f32 %v2078_v29 }
 0x588   : > { %v2081_v30 = vpop.xlane.xlu1 %2080 }
 0x589   : > { %5049 = vrcp.f32 %v2081_v30 }
 0x58a   : > { %v5044_v31 = vpop.eup %5043 }
 0x58b   : > { %v2393_v32 = vmul.f32 %v5044_v31, %v5036_v19 }
 0x58d   : > { %4427 = vmatmul.mubr.msk.f32.vlgmr.msra.gmra.mrb[8].mxu1 %vm2063_vm2, %v2393_v32 }
 0x58e   : > { %v5046_v36 = vpop.eup %5045  ;;  %4430 = vmatpush3.msra.mxu1 %v6226_v49  ;;  %4431 = vmatprep.mubr.msk.f32.mxu1 %vm5514_vm1, %v5513_v6  ;;  %v4900_v49 = vld [vmem:[%s6029_s8 + $0x30] ss:$8 sps:$4 sm:$0xff]  }
 0x58f   : > { %v5048_v38 = vpop.eup %5047  ;;  %v2395_v39 = vmul.f32 %v5046_v36, %v5038_v21  ;;  %2748 = vmatprep.subr.bf16.mxu1 %v4893_v33 }
 0x590   : > { %v2083_v40 = vmul.f32 %v5048_v38, %v5040_v22 }
 0x591   : > { %4432 = vmatmul.mubr.msk.f32.vlgmr.msra.gmra.mrb[10].mxu1 %vm2063_vm2, %v2395_v39 }
 0x592   : > { %4407 = vmatmul.mubr.msk.f32.vlgmr.msra.gmra.mrb[12].mxu0 %vm2063_vm2, %v2083_v40  ;;  %2749 = vmatpush1.bf16.msra.mxu1 %v4891_v37 }
 0x593   : > { %v5050_v43 = vpop.eup %5049  ;;  %4410 = vmatpush3.msra.mxu0 %v6224_v47  ;;  %4411 = vmatprep.mubr.msk.f32.mxu0 %vm5514_vm1, %v5513_v6  ;;  %v4905_v47 = vld [vmem:[%s6029_s8 + $0x44] ss:$8 sps:$4 sm:$0xff]   ;;  %v4903_v6 = vld [vmem:[%s6029_s8 + $0x40] ss:$8 sps:$4 sm:$0xff]   ;;  %s6658_s8 = sld [smem:[#allocation55_spill]] (!%p4293_p11) }
 0x594   : > { %v2085_v45 = vmul.f32 %v5050_v43, %v5042_v25  ;;  %2750 = vmatprep.subr.bf16.mxu1 %v4896_v41  ;;  %v2585_v25 = vrot.slane %v2576_v23, %v6208_v13  ;;  %v4944_v43 = vld [vmem:[%s6031_s19 + $0x14] ss:$8 sps:$4 sm:$0xff]   ;;  %v4984_v23 = vld [vmem:[%s6031_s19 + $0xf0] ss:$8 sps:$4 sm:$0xff]  }
 0x596   : > { %4412 = vmatmul.mubr.msk.f32.vlgmr.msra.gmra.mrb[14].mxu0 %vm2063_vm2, %v2085_v45  ;;  %2751 = vmatpush1.bf16.msra.mxu1 %v4894_v42  ;;  %v4941_v42 = vld [vmem:[%s6031_s19 + $0x4] ss:$8 sps:$4 sm:$0xff]   ;;  %v4948_v45 = vld [vmem:[%s6031_s19 + $0x30] ss:$8 sps:$4 sm:$0xff]  }
 0x597   : > { %2752 = vmatprep.subr.bf16.mxu1 %v4899_v44  ;;  %3066 = vmatprep.subr.bf16.mxu0 %v4941_v42  ;;  %v4950_v44 = vld [vmem:[%s6031_s19 + $0x34] ss:$8 sps:$4 sm:$0xff]   ;;  %v5011_v42 = vld [vmem:[%s6033_s11 + $0x80] ss:$8 sps:$4 sm:$0xff]  }
 0x59a   : > { %2753 = vmatpush1.bf16.msra.mxu1 %v4897_v46  ;;  %v4953_v46 = vld [vmem:[%s6031_s19 + $0x44] ss:$8 sps:$4 sm:$0xff]  }
 0x59b   : > { %2754 = vmatprep.subr.bf16.mxu1 %v4902_v48  ;;  %v4951_v48 = vld [vmem:[%s6031_s19 + $0x40] ss:$8 sps:$4 sm:$0xff]  }
 0x59e   : > { %2755 = vmatpush1.bf16.msra.mxu1 %v4900_v49  ;;  %v4956_v49 = vld [vmem:[%s6031_s19 + $0x54] ss:$8 sps:$4 sm:$0xff]  }
 0x59f   : > { %2756 = vmatprep.subr.bf16.mxu1 %v4905_v47  ;;  %v4954_v47 = vld [vmem:[%s6031_s19 + $0x50] ss:$8 sps:$4 sm:$0xff]  }
 0x5a2   : > { %2757 = vmatpush1.bf16.msra.mxu1 %v4903_v6  ;;  %v4959_v6 = vld [vmem:[%s6031_s19 + $0x64] ss:$8 sps:$4 sm:$0xff]  }
 0x5a3   : > { %2758 = vmatprep.subr.bf16.mxu1 %v4908_v50  ;;  %v4957_v50 = vld [vmem:[%s6031_s19 + $0x60] ss:$8 sps:$4 sm:$0xff]  }
 0x5a6   : > { %2759 = vmatpush1.bf16.msra.mxu1 %v4906_v51  ;;  %v4962_v51 = vld [vmem:[%s6031_s19 + $0x74] ss:$8 sps:$4 sm:$0xff]  }
 0x5a7   : > { %2760 = vmatprep.subr.bf16.mxu1 %v4911_v52  ;;  %v4960_v52 = vld [vmem:[%s6031_s19 + $0x70] ss:$8 sps:$4 sm:$0xff]  }
 0x5aa   : > { %2761 = vmatpush1.bf16.msra.mxu1 %v4909_v53  ;;  %v4965_v53 = vld [vmem:[%s6031_s19 + $0x84] ss:$8 sps:$4 sm:$0xff]  }
 0x5ab   : > { %2762 = vmatprep.subr.bf16.mxu1 %v4914_v54  ;;  %v4963_v54 = vld [vmem:[%s6031_s19 + $0x80] ss:$8 sps:$4 sm:$0xff]  }
 0x5ae   : > { %2763 = vmatpush1.bf16.msra.mxu1 %v4912_v55  ;;  %v4968_v55 = vld [vmem:[%s6031_s19 + $0x94] ss:$8 sps:$4 sm:$0xff]  }
 0x5af   : > { %2764 = vmatprep.subr.bf16.mxu1 %v4917_v56  ;;  %v4966_v56 = vld [vmem:[%s6031_s19 + $0x90] ss:$8 sps:$4 sm:$0xff]  }
 0x5b2   : > { %2765 = vmatpush1.bf16.msra.mxu1 %v4915_v57 }
 0x5b3   : > { %2766 = vmatprep.subr.bf16.mxu1 %v4920_v58 }
 0x5b6   : > { %2767 = vmatpush1.bf16.msra.mxu1 %v4918_v59 }
 0x5b7   : > { %2768 = vmatprep.subr.bf16.mxu1 %v4923_v60 }
 0x5ba   : > { %2769 = vmatpush1.bf16.msra.mxu1 %v4921_v61 }
 0x5bb   : > { %2770 = vmatprep.subr.bf16.mxu1 %v4926_v62 }
 0x5be   : > { %2771 = vmatpush1.bf16.msra.mxu1 %v4924_v63 }
 0x5bf   : > { %2772 = vmatprep.subr.bf16.mxu1 %v4929_v0 }
 0x5c2   : > { %2773 = vmatpush1.bf16.msra.mxu1 %v4927_v1 }
 0x5c3   : > { %2774 = vmatprep.subr.bf16.mxu1 %v4932_v2 }
 0x5c6   : > { %2775 = vmatpush1.bf16.msra.mxu1 %v4930_v3 }
 0x5c7   : > { %2776 = vmatprep.subr.bf16.mxu1 %v4935_v5 }
 0x5ca   : > { %2777 = vmatpush1.bf16.msra.mxu1 %v4933_v4 }
 0x5cb   : > { %2778 = vmatprep.subr.bf16.mxu1 %v4938_v8  ;;  %v4971_v8 = vld [vmem:[%s6031_s19 + $0xa4] ss:$8 sps:$4 sm:$0xff]  }
 0x5ce   : > { %2779 = vmatpush1.bf16.msra.mxu1 %v4936_v7 }
 0x660   : > { %v2465_v9 = vpop.f32.mrb[8].mxu1 }
 0x661   : > { %v4428_v10 = vpop.f32.mrb[9].mxu1 }
 0x662   : > { %v4974_v10 = vld [vmem:[%s6031_s19 + $0xb4] ss:$8 sps:$4 sm:$0xff]  }
 0x664   : > { %v2538_v11 = vpop.f32.mrb[10].mxu1 }
 0x665   : > { %v2155_v16 = vpop.f32.mrb[12].mxu0  ;;  %v2543_v17 = vpack.c.bf16 %v2538_v11, %v2465_v9  ;;  %v4433_v18 = vpop.f32.mrb[11].mxu1  ;;  %v4969_v9 = vld [vmem:[%s6031_s19 + $0xa0] ss:$8 sps:$4 sm:$0xff]   ;;  %v4972_v11 = vld [vmem:[%s6031_s19 + $0xb0] ss:$8 sps:$4 sm:$0xff]  }
 0x666   : > { %v4408_v19 = vpop.f32.mrb[13].mxu0  ;;  %v4980_v18 = vld [vmem:[%s6031_s19 + $0xd4] ss:$8 sps:$4 sm:$0xff]  }
 0x667   : > { %2780 = vmatprep.mubr.bf16.mxu1 %v2543_v17  ;;  %v4975_v17 = vld [vmem:[%s6031_s19 + $0xc0] ss:$8 sps:$4 sm:$0xff]   ;;  %v4978_v19 = vld [vmem:[%s6031_s19 + $0xd0] ss:$8 sps:$4 sm:$0xff]  }
 0x669   : > { %v2228_v20 = vpop.f32.mrb[14].mxu0 }
 0x66a   : > { %v2542_v21 = vpack.c.bf16 %v2228_v20, %v2155_v16  ;;  %v4413_v22 = vpop.f32.mrb[15].mxu0  ;;  %v4977_v16 = vld [vmem:[%s6031_s19 + $0xc4] ss:$8 sps:$4 sm:$0xff]   ;;  %v4981_v20 = vld [vmem:[%s6031_s19 + $0xe0] ss:$8 sps:$4 sm:$0xff]  }
 0x66b   : > { %v4986_v22 = vld [vmem:[%s6031_s19 + $0xf4] ss:$8 sps:$4 sm:$0xff]  }
 0x66c   : > { %2781 = vmatmul.mubr.bf16.vlgmr.msra.gmra.mrb[12].mxu1 %v2542_v21  ;;  %v4983_v21 = vld [vmem:[%s6031_s19 + $0xe4] ss:$8 sps:$4 sm:$0xff]  }
 0x73f   : > { %v2782_v26 = vpop.f32.mrb[12].mxu1 }
 0x740   : > { %v2783_v27 = vadd.f32 %v2782_v26, %v2581_v24  ;;  %v2784_v28 = vpop.f32.mrb[13].mxu1  ;;  %v4992_v26 = vld [vmem:[%s6033_s11 + $0x14] ss:$8 sps:$4 sm:$0xff]  }
 0x741   : > { %v2785_v29 = vadd.f32 %v2784_v28, %v2585_v25  ;;  %v2786_v30 = vpop.f32.mrb[14].mxu1  ;;  %v4995_v28 = vld [vmem:[%s6033_s11 + $0x24] ss:$8 sps:$4 sm:$0xff]  }
 0x742   : > { %v2791_v31 = vadd.f32 %v2783_v27, %v6155_v34  ;;  %v2787_v32 = vadd.f32 %v2786_v30, %v2581_v24  ;;  %v2788_v33 = vpop.f32.mrb[15].mxu1  ;;  %v4939_v34 = vld [vmem:[%s6031_s19] ss:$8 sps:$4 sm:$0xff]   ;;  %v4990_v27 = vld [vmem:[%s6033_s11 + $0x10] ss:$8 sps:$4 sm:$0xff]  }
 0x743   : > { %v2792_v36 = vadd.f32 %v2785_v29, %v6132_v14  ;;  %v2789_v37 = vadd.f32 %v2788_v33, %v2585_v25  ;;  %3067 = vmatpush1.bf16.msra.mxu0 %v4939_v34  ;;  %v4942_v14 = vld [vmem:[%s6031_s19 + $0x10] ss:$8 sps:$4 sm:$0xff]   ;;  %v4987_v24 = vld [vmem:[%s6033_s11] ss:$8 sps:$4 sm:$0xff]   ;;  %v4989_v25 = vld [vmem:[%s6033_s11 + $0x4] ss:$8 sps:$4 sm:$0xff]  }
 0x744   : > { %v2793_v38 = vadd.f32 %v2787_v32, %v6157_v35  ;;  %3068 = vmatprep.subr.bf16.mxu0 %v4944_v43  ;;  %v4947_v35 = vld [vmem:[%s6031_s19 + $0x24] ss:$8 sps:$4 sm:$0xff]   ;;  %3319 = vmatprep.subr.bf16.mxu1 %v4989_v25  ;;  %v4993_v29 = vld [vmem:[%s6033_s11 + $0x20] ss:$8 sps:$4 sm:$0xff]   ;;  %v4998_v30 = vld [vmem:[%s6033_s11 + $0x34] ss:$8 sps:$4 sm:$0xff]  }
 0x745   : > { %v2794_v39 = vadd.f32 %v2789_v37, %v6134_v15  ;;  %v2797_v40 = vadd.f32 %v2792_v36, %v2791_v31  ;;  %v4945_v15 = vld [vmem:[%s6031_s19 + $0x20] ss:$8 sps:$4 sm:$0xff]   ;;  %3320 = vmatpush1.bf16.msra.mxu1 %v4987_v24  ;;  %v5001_v32 = vld [vmem:[%s6033_s11 + $0x44] ss:$8 sps:$4 sm:$0xff]   ;;  %v5002_v37 = vld [vmem:[%s6033_s11 + $0x50] ss:$8 sps:$4 sm:$0xff]  }
 0x746   : > { %3321 = vmatprep.subr.bf16.mxu1 %v4992_v26  ;;  %v4999_v33 = vld [vmem:[%s6033_s11 + $0x40] ss:$8 sps:$4 sm:$0xff]   ;;  %v5013_v34 = vld [vmem:[%s6033_s11 + $0x84] ss:$8 sps:$4 sm:$0xff]   ;;  %v5016_v43 = vld [vmem:[%s6033_s11 + $0x94] ss:$8 sps:$4 sm:$0xff]  }
 0x747   : > { %2798 = vadd.xlane.f32.xlu0 %v2797_v40  ;;  %v2800_v41 = vadd.f32 %v2794_v39, %v2793_v38  ;;  %3069 = vmatpush1.bf16.msra.mxu0 %v4942_v14  ;;  %v5010_v40 = vld [vmem:[%s6033_s11 + $0x74] ss:$8 sps:$4 sm:$0xff]   ;;  %v5014_v14 = vld [vmem:[%s6033_s11 + $0x90] ss:$8 sps:$4 sm:$0xff]  }
 0x748   : > { %3070 = vmatprep.subr.bf16.mxu0 %v4947_v35  ;;  %v5019_v35 = vld [vmem:[%s6033_s11 + $0xa4] ss:$8 sps:$4 sm:$0xff]  }
 0x749   : > { %2801 = vadd.xlane.f32.xlu1 %v2800_v41  ;;  %3322 = vmatpush1.bf16.msra.mxu1 %v4990_v27  ;;  %v5008_v41 = vld [vmem:[%s6033_s11 + $0x70] ss:$8 sps:$4 sm:$0xff]  }
 0x74a   : > { %3323 = vmatprep.subr.bf16.mxu1 %v4995_v28 }
 0x74b   : > { %3071 = vmatpush1.bf16.msra.mxu0 %v4945_v15  ;;  %v5017_v15 = vld [vmem:[%s6033_s11 + $0xa0] ss:$8 sps:$4 sm:$0xff]  }
 0x74c   : > { %3072 = vmatprep.subr.bf16.mxu0 %v4950_v44  ;;  %v5022_v44 = vld [vmem:[%s6033_s11 + $0xb4] ss:$8 sps:$4 sm:$0xff]  }
 0x74d   : > { %3324 = vmatpush1.bf16.msra.mxu1 %v4993_v29 }
 0x74e   : > { %3325 = vmatprep.subr.bf16.mxu1 %v4998_v30 }
 0x74f   : > { %3073 = vmatpush1.bf16.msra.mxu0 %v4948_v45  ;;  %v5020_v45 = vld [vmem:[%s6033_s11 + $0xb0] ss:$8 sps:$4 sm:$0xff]  }
 0x750   : > { %3074 = vmatprep.subr.bf16.mxu0 %v4953_v46  ;;  %v5025_v46 = vld [vmem:[%s6033_s11 + $0xc4] ss:$8 sps:$4 sm:$0xff]  }
 0x753   : > { %3075 = vmatpush1.bf16.msra.mxu0 %v4951_v48  ;;  %v5023_v48 = vld [vmem:[%s6033_s11 + $0xc0] ss:$8 sps:$4 sm:$0xff]  }
 0x754   : > { %3076 = vmatprep.subr.bf16.mxu0 %v4956_v49  ;;  %v5028_v49 = vld [vmem:[%s6033_s11 + $0xd4] ss:$8 sps:$4 sm:$0xff]  }
 0x757   : > { %3077 = vmatpush1.bf16.msra.mxu0 %v4954_v47  ;;  %v5026_v47 = vld [vmem:[%s6033_s11 + $0xd0] ss:$8 sps:$4 sm:$0xff]  }
 0x758   : > { %3078 = vmatprep.subr.bf16.mxu0 %v4959_v6 }
 0x75b   : > { %3079 = vmatpush1.bf16.msra.mxu0 %v4957_v50 }
 0x75c   : > { %3080 = vmatprep.subr.bf16.mxu0 %v4962_v51 }
 0x75f   : > { %3081 = vmatpush1.bf16.msra.mxu0 %v4960_v52 }
 0x760   : > { %3082 = vmatprep.subr.bf16.mxu0 %v4965_v53 }
 0x763   : > { %3083 = vmatpush1.bf16.msra.mxu0 %v4963_v54 }
 0x764   : > { %3084 = vmatprep.subr.bf16.mxu0 %v4968_v55  ;;  %v2795_v55 = vld [vmem:[%s6650_s2] sm:$0x3] }
 0x767   : > { %3085 = vmatpush1.bf16.msra.mxu0 %v4966_v56  ;;  %v2796_v56 = vld [vmem:[%s1043_s3] sm:$0x3] }
 0x768   : > { %3086 = vmatprep.subr.bf16.mxu0 %v4971_v8 }
 0x76b   : > { %3087 = vmatpush1.bf16.msra.mxu0 %v4969_v9 }
 0x76c   : > { %3088 = vmatprep.subr.bf16.mxu0 %v4974_v10 }
 0x76f   : > { %3089 = vmatpush1.bf16.msra.mxu0 %v4972_v11 }
 0x770   : > { %3090 = vmatprep.subr.bf16.mxu0 %v4977_v16 }
 0x773   : > { %3091 = vmatpush1.bf16.msra.mxu0 %v4975_v17 }
 0x774   : > { %3092 = vmatprep.subr.bf16.mxu0 %v4980_v18 }
 0x777   : > { %3093 = vmatpush1.bf16.msra.mxu0 %v4978_v19 }
 0x778   : > { %3094 = vmatprep.subr.bf16.mxu0 %v4983_v21  ;;  %v5029_v21 = vld [vmem:[%s6033_s11 + $0xe0] ss:$8 sps:$4 sm:$0xff]  }
 0x77b   : > { %3095 = vmatpush1.bf16.msra.mxu0 %v4981_v20  ;;  %v5031_v20 = vld [vmem:[%s6033_s11 + $0xe4] ss:$8 sps:$4 sm:$0xff]  }
 0x77c   : > { %3096 = vmatprep.subr.bf16.mxu0 %v4986_v22  ;;  %v2894_v22 = vld [vmem:[%s1055_s17] sm:$0x3] }
 0x77d   : > { %v2903_v24 = vrot.slane %v2894_v22, %v6208_v13 }
 0x77f   : > { %3097 = vmatpush1.bf16.msra.mxu0 %v4984_v23  ;;  %v2899_v23 = vrot.slane %v2894_v22, %v6206_v12 }
 0x7d4   : > { %v2799_v57 = vpop.xlane.xlu0 %2798 }
 0x7d5   : > { %v2804_v58 = vmul.f32 0.00390625, %v2799_v57  ;;  %v2834_v57 = vrot.slane %v2795_v55, %v6206_v12 }
 0x7d6   : > { %v2802_v59 = vpop.xlane.xlu1 %2801 }
 0x7d7   : > { %v6311_v60 = vsub.f32 %v2791_v31, %v2804_v58  ;;  %v6313_v61 = vsub.f32 %v2792_v36, %v2804_v58  ;;  %v2805_v62 = vmul.f32 0.00390625, %v2802_v59  ;;  %v4996_v31 = vld [vmem:[%s6033_s11 + $0x30] ss:$8 sps:$4 sm:$0xff]   ;;  %v5004_v36 = vld [vmem:[%s6033_s11 + $0x54] ss:$8 sps:$4 sm:$0xff]   ;;  %v2838_v58 = vrot.slane %v2795_v55, %v6208_v13 }
 0x7d8   : > { %3326 = vmatpush1.bf16.msra.mxu1 %v4996_v31 }
 0x7d9   : > { %v6315_v63 = vsub.f32 %v2793_v38, %v2805_v62  ;;  %v6317_v0 = vsub.f32 %v2794_v39, %v2805_v62  ;;  %v2810_v1 = vmul.f32 %v6311_v60, %v6311_v60  ;;  %v2811_v2 = vmul.f32 %v6313_v61, %v6313_v61  ;;  %3327 = vmatprep.subr.bf16.mxu1 %v5001_v32  ;;  %v5007_v38 = vld [vmem:[%s6033_s11 + $0x64] ss:$8 sps:$4 sm:$0xff]   ;;  %v5005_v39 = vld [vmem:[%s6033_s11 + $0x60] ss:$8 sps:$4 sm:$0xff]  }
 0x7db   : > { %v2814_v3 = vadd.f32 %v2811_v2, %v2810_v1  ;;  %v2812_v4 = vmul.f32 %v6315_v63, %v6315_v63  ;;  %v2813_v5 = vmul.f32 %v6317_v0, %v6317_v0 }
 0x7dc   : > { %3328 = vmatpush1.bf16.msra.mxu1 %v4999_v33 }
 0x7dd   : > { %2815 = vadd.xlane.f32.xlu0 %v2814_v3  ;;  %v2817_v7 = vadd.f32 %v2813_v5, %v2812_v4  ;;  %3329 = vmatprep.subr.bf16.mxu1 %v5004_v36  ;;  %v2849_v3 = vrot.slane %v2796_v56, %v6206_v12  ;;  %v2853_v4 = vrot.slane %v2796_v56, %v6208_v13 }
 0x7df   : > { %2818 = vadd.xlane.f32.xlu1 %v2817_v7 }
 0x7e0   : > { %3330 = vmatpush1.bf16.msra.mxu1 %v5002_v37 }
 0x7e1   : > { %3331 = vmatprep.subr.bf16.mxu1 %v5007_v38 }
 0x7e4   : > { %3332 = vmatpush1.bf16.msra.mxu1 %v5005_v39 }
 0x7e5   : > { %3333 = vmatprep.subr.bf16.mxu1 %v5010_v40 }
 0x7e8   : > { %3334 = vmatpush1.bf16.msra.mxu1 %v5008_v41  ;;  %v3147_v41 = vld [vmem:[%s1059_s15] sm:$0x3] }
 0x7e9   : > { %3335 = vmatprep.subr.bf16.mxu1 %v5013_v34  ;;  %v3152_v34 = vrot.slane %v3147_v41, %v6206_v12 }
 0x7ec   : > { %3336 = vmatpush1.bf16.msra.mxu1 %v5011_v42  ;;  %v3156_v42 = vrot.slane %v3147_v41, %v6208_v13  ;;  %v5515_v41 = vmov (!%p4293_p11), 0.0|0.0  }
 0x7ed   : > { %3337 = vmatprep.subr.bf16.mxu1 %v5016_v43 }
 0x7f0   : > { %3338 = vmatpush1.bf16.msra.mxu1 %v5014_v14 }
 0x7f1   : > { %3339 = vmatprep.subr.bf16.mxu1 %v5019_v35 }
 0x7f4   : > { %3340 = vmatpush1.bf16.msra.mxu1 %v5017_v15 }
 0x7f5   : > { %3341 = vmatprep.subr.bf16.mxu1 %v5022_v44 }
 0x7f8   : > { %3342 = vmatpush1.bf16.msra.mxu1 %v5020_v45 }
 0x7f9   : > { %3343 = vmatprep.subr.bf16.mxu1 %v5025_v46 }
 0x7fc   : > { %3344 = vmatpush1.bf16.msra.mxu1 %v5023_v48 }
 0x7fd   : > { %3345 = vmatprep.subr.bf16.mxu1 %v5028_v49 }
 0x800   : > { %3346 = vmatpush1.bf16.msra.mxu1 %v5026_v47 }
 0x801   : > { %3347 = vmatprep.subr.bf16.mxu1 %v5031_v20 }
 0x804   : > { %3348 = vmatpush1.bf16.msra.mxu1 %v5029_v21 }
 0x86a   : > { %v2816_v6 = vpop.xlane.xlu0 %2815 }
 0x86b   : > { %v2820_v50 = vmul.f32 0.00390625, %v2816_v6 }
 0x86c   : > { %v2819_v51 = vpop.xlane.xlu1 %2818 }
 0x86d   : > { %v2822_v52 = vadd.f32 1e-05, %v2820_v50  ;;  %v2821_v53 = vmul.f32 0.00390625, %v2819_v51 }
 0x86f   : > { %5051 = vrsqrt.f32 %v2822_v52  ;;  %v2823_v54 = vadd.f32 1e-05, %v2821_v53 }
 0x871   : > { %5053 = vrsqrt.f32 %v2823_v54 }
 0x879   : > { %v5052_v59 = vpop.eup %5051 }
 0x87a   : > { %v2826_v62 = vmul.f32 %v5052_v59, %v6311_v60  ;;  %v2827_v1 = vmul.f32 %v5052_v59, %v6313_v61 }
 0x87b   : > { %v5054_v2 = vpop.eup %5053 }
 0x87c   : > { %v2828_v5 = vmul.f32 %v5054_v2, %v6315_v63  ;;  %v2829_v7 = vmul.f32 %v5054_v2, %v6317_v0  ;;  %v2842_v8 = vmul.f32 %v2838_v58, %v2827_v1  ;;  %v2841_v9 = vmul.f32 %v2834_v57, %v2826_v62  ;;  %v5034_v63 = vld [vmem:[%s6033_s11 + $0xf4] ss:$8 sps:$4 sm:$0xff]   ;;  %v5032_v0 = vld [vmem:[%s6033_s11 + $0xf0] ss:$8 sps:$4 sm:$0xff]  }
 0x87d   : > { %3349 = vmatprep.subr.bf16.mxu1 %v5034_v63 }
 0x87e   : > { %v2844_v10 = vmul.f32 %v2838_v58, %v2829_v7  ;;  %v2843_v11 = vmul.f32 %v2834_v57, %v2828_v5  ;;  %v2857_v60 = vadd.f32 %v2853_v4, %v2842_v8  ;;  %v2856_v16 = vadd.f32 %v2849_v3, %v2841_v9  ;;  %3350 = vmatpush1.bf16.msra.mxu1 %v5032_v0 }
 0x87f   : > { %4540 = vmatprep.subr.bf16.mxu1 (!%p4293_p11), %v5515_v41 }
 0x880   : > { %v2859_v61 = vadd.f32 %v2853_v4, %v2844_v10  ;;  %v2858_v17 = vadd.f32 %v2849_v3, %v2843_v11 }
 0x882   : > { %v2861_v18 = vpack.c.bf16 %v2859_v61, %v2857_v60  ;;  %v2860_v19 = vpack.c.bf16 %v2858_v17, %v2856_v16 }
 0x884   : > { %3098 = vmatprep.mubr.bf16.mxu0 %v2861_v18 }
 0x885   : > { %3099 = vmatmul.mubr.bf16.vlgmr.msra.gmra.mrb[16].mxu0 %v2860_v19 }
 0x958   : > { %v3100_v25 = vpop.f32.mrb[16].mxu0 }
 0x959   : > { %v3101_v26 = vadd.f32 %v3100_v25, %v2899_v23  ;;  %v3102_v27 = vpop.f32.mrb[17].mxu0 }
 0x95a   : > { %v3103_v28 = vadd.f32 %v3102_v27, %v2903_v24  ;;  %v3104_v29 = vpop.f32.mrb[18].mxu0 }
 0x95b   : > { %v3105_v30 = vadd.f32 %v3104_v29, %v2899_v23  ;;  %v3106_v31 = vpop.f32.mrb[19].mxu0  ;;  %v3109_v33 = vmax.f32 %v3101_v26, 0.0 }
 0x95c   : > { %v3107_v32 = vadd.f32 %v3106_v31, %v2903_v24  ;;  %v3110_v37 = vmax.f32 %v3103_v28, 0.0 }
 0x95d   : > { %v3111_v36 = vmax.f32 %v3105_v30, 0.0 }
 0x95e   : > { %v3112_v38 = vmax.f32 %v3107_v32, 0.0 }
 0x95f   : > { %v3113_v39 = vpack.c.bf16 %v3111_v36, %v3109_v33  ;;  %v3442_v36 = vld [vmem:[#allocation15] sm:$0xff] (!%p4293_p11) }
 0x960   : > { %v3114_v40 = vpack.c.bf16 %v3112_v38, %v3110_v37  ;;  %v3443_v38 = vld [vmem:[#allocation15 + $0x8] sm:$0xff] (!%p4293_p11) }
 0x962   : > { %3351 = vmatprep.mubr.bf16.mxu1 %v3114_v40  ;;  %v3461_v40 = vld [vmem:[#allocation15 + $0x98] sm:$0xff] (!%p4293_p11) }
 0x963   : > { %3352 = vmatmul.mubr.bf16.vlgmr.msra.gmra.mrb[16].mxu1 %v3113_v39  ;;  %v3460_v39 = vld [vmem:[#allocation15 + $0x90] sm:$0xff] (!%p4293_p11) }
 0xa36   : > { %v3353_v43 = vpop.f32.mrb[16].mxu1 }
 0xa37   : > { %v3354_v14 = vadd.f32 %v3353_v43, %v3152_v34  ;;  %v3355_v35 = vpop.f32.mrb[17].mxu1  ;;  %v3444_v43 = vld [vmem:[#allocation15 + $0x10] sm:$0xff] (!%p4293_p11) }
 0xa38   : > { %v3356_v15 = vadd.f32 %v3355_v35, %v3156_v42  ;;  %v3357_v44 = vpop.f32.mrb[18].mxu1  ;;  %v3462_v35 = vld [vmem:[#allocation15 + $0xa0] sm:$0xff] (!%p4293_p11) }
 0xa39   : > { %v3362_v45 = vadd.f32 %v3354_v14, %v2856_v16  ;;  %v3358_v46 = vadd.f32 %v3357_v44, %v3152_v34  ;;  %v3359_v48 = vpop.f32.mrb[19].mxu1  ;;  %v3366_v16 = vld [vmem:[%s1047_s9] sm:$0x3]  ;;  %v4510_v34 = vpack.c.bf16 (!%p4293_p11), %v3443_v38, %v3442_v36  ;;  %v3445_v14 = vld [vmem:[#allocation15 + $0x18] sm:$0xff] (!%p4293_p11)  ;;  %v3568_v38 = vld [vmem:[#allocation16 + $0x50] sm:$0xff] (!%p4293_p11) }
 0xa3a   : > { %v3363_v49 = vadd.f32 %v3356_v15, %v2857_v60  ;;  %v3360_v47 = vadd.f32 %v3359_v48, %v3156_v42  ;;  %v3404_v18 = vrot.slane %v3366_v16, %v6206_v12  ;;  %v3408_v19 = vrot.slane %v3366_v16, %v6208_v13  ;;  %v3463_v15 = vld [vmem:[#allocation15 + $0xa8] sm:$0xff] (!%p4293_p11)  ;;  %v3453_v16 = vld [vmem:[#allocation15 + $0x58] sm:$0xff] (!%p4293_p11) }
 0xa3b   : > { %v3364_v6 = vadd.f32 %v3358_v46, %v2858_v17  ;;  %v3367_v17 = vld [vmem:[%s1051_s21] sm:$0x3]  ;;  %v4512_v42 = vpack.c.bf16 (!%p4293_p11), %v3461_v40, %v3460_v39  ;;  %v4514_v44 = vpack.c.bf16 (!%p4293_p11), %v3445_v14, %v3444_v43  ;;  %v3446_v46 = vld [vmem:[#allocation15 + $0x20] sm:$0xff] (!%p4293_p11)  ;;  %v3569_v39 = vld [vmem:[#allocation16 + $0x58] sm:$0xff] (!%p4293_p11)  ;;  %s6656_s21 = sld [smem:[#allocation53_spill]] (!%p4293_p11) }
 0xa3c   : > { %v3365_v50 = vadd.f32 %v3360_v47, %v2859_v61  ;;  %v3368_v51 = vadd.f32 %v3363_v49, %v3362_v45  ;;  %v3419_v21 = vrot.slane %v3367_v17, %v6206_v12  ;;  %v3423_v63 = vrot.slane %v3367_v17, %v6208_v13  ;;  %v3458_v12 = vld [vmem:[#allocation15 + $0x80] sm:$0xff] (!%p4293_p11)  ;;  %v3459_v13 = vld [vmem:[#allocation15 + $0x88] sm:$0xff] (!%p4293_p11)  ;;  %v3465_v47 = vld [vmem:[#allocation15 + $0xb8] sm:$0xff] (!%p4293_p11) }
 0xa3d   : > { %v4508_v37 = vpack.c.bf16 (!%p4293_p11), %v3459_v13, %v3458_v12  ;;  %v3447_v48 = vld [vmem:[#allocation15 + $0x28] sm:$0xff] (!%p4293_p11)  ;;  %v3470_v17 = vld [vmem:[#allocation15 + $0xe0] sm:$0xff] (!%p4293_p11)  ;;  %v4556_v40 = vpack.c.bf16 (!%p4293_p11), %v3569_v39, %v3568_v38  ;;  %v3572_v14 = vld [vmem:[#allocation16 + $0x70] sm:$0xff] (!%p4293_p11) }
 0xa3e   : > { %3369 = vadd.xlane.f32.xlu0 %v3368_v51  ;;  %v3371_v52 = vadd.f32 %v3365_v50, %v3364_v6  ;;  %v3448_v51 = vld [vmem:[#allocation15 + $0x30] sm:$0xff] (!%p4293_p11) }
 0xa3f   : > { %4509 = vmatprep.subr.bf16.mxu0 (!%p4293_p11), %v4508_v37 }
 0xa40   : > { %3372 = vadd.xlane.f32.xlu1 %v3371_v52  ;;  %4511 = vmatpush3.bf16.msra.mxu0 (!%p4293_p11), %v4510_v34  ;;  %v3449_v52 = vld [vmem:[#allocation15 + $0x38] sm:$0xff] (!%p4293_p11)  ;;  %v3570_v34 = vld [vmem:[#allocation16 + $0x60] sm:$0xff] (!%p4293_p11) }
 0xa41   : > { %4513 = vmatprep.subr.bf16.mxu0 (!%p4293_p11), %v4512_v42  ;;  %v3571_v42 = vld [vmem:[#allocation16 + $0x68] sm:$0xff] (!%p4293_p11) }
 0xa42   : > { %v4559_v43 = vpack.c.bf16 (!%p4293_p11), %v3571_v42, %v3570_v34 }
 0xa44   : > { %4515 = vmatpush3.bf16.msra.mxu0 (!%p4293_p11), %v4514_v44  ;;  %v5517_v44 = vmov (!%p4293_p11), 0.0  }
 0xa45   : > { %4466 = vmatprep.mubr.msk.f32.mxu1 (!%p4293_p11), %vm5516_vm3, %v5517_v44 }
 0xacb   : > { %v3370_v53 = vpop.xlane.xlu0 %3369 }
 0xacc   : > { %v3374_v54 = vmul.f32 0.00390625, %v3370_v53  ;;  %v3466_v53 = vld [vmem:[#allocation15 + $0xc0] sm:$0xff] (!%p4293_p11) }
 0xacd   : > { %v3373_v55 = vpop.xlane.xlu1 %3372 }
 0xace   : > { %v3376_v56 = vsub.f32 %v3362_v45, %v3374_v54  ;;  %v3377_v57 = vsub.f32 %v3363_v49, %v3374_v54  ;;  %v3375_v58 = vmul.f32 0.00390625, %v3373_v55  ;;  %v4516_v45 = vpack.c.bf16 (!%p4293_p11), %v3463_v15, %v3462_v35  ;;  %v3464_v49 = vld [vmem:[#allocation15 + $0xb0] sm:$0xff] (!%p4293_p11)  ;;  %v3467_v54 = vld [vmem:[#allocation15 + $0xc8] sm:$0xff] (!%p4293_p11)  ;;  %v3573_v35 = vld [vmem:[#allocation16 + $0x78] sm:$0xff] (!%p4293_p11) }
 0xacf   : > { %v4562_v15 = vpack.c.bf16 (!%p4293_p11), %v3573_v35, %v3572_v14 }
 0xad0   : > { %v3378_v59 = vsub.f32 %v3364_v6, %v3375_v58  ;;  %v3379_v62 = vsub.f32 %v3365_v50, %v3375_v58  ;;  %v3380_v1 = vmul.f32 %v3376_v56, %v3376_v56  ;;  %v3381_v2 = vmul.f32 %v3377_v57, %v3377_v57  ;;  %4517 = vmatprep.subr.bf16.mxu0 (!%p4293_p11), %v4516_v45  ;;  %v3559_v58 = vld [vmem:[#allocation16 + $0x8] sm:$0xff] (!%p4293_p11)  ;;  %v3659_v45 = vld [vmem:[#allocation17] sm:$0xff] (!%p4293_p11) }
 0xad1   : > { %v4518_v6 = vpack.c.bf16 (!%p4293_p11), %v3447_v48, %v3446_v46  ;;  %v4520_v50 = vpack.c.bf16 (!%p4293_p11), %v3465_v47, %v3464_v49  ;;  %v3660_v46 = vld [vmem:[#allocation17 + $0x8] sm:$0xff] (!%p4293_p11)  ;;  %v3661_v48 = vld [vmem:[#allocation17 + $0x10] sm:$0xff] (!%p4293_p11)  ;;  %v3662_v47 = vld [vmem:[#allocation17 + $0x18] sm:$0xff] (!%p4293_p11) }
 0xad2   : > { %v3384_v3 = vadd.f32 %v3381_v2, %v3380_v1  ;;  %v3382_v4 = vmul.f32 %v3378_v59, %v3378_v59  ;;  %v3383_v5 = vmul.f32 %v3379_v62, %v3379_v62  ;;  %v3450_v1 = vld [vmem:[#allocation15 + $0x40] sm:$0xff] (!%p4293_p11)  ;;  %v3451_v2 = vld [vmem:[#allocation15 + $0x48] sm:$0xff] (!%p4293_p11)  ;;  %v4565_v49 = vpack.c.bf16 (!%p4293_p11), %v3660_v46, %v3659_v45 }
 0xad3   : > { %4519 = vmatpush3.bf16.msra.mxu0 (!%p4293_p11), %v4518_v6  ;;  %v4568_v6 = vpack.c.bf16 (!%p4293_p11), %v3662_v47, %v3661_v48 }
 0xad4   : > { %3385 = vadd.xlane.f32.xlu0 %v3384_v3  ;;  %v3387_v7 = vadd.f32 %v3383_v5, %v3382_v4  ;;  %4521 = vmatprep.subr.bf16.mxu0 (!%p4293_p11), %v4520_v50  ;;  %v3561_v4 = vld [vmem:[#allocation16 + $0x18] sm:$0xff] (!%p4293_p11)  ;;  %v3468_v5 = vld [vmem:[#allocation15 + $0xd0] sm:$0xff] (!%p4293_p11)  ;;  %v3663_v50 = vld [vmem:[#allocation17 + $0x20] sm:$0xff] (!%p4293_p11) }
 0xad6   : > { %3388 = vadd.xlane.f32.xlu1 %v3387_v7  ;;  %v3469_v7 = vld [vmem:[#allocation15 + $0xd8] sm:$0xff] (!%p4293_p11) }
 0xb61   : > { %v3386_v8 = vpop.xlane.xlu0 %3385 }
 0xb62   : > { %v3390_v9 = vmul.f32 0.00390625, %v3386_v8 }
 0xb63   : > { %v3389_v10 = vpop.xlane.xlu1 %3388 }
 0xb64   : > { %v3392_v11 = vadd.f32 1e-05, %v3390_v9  ;;  %v3391_v60 = vmul.f32 0.00390625, %v3389_v10  ;;  %v4526_v9 = vpack.c.bf16 (!%p4293_p11), %v3451_v2, %v3450_v1  ;;  %v3562_v10 = vld [vmem:[#allocation16 + $0x20] sm:$0xff] (!%p4293_p11) }
 0xb65   : > { %v3671_v2 = vld [vmem:[#allocation17 + $0x60] sm:$0xff] (!%p4293_p11) }
 0xb66   : > { %5055 = vrsqrt.f32 %v3392_v11  ;;  %v3393_v61 = vadd.f32 1e-05, %v3391_v60  ;;  %v3563_v11 = vld [vmem:[#allocation16 + $0x28] sm:$0xff] (!%p4293_p11)  ;;  %v4528_v60 = vpack.c.bf16 (!%p4293_p11), %v3469_v7, %v3468_v5 }
 0xb67   : > { %v4294_v7 = vld [vmem:[%s6656_s21] ss:$0 sm:$0xff] (!%p4293_p11) }
 0xb68   : > { %5057 = vrsqrt.f32 %v3393_v61  ;;  %v3452_v61 = vld [vmem:[#allocation15 + $0x50] sm:$0xff] (!%p4293_p11) }
 0xb70   : > { %v5056_v20 = vpop.eup %5055 }
 0xb71   : > { %v3396_v0 = vmul.f32 %v5056_v20, %v3376_v56  ;;  %v3397_v22 = vmul.f32 %v5056_v20, %v3377_v57  ;;  %v4522_v56 = vpack.c.bf16 (!%p4293_p11), %v3449_v52, %v3448_v51  ;;  %v3558_v57 = vld [vmem:[#allocation16] sm:$0xff] (!%p4293_p11)  ;;  %v4530_v20 = vpack.c.bf16 (!%p4293_p11), %v3453_v16, %v3452_v61  ;;  %v3664_v51 = vld [vmem:[#allocation17 + $0x28] sm:$0xff] (!%p4293_p11) }
 0xb72   : > { %v5058_v23 = vpop.eup %5057  ;;  %v4541_v3 = vpack.c.bf16 (!%p4293_p11), %v3559_v58, %v3558_v57  ;;  %v4571_v52 = vpack.c.bf16 (!%p4293_p11), %v3664_v51, %v3663_v50  ;;  %v3668_v57 = vld [vmem:[#allocation17 + $0x48] sm:$0xff] (!%p4293_p11) }
 0xb73   : > { %v3411_v24 = vmul.f32 %v3404_v18, %v3396_v0  ;;  %v3412_v25 = vmul.f32 %v3408_v19, %v3397_v22  ;;  %v3398_v26 = vmul.f32 %v5058_v23, %v3378_v59  ;;  %v3399_v27 = vmul.f32 %v5058_v23, %v3379_v62  ;;  %3437 = sbr.rel (%p4293_p11) target bundleno = 3605 (0xe15), region = 160  ;;  %v3560_v59 = vld [vmem:[#allocation16 + $0x10] sm:$0xff] (!%p4293_p11)  ;;  %4523 = vmatpush3.bf16.msra.mxu0 (!%p4293_p11), %v4522_v56  ;;  %v3454_v22 = vld [vmem:[#allocation15 + $0x60] sm:$0xff] (!%p4293_p11)  ;;  %v3455_v23 = vld [vmem:[#allocation15 + $0x68] sm:$0xff] (!%p4293_p11) }
 0xb74   : > { %v4524_v62 = vpack.c.bf16 (!%p4293_p11), %v3467_v54, %v3466_v53  ;;  %4542 = vmatpush3.bf16.msra.mxu1 (!%p4293_p11), %v4541_v3  ;;  %v4544_v8 = vpack.c.bf16 (!%p4293_p11), %v3561_v4, %v3560_v59  ;;  %v3665_v53 = vld [vmem:[#allocation17 + $0x30] sm:$0xff] (!%p4293_p11)  ;;  %v3666_v54 = vld [vmem:[#allocation17 + $0x38] sm:$0xff] (!%p4293_p11)  ;;  %v3667_v56 = vld [vmem:[#allocation17 + $0x40] sm:$0xff] (!%p4293_p11) }
 0xb75   : > { %v3426_v28 = vadd.f32 %v3419_v21, %v3411_v24  ;;  %v3427_v29 = vadd.f32 %v3423_v63, %v3412_v25  ;;  %v3413_v30 = vmul.f32 %v3404_v18, %v3398_v26  ;;  %v3414_v31 = vmul.f32 %v3408_v19, %v3399_v27  ;;  %4543 = vmatprep.subr.bf16.mxu1 (!%p4293_p11), %v5515_v41  ;;  %v3471_v18 = vld [vmem:[#allocation15 + $0xe8] sm:$0xff] (!%p4293_p11)  ;;  %v3472_v24 = vld [vmem:[#allocation15 + $0xf0] sm:$0xff] (!%p4293_p11)  ;;  %v3473_v25 = vld [vmem:[#allocation15 + $0xf8] sm:$0xff] (!%p4293_p11) }
 0xb76   : > { %4525 = vmatprep.subr.bf16.mxu0 (!%p4293_p11), %v4524_v62  ;;  %v4547_v19 = vpack.c.bf16 (!%p4293_p11), %v3563_v11, %v3562_v10  ;;  %v4532_v0 = vpack.c.bf16 (!%p4293_p11), %v3471_v18, %v3470_v17  ;;  %v4534_v27 = vpack.c.bf16 (!%p4293_p11), %v3455_v23, %v3454_v22  ;;  %v4577_v58 = vpack.c.bf16 (!%p4293_p11), %v3668_v57, %v3667_v56  ;;  %v3669_v59 = vld [vmem:[#allocation17 + $0x50] sm:$0xff] (!%p4293_p11)  ;;  %v3670_v62 = vld [vmem:[#allocation17 + $0x58] sm:$0xff] (!%p4293_p11)  ;;  %v3672_v3 = vld [vmem:[#allocation17 + $0x68] sm:$0xff] (!%p4293_p11) }
 0xb77   : > { %3430 = vst [vmem:[#allocation2] sm:$0xff] %v3426_v28  ;;  %3431 = vst [vmem:[#allocation2 + $0x8] sm:$0xff] %v3427_v29  ;;  %v3428_v32 = vadd.f32 %v3419_v21, %v3413_v30  ;;  %v3429_v33 = vadd.f32 %v3423_v63, %v3414_v31  ;;  %4527 = vmatpush3.bf16.msra.mxu0 (!%p4293_p11), %v4526_v9  ;;  %v3564_v21 = vld [vmem:[#allocation16 + $0x30] sm:$0xff] (!%p4293_p11)  ;;  %v3565_v63 = vld [vmem:[#allocation16 + $0x38] sm:$0xff] (!%p4293_p11)  ;;  %v4536_v30 = vpack.c.bf16 (!%p4293_p11), %v3473_v25, %v3472_v24 }
 0xb78   : > { %4545 = vmatpush3.bf16.msra.mxu1 (!%p4293_p11), %v4544_v8  ;;  %4529 = vmatprep.subr.bf16.mxu0 (!%p4293_p11), %v4528_v60  ;;  %v4550_v26 = vpack.c.bf16 (!%p4293_p11), %v3565_v63, %v3564_v21  ;;  %v3566_v28 = vld [vmem:[#allocation16 + $0x40] sm:$0xff] (!%p4293_p11)  ;;  %v3567_v29 = vld [vmem:[#allocation16 + $0x48] sm:$0xff] (!%p4293_p11)  ;;  %v3456_v31 = vld [vmem:[#allocation15 + $0x70] sm:$0xff] (!%p4293_p11)  ;;  %v4580_v1 = vpack.c.bf16 (!%p4293_p11), %v3670_v62, %v3669_v59  ;;  %v4583_v4 = vpack.c.bf16 (!%p4293_p11), %v3672_v3, %v3671_v2 }
 0xb79   : > { %3432 = vst [vmem:[#allocation2 + $0x10] sm:$0xff] %v3428_v32  ;;  %3433 = vst [vmem:[#allocation2 + $0x18] sm:$0xff] %v3429_v33  ;;  %4546 = vmatprep.subr.bf16.mxu1 (!%p4293_p11), %v5515_v41  ;;  %v3457_v32 = vld [vmem:[#allocation15 + $0x78] sm:$0xff] (!%p4293_p11)  ;;  %v4553_v33 = vpack.c.bf16 (!%p4293_p11), %v3567_v29, %v3566_v28  ;;  %v4295_v63 = vld [vmem:[%s6657_s14] ss:$0 sm:$0xff] (!%p4293_p11) }
 0xb7a   : > { %v4538_v12 = vpack.c.bf16 %v3457_v32, %v3456_v31  ;;  %v4296_v25 = vld [vmem:[%s6658_s8] ss:$0 sm:$0xff] }
 0xb7b   : > { %4531 = vmatpush3.bf16.msra.mxu0 %v4530_v20  ;;  %v3674_v20 = vld [vmem:[#allocation17 + $0x78] sm:$0xff] }
 0xb7c   : > { %4548 = vmatpush3.bf16.msra.mxu1 %v4547_v19  ;;  %4533 = vmatprep.subr.bf16.mxu0 %v4532_v0 }
 0xb7d   : > { %4549 = vmatprep.subr.bf16.mxu1 %v5515_v41 }
 0xb7e   : > { %v3439_v55 = vld [vmem:[#allocation2 + $0x8] sm:$0xff]  ;;  %v3438_v13 = vld [vmem:[#allocation2] sm:$0xff] }
 0xb7f   : > { %3545 = vmatprep.mubr.f32.mxu0 %v3439_v55  ;;  %4535 = vmatpush3.bf16.msra.mxu0 %v4534_v27  ;;  %v4574_v55 = vpack.c.bf16 %v3666_v54, %v3665_v53 }
 0xb80   : > { %4551 = vmatpush3.bf16.msra.mxu1 %v4550_v26  ;;  %4537 = vmatprep.subr.bf16.mxu0 %v4536_v30  ;;  %v3441_v36 = vld [vmem:[#allocation2 + $0x18] sm:$0xff]  ;;  %v3440_v37 = vld [vmem:[#allocation2 + $0x10] sm:$0xff] }
 0xb81   : > { %4552 = vmatprep.subr.bf16.mxu1 %v5515_v41 }
 0xb83   : > { %4539 = vmatpush3.bf16.msra.mxu0 %v4538_v12 }
 0xb84   : > { %4554 = vmatpush3.bf16.msra.mxu1 %v4553_v33  ;;  %4564 = vmatprep.subr.bf16.mxu0 %v5515_v41 }
 0xb85   : > { %4555 = vmatprep.subr.bf16.mxu1 %v5515_v41 }
 0xb86   : > { %3546 = vmatmul.mubr.f32.vlgmr.msra.gmra.mrb[0].mxu0 %v3438_v13 }
 0xb87   : > { %3550 = vmatprep.mubr.f32.mxu0 %v3441_v36  ;;  %4566 = vmatpush3.bf16.msra.mxu0 %v4565_v49 }
 0xb88   : > { %4557 = vmatpush3.bf16.msra.mxu1 %v4556_v40  ;;  %4567 = vmatprep.subr.bf16.mxu0 %v5515_v41 }
 0xb89   : > { %4558 = vmatprep.subr.bf16.mxu1 %v5515_v41 }
 0xb8a   : > { %3551 = vmatmul.mubr.f32.gmra.mrb[2].mxu0 %v3440_v37 }
 0xb8b   : > { %4501 = vmatprep.mubr.msk.f32.mxu0 %vm5516_vm3, %v5517_v44  ;;  %4569 = vmatpush3.bf16.msra.mxu0 %v4568_v6 }
 0xb8c   : > { %4560 = vmatpush3.bf16.msra.mxu1 %v4559_v43  ;;  %4570 = vmatprep.subr.bf16.mxu0 %v5515_v41 }
 0xb8d   : > { %4561 = vmatprep.subr.bf16.mxu1 %v5515_v41 }
 0xb8f   : > { %4572 = vmatpush3.bf16.msra.mxu0 %v4571_v52 }
 0xb90   : > { %4563 = vmatpush3.bf16.msra.mxu1 %v4562_v15  ;;  %4573 = vmatprep.subr.bf16.mxu0 %v5515_v41 }
 0xb93   : > { %4575 = vmatpush3.bf16.msra.mxu0 %v4574_v55 }
 0xb94   : > { %4576 = vmatprep.subr.bf16.mxu0 %v5515_v41 }
 0xb97   : > { %4578 = vmatpush3.bf16.msra.mxu0 %v4577_v58 }
 0xb98   : > { %4579 = vmatprep.subr.bf16.mxu0 %v5515_v41 }
 0xb9b   : > { %4581 = vmatpush3.bf16.msra.mxu0 %v4580_v1 }
 0xb9c   : > { %4582 = vmatprep.subr.bf16.mxu0 %v5515_v41 }
 0xb9f   : > { %4584 = vmatpush3.bf16.msra.mxu0 %v4583_v4 }
 0xba0   : > { %4585 = vmatprep.subr.bf16.mxu0 %v5515_v41  ;;  %v3673_v41 = vld [vmem:[#allocation17 + $0x70] sm:$0xff] }
 0xba1   : > { %v4586_v21 = vpack.c.bf16 %v3674_v20, %v3673_v41 }
 0xba3   : > { %4587 = vmatpush3.bf16.msra.mxu0 %v4586_v21 }
 0xc59   : > { %v4354_v5 = vpop.f32.mrb[0].mxu0 }
 0xc5a   : > { %v4355_v8 = vpop.f32.mrb[1].mxu0 }
 0xc5b   : > { %v4356_v9 = vadd.f32 %v4355_v8, %v4354_v5 }
 0xc5d   : > { %v3548_v10 = vadd.f32 %v4356_v9, %v4294_v7  ;;  %v4357_v11 = vpop.f32.mrb[2].mxu0 }
 0xc5e   : > { %v4358_v60 = vpop.f32.mrb[3].mxu0 }
 0xc5f   : > { %3556 = vst [vmem:[#allocation19] sm:$0xff] %v3548_v10  ;;  %v4359_v61 = vadd.f32 %v4358_v60, %v4357_v11  ;;  %v3583_v17 = vrot.slane %v3548_v10, 7 }
 0xc61   : > { %v3553_v16 = vadd.f32 %v4359_v61, %v4294_v7 }
 0xc63   : > { %3557 = vst [vmem:[#allocation19 + $0x8] sm:$0xff] %v3553_v16  ;;  %v3584_v18 = vrot.slane %v3553_v16, 6 }
 0xc65   : > { %v3586_v19 = vsel %vm3585_vm4, %v3584_v18, %v3583_v17 }
 0xc66   : > { %4467 = vmatmul.mubr.f32.vlgmr.msra.gmra.mrb[0].mxu1 %v3586_v19 }
 0xd39   : > { %v3654_v0 = vpop.f32.mrb[0].mxu1 }
 0xd3a   : > { %v3655_v22 = vadd.f32 %v4295_v63, %v3654_v0  ;;  %v4468_v23 = vpop.f32.mrb[1].mxu1 }
 0xd3c   : > { %v3658_v24 = vmax.f32 %v3655_v22, 0.0 }
 0xd3e   : > { %4502 = vmatmul.mubr.f32.vlgmr.msra.gmra.mrb[4].mxu0 %v3658_v24 }
 0xe11   : > { %v3748_v26 = vpop.f32.mrb[4].mxu0 }
 0xe12   : > { %v3749_v27 = vadd.f32 %v4296_v25, %v3748_v26  ;;  %v4503_v28 = vpop.f32.mrb[5].mxu0 }
 0xe14   : > { %3752 = vst [vmem:[#allocation20] sm:$0x3] %v3749_v27 }
 0xe15 PF: > { %p4688_p6 = scmp.eq.s32.totalorder %s5663_s26, 1  ;;  %s5518_s19 = smov [#allocation19]  }
 0xe16   : > { %s3759_s24 = sshll.u32 %s5518_s19, 4  ;;  %s3760_s24 = int_to_ptr.vmem [resolvable:$true] %s3759_s24 }
 0xe17   : > { %s5375_s2 = scalar_lea.vmem %s3760_s24, 256  ;;  %p5382_p1 = scmp.lt.s32.totalorder %s3760_s24, %s3760_s24 }
 0xe18   : > { %p5376_p7 = scmp.ne.s32.totalorder %s3760_s24, %s5375_s2  ;;  %p5383_p0 = scmp.lt.s32.totalorder %s5375_s2, %s5375_s2 }
 0xe1a   : > { %p5377_p9 = pnand %p5376_p7, %p4688_p6  ;;  %p5384_p5 = por %p5383_p0, %p5382_p1 }
 0xe1c   : > { %p5378_p2 = pneg %p5377_p9 }
 0xe1e   : > { %p5385_p8 = pnand %p5384_p5, %p5378_p2 }
 0xe20   : > { %5388 = shalt.err (!%p5385_p8)
}
 0xe21   : > { %s6659_s4 = sld [smem:[#allocation56_spill]] }
 0xe27   : > { %s6660_s5 = smov %s6659_s4  ;;  %s5389_s3 = scalar_lea.hbm %s6659_s4, 256 }
 0xe28   : > { %p5390_p3 = scmp.ne.s32.totalorder %s6660_s5, %s5389_s3  ;;  %p5395_p10 = scmp.lt.u32.totalorder %s5389_s3, %s6660_s5 }
 0xe2a   : > { %p5391_p4 = pnand %p5390_p3, %p4688_p6 }
 0xe2c   : > { %p5392_p12 = pneg %p5391_p4 }
 0xe2e   : > { %p5397_p13 = pnand %p5395_p10, %p5392_p12 }
 0xe30   : > { %5400 = shalt.err (!%p5397_p13)
}
 0xe31   : > { %s5519_s10 = smov 128   ;;  %s5520_s22 = smov 8  }
 0xe32   : > { %4631 = dma.vmem_to_hbm [thread:$0]  (%p4688_p6), %s3760_s24, 256, %s6660_s5, [#allocation5], %s5519_s10, %s5519_s10, %s5520_s22  }
 0xe33   : > { %s5521_s7 = smov [#allocation20]  }
 0xe34   : > { %s3773_s28 = sshll.u32 %s5521_s7, 4  ;;  %s3774_s28 = int_to_ptr.vmem [resolvable:$true] %s3773_s28 }
 0xe35   : > { %s5401_s9 = scalar_lea.vmem %s3774_s28, 32  ;;  %p5408_p2 = scmp.lt.s32.totalorder %s3774_s28, %s3774_s28 }
 0xe36   : > { %p5402_p11 = scmp.ne.s32.totalorder %s3774_s28, %s5401_s9  ;;  %p5409_p1 = scmp.lt.s32.totalorder %s5401_s9, %s5401_s9 }
 0xe38   : > { %p5403_p7 = pnand %p5402_p11, %p4688_p6  ;;  %p5410_p0 = por %p5409_p1, %p5408_p2 }
 0xe3a   : > { %p5404_p9 = pneg %p5403_p7 }
 0xe3c   : > { %p5411_p5 = pnand %p5410_p0, %p5404_p9 }
 0xe3e   : > { %5414 = shalt.err (!%p5411_p5)
}
 0xe3f   : > { %s6661_s15 = sld [smem:[#allocation57_spill]] }
 0xe45   : > { %s5415_s12 = scalar_lea.hbm %s6661_s15, 32 }
 0xe46   : > { %p5416_p8 = scmp.ne.s32.totalorder %s6661_s15, %s5415_s12  ;;  %p5421_p12 = scmp.lt.u32.totalorder %s5415_s12, %s6661_s15 }
 0xe48   : > { %p5417_p3 = pnand %p5416_p8, %p4688_p6 }
 0xe4a   : > { %p5418_p4 = pneg %p5417_p3 }
 0xe4c   : > { %p5423_p10 = pnand %p5421_p12, %p5418_p4 }
 0xe4e   : > { %5426 = shalt.err (!%p5423_p10)
}
 0xe4f   : > { %4633 = dma.vmem_to_hbm [thread:$0]  (%p4688_p6), %s3774_s28, 32, %s6661_s15, [#allocation21]  }
 0xe50   : > { %5472 = dma.done.wait (%p4688_p6), [#allocation5], 256  }
 0xe51   : > { %5474 = vsyncadd (%p4688_p6), [#allocation5], 4294967040 }
 0xe52   : > { %5476 = dma.done.wait (%p4688_p6), [#allocation21], 32  }
 0xe53   : > { %5478 = vsyncadd (%p4688_p6), [#allocation21], 4294967264 }
 0xe54 PF: > { %s6662_s25 = sld [smem:[#allocation33_spill]]  ;;  %s6663_s4 = sld [smem:[#allocation31_spill]] }
 0xe55   : > { %s6664_s30 = sld [smem:[#allocation32_spill]]  ;;  %s6665_s24 = sld [smem:[#allocation34_spill]] }
 0xe5a   : > { %p37_p13 = scmp.ge.s32.totalorder %s6662_s25, 4  }
 0xe5c   :  { %39 = sbr.rel (!%p37_p13) target bundleno = 30 (0x1e), region = 245 }
 0xe63   :  { %3790 = vsyncpa [#allocation4], 1 }
 0xe64   :  { %3792 = vsyncpa [#allocation4 + $0x1], 1 }
 0xe65   :  { %3793 = vsyncpa [#allocation7], 1 }
 0xe66   :  { %3794 = vsyncpa [#allocation10], 1 }
 0xe67   :  { %3795 = vsyncpa [#allocation18], 1 }
 0xe68   :  { %3796 = vsyncpa [#allocation5], 1 }
 0xe69   :  { %3798 = vsyncpa [#allocation5 + $0x1], 1 }
 0xe6a   :  { %3799 = vsyncpa [#allocation21], 1 }

</bundles_post_ra>
